<compile_context>
chip_gen: v7x
topology: tpu7x:2x2x1
jax: 0.10.0
libtpu: 0.0.40
codegen_flags: <defaults>
</compile_context>

<pallas_src>
import functools

import jax
import jax.numpy as jnp
from jax.experimental import pallas as pl
from jax.experimental.pallas import tpu as pltpu


def _conv_block_kernel(x_ref, w1_ref, b1_ref, w2_ref, b2_ref, mask_ref,
                       o_ref, ypad_ref, *, wp, ls):
    """Fused Conv3x3+BN+ReLU -> Conv3x3+BN+ReLU for one batch element.

    x_ref    : (Lp, C_in)       flattened zero-padded image, Lp = (H+2)*(W+2)
    w1_ref   : (9, C_in, C_out) tap-major folded conv1 weights
    b1_ref   : (1, C_out)       folded conv1 bias
    w2_ref   : (9, C_out, C_out)
    b2_ref   : (1, C_out)
    mask_ref : (ls, 1)          1.0 at real pixels, 0.0 at wrap-around columns
    o_ref    : (ls, C_out)      output slab, slab index q = h*(W+2) + w
    ypad_ref : (Lp, C_out)      VMEM scratch: zero-padded intermediate y1
    """
    mask = mask_ref[...]

    # ---- conv1 (+ folded BN) + ReLU ----
    acc = None
    for k in range(9):
        dh, dw = divmod(k, 3)
        off = dh * wp + dw
        slab = x_ref[off:off + ls, :].astype(jnp.float32)        # (ls, C_in)
        part = jnp.dot(slab, w1_ref[k],
                       preferred_element_type=jnp.float32)       # (ls, C_out)
        acc = part if acc is None else acc + part
    y1 = jnp.maximum(acc + b1_ref[...], 0.0) * mask               # (ls, C_out)

    # Re-embed y1 into the flattened zero-padded spatial grid for conv2.
    ypad_ref[...] = jnp.zeros_like(ypad_ref)
    ypad_ref[wp + 1:wp + 1 + ls, :] = y1

    # ---- conv2 (+ folded BN) + ReLU ----
    acc2 = None
    for k in range(9):
        dh, dw = divmod(k, 3)
        off = dh * wp + dw
        slab = ypad_ref[off:off + ls, :]                          # (ls, C_out)
        part = jnp.dot(slab, w2_ref[k],
                       preferred_element_type=jnp.float32)
        acc2 = part if acc2 is None else acc2 + part
    y2 = jnp.maximum(acc2 + b2_ref[...], 0.0) * mask
    o_ref[...] = y2.astype(o_ref.dtype)


def _fold_bn_into_conv(w, b, gamma, beta, mean, var, eps=1e-5):
    """Fold eval-mode BatchNorm into an OIHW conv weight + bias.

    Returns tap-major weights (9, C_in, C_out) and a (1, C_out) bias.
    """
    s = gamma / jnp.sqrt(var + eps)                 # (C_out,)
    w_eff = w * s[:, None, None, None]              # (O, I, 3, 3)
    b_eff = (b - mean) * s + beta                   # (C_out,)
    c_out, c_in = w.shape[0], w.shape[1]
    w_taps = jnp.transpose(w_eff, (2, 3, 1, 0)).reshape(9, c_in, c_out)
    return w_taps.astype(jnp.float32), b_eff.astype(jnp.float32)[None, :]


@jax.jit
def conv_block_forward(x, params):
    """x: (B, C_in, H, W) NCHW  ->  (B, C_out, H, W) (eval-mode conv_block)."""
    B, C_in, H, W = x.shape
    C_out = params["w1"].shape[0]
    Hp, Wp = H + 2, W + 2
    Lp = Hp * Wp                  # flattened padded pixel count
    Ls = H * Wp - 2               # length of each shifted-window slab

    w1, b1 = _fold_bn_into_conv(params["w1"], params["b1"], params["gamma1"],
                                params["beta1"], params["mean1"], params["var1"])
    w2, b2 = _fold_bn_into_conv(params["w2"], params["b2"], params["gamma2"],
                                params["beta2"], params["mean2"], params["var2"])

    # NCHW -> flattened zero-padded NHWC: (B, Lp, C_in).  Pixels land on the
    # sublane axis, channels on the lane axis.
    xp = jnp.pad(jnp.transpose(x, (0, 2, 3, 1)),
                 ((0, 0), (1, 1), (1, 1), (0, 0)))
    x_flat = xp.reshape(B, Lp, C_in)

    # Slab-coordinate validity mask: slab index q maps to pixel (h, w) via
    # q = h*Wp + w; entries with (q mod Wp) >= W are wrap-around junk.
    q = jnp.arange(Ls, dtype=jnp.int32)
    mask = ((q % Wp) < W).astype(jnp.float32)[:, None]            # (Ls, 1)

    kernel = functools.partial(_conv_block_kernel, wp=Wp, ls=Ls)

    out_slab = pl.pallas_call(
        kernel,
        out_shape=jax.ShapeDtypeStruct((B, Ls, C_out), x.dtype),
        grid_spec=pltpu.PrefetchScalarGridSpec(
            num_scalar_prefetch=0,
            grid=(B,),
            in_specs=[
                pl.BlockSpec((None, Lp, C_in), lambda b: (b, 0, 0)),    # x
                pl.BlockSpec((9, C_in, C_out), lambda b: (0, 0, 0)),    # w1 taps
                pl.BlockSpec((1, C_out), lambda b: (0, 0)),             # b1
                pl.BlockSpec((9, C_out, C_out), lambda b: (0, 0, 0)),   # w2 taps
                pl.BlockSpec((1, C_out), lambda b: (0, 0)),             # b2
                pl.BlockSpec((Ls, 1), lambda b: (0, 0)),                # mask
            ],
            out_specs=pl.BlockSpec((None, Ls, C_out), lambda b: (b, 0, 0)),
            scratch_shapes=[pltpu.VMEM((Lp, C_out), jnp.float32)],
        ),
        compiler_params=pltpu.CompilerParams(
            dimension_semantics=("parallel",)),
    )(x_flat, w1, b1, w2, b2, mask)

    # Slab -> NCHW: q = h*Wp + w, so pad to H*Wp, un-flatten and crop columns.
    out_full = jnp.pad(out_slab, ((0, 0), (0, H * Wp - Ls), (0, 0)))
    out = out_full.reshape(B, H, Wp, C_out)[:, :, :W, :]
    return jnp.transpose(out, (0, 3, 1, 2))


def _reference(x, params, eps=1e-5):
    """Pure-JAX/XLA reference of the PyTorch conv_block forward (eval-mode BN)."""
    def conv_bn_relu(inp, w, b, gamma, beta, mean, var):
        y = jax.lax.conv_general_dilated(
            inp, w, window_strides=(1, 1), padding=((1, 1), (1, 1)),
            dimension_numbers=("NCHW", "OIHW", "NCHW"),
            precision=jax.lax.Precision.HIGHEST)
        y = y + b[None, :, None, None]
        s = gamma / jnp.sqrt(var + eps)
        y = (y - mean[None, :, None, None]) * s[None, :, None, None] \
            + beta[None, :, None, None]
        return jnp.maximum(y, 0.0)

    y = conv_bn_relu(x, params["w1"], params["b1"], params["gamma1"],
                     params["beta1"], params["mean1"], params["var1"])
    y = conv_bn_relu(y, params["w2"], params["b2"], params["gamma2"],
                     params["beta2"], params["mean2"], params["var2"])
    return y


def make_params(key, ch_in, ch_out):
    ks = jax.random.split(key, 12)
    return {
        # conv weights in PyTorch OIHW layout, biases (C_out,)
        "w1": jax.random.normal(ks[0], (ch_out, ch_in, 3, 3), jnp.float32) * 0.2,
        "b1": jax.random.normal(ks[1], (ch_out,), jnp.float32) * 0.1,
        "w2": jax.random.normal(ks[2], (ch_out, ch_out, 3, 3), jnp.float32) * 0.07,
        "b2": jax.random.normal(ks[3], (ch_out,), jnp.float32) * 0.1,
        # eval-mode BatchNorm affine params / running stats (non-trivial values
        # so the BN folding is actually exercised)
        "gamma1": 1.0 + 0.1 * jax.random.normal(ks[4], (ch_out,), jnp.float32),
        "beta1": 0.1 * jax.random.normal(ks[5], (ch_out,), jnp.float32),
        "mean1": 0.1 * jax.random.normal(ks[6], (ch_out,), jnp.float32),
        "var1": 0.8 + 0.4 * jax.random.uniform(ks[7], (ch_out,), jnp.float32),
        "gamma2": 1.0 + 0.1 * jax.random.normal(ks[8], (ch_out,), jnp.float32),
        "beta2": 0.1 * jax.random.normal(ks[9], (ch_out,), jnp.float32),
        "mean2": 0.1 * jax.random.normal(ks[10], (ch_out,), jnp.float32),
        "var2": 0.8 + 0.4 * jax.random.uniform(ks[11], (ch_out,), jnp.float32),
    }


if __name__ == "__main__":
    B, ch_in, ch_out, H, W = 2, 4, 32, 16, 16

    key = jax.random.PRNGKey(0)
    kx, kp = jax.random.split(key)
    x = jax.random.normal(kx, (B, ch_in, H, W), jnp.float32)
    params = make_params(kp, ch_in, ch_out)

    out = conv_block_forward(x, params)
    out = jax.block_until_ready(out)

    ref = _reference(x, params)
    assert out.shape == (B, ch_out, H, W)
    err = float(jnp.max(jnp.abs(out - ref)))
    assert jnp.allclose(out, ref, atol=1e-3, rtol=1e-3), err

    print("KERNEL_OK")
</pallas_src>

<mosaic_0001>
module attributes {stable_mosaic.version = 11 : i64} {
  func.func @_conv_block_kernel(%arg0: i32, %arg1: memref<1x324x4xf32, #tpu.memory_space<vmem>>, %arg2: memref<9x4x32xf32, #tpu.memory_space<vmem>>, %arg3: memref<1x32xf32, #tpu.memory_space<vmem>>, %arg4: memref<9x32x32xf32, #tpu.memory_space<vmem>>, %arg5: memref<1x32xf32, #tpu.memory_space<vmem>>, %arg6: memref<286x1xf32, #tpu.memory_space<vmem>>, %arg7: memref<1x286x32xf32, #tpu.memory_space<vmem>>, %arg8: memref<324x32xf32, #tpu.memory_space<vmem>>) attributes {dimension_semantics = [#tpu.dimension_semantics<parallel>], iteration_bounds = array<i64: 2>, scalar_prefetch = 0 : i64, scratch_operands = 1 : i64, tpu.core_type = #tpu.core_type<tc>, window_params = [{transform_indices = @transform_0, window_bounds = array<i64: 1, 324, 4>}, {pipeline_mode = #tpu.pipeline_mode<synchronous>, transform_indices = @transform_1, window_bounds = array<i64: 9, 4, 32>}, {pipeline_mode = #tpu.pipeline_mode<synchronous>, transform_indices = @transform_2, window_bounds = array<i64: 1, 32>}, {pipeline_mode = #tpu.pipeline_mode<synchronous>, transform_indices = @transform_3, window_bounds = array<i64: 9, 32, 32>}, {pipeline_mode = #tpu.pipeline_mode<synchronous>, transform_indices = @transform_4, window_bounds = array<i64: 1, 32>}, {pipeline_mode = #tpu.pipeline_mode<synchronous>, transform_indices = @transform_5, window_bounds = array<i64: 286, 1>}, {transform_indices = @transform_6, window_bounds = array<i64: 1, 286, 32>}]} {
    %c0 = arith.constant 0 : index
    %c0_0 = arith.constant 0 : index
    %0 = vector.load %arg6[%c0, %c0_0] : memref<286x1xf32, #tpu.memory_space<vmem>>, vector<286x1xf32>
    %c0_1 = arith.constant 0 : index
    %c0_2 = arith.constant 0 : index
    %c0_3 = arith.constant 0 : index
    %1 = vector.load %arg1[%c0_1, %c0_2, %c0_3] : memref<1x324x4xf32, #tpu.memory_space<vmem>>, vector<1x286x4xf32>
    %2 = vector.shape_cast %1 : vector<1x286x4xf32> to vector<286x4xf32>
    %c0_4 = arith.constant 0 : index
    %c0_5 = arith.constant 0 : index
    %c0_6 = arith.constant 0 : index
    %3 = vector.load %arg2[%c0_4, %c0_5, %c0_6] : memref<9x4x32xf32, #tpu.memory_space<vmem>>, vector<1x4x32xf32>
    %4 = vector.shape_cast %3 : vector<1x4x32xf32> to vector<4x32xf32>
    %cst = arith.constant dense<0.000000e+00> : vector<286x32xf32>
    %5 = tpu.matmul %2, %4, %cst {dimension_numbers = #tpu.dot_dimension_numbers<[1], [0], [0], [1], [0, 0, 1, 1], [], []>} : vector<286x4xf32>, vector<4x32xf32>, vector<286x32xf32> -> vector<286x32xf32>
    %c0_7 = arith.constant 0 : index
    %c1 = arith.constant 1 : index
    %c0_8 = arith.constant 0 : index
    %6 = vector.load %arg1[%c0_7, %c1, %c0_8] : memref<1x324x4xf32, #tpu.memory_space<vmem>>, vector<1x286x4xf32>
    %7 = vector.shape_cast %6 : vector<1x286x4xf32> to vector<286x4xf32>
    %c1_9 = arith.constant 1 : index
    %c0_10 = arith.constant 0 : index
    %c0_11 = arith.constant 0 : index
    %8 = vector.load %arg2[%c1_9, %c0_10, %c0_11] : memref<9x4x32xf32, #tpu.memory_space<vmem>>, vector<1x4x32xf32>
    %9 = vector.shape_cast %8 : vector<1x4x32xf32> to vector<4x32xf32>
    %cst_12 = arith.constant dense<0.000000e+00> : vector<286x32xf32>
    %10 = tpu.matmul %7, %9, %cst_12 {dimension_numbers = #tpu.dot_dimension_numbers<[1], [0], [0], [1], [0, 0, 1, 1], [], []>} : vector<286x4xf32>, vector<4x32xf32>, vector<286x32xf32> -> vector<286x32xf32>
    %11 = arith.addf %5, %10 : vector<286x32xf32>
    %c0_13 = arith.constant 0 : index
    %c2 = arith.constant 2 : index
    %c0_14 = arith.constant 0 : index
    %12 = vector.load %arg1[%c0_13, %c2, %c0_14] : memref<1x324x4xf32, #tpu.memory_space<vmem>>, vector<1x286x4xf32>
    %13 = vector.shape_cast %12 : vector<1x286x4xf32> to vector<286x4xf32>
    %c2_15 = arith.constant 2 : index
    %c0_16 = arith.constant 0 : index
    %c0_17 = arith.constant 0 : index
    %14 = vector.load %arg2[%c2_15, %c0_16, %c0_17] : memref<9x4x32xf32, #tpu.memory_space<vmem>>, vector<1x4x32xf32>
    %15 = vector.shape_cast %14 : vector<1x4x32xf32> to vector<4x32xf32>
    %cst_18 = arith.constant dense<0.000000e+00> : vector<286x32xf32>
    %16 = tpu.matmul %13, %15, %cst_18 {dimension_numbers = #tpu.dot_dimension_numbers<[1], [0], [0], [1], [0, 0, 1, 1], [], []>} : vector<286x4xf32>, vector<4x32xf32>, vector<286x32xf32> -> vector<286x32xf32>
    %17 = arith.addf %11, %16 : vector<286x32xf32>
    %c0_19 = arith.constant 0 : index
    %c18 = arith.constant 18 : index
    %c0_20 = arith.constant 0 : index
    %18 = vector.load %arg1[%c0_19, %c18, %c0_20] : memref<1x324x4xf32, #tpu.memory_space<vmem>>, vector<1x286x4xf32>
    %19 = vector.shape_cast %18 : vector<1x286x4xf32> to vector<286x4xf32>
    %c3 = arith.constant 3 : index
    %c0_21 = arith.constant 0 : index
    %c0_22 = arith.constant 0 : index
    %20 = vector.load %arg2[%c3, %c0_21, %c0_22] : memref<9x4x32xf32, #tpu.memory_space<vmem>>, vector<1x4x32xf32>
    %21 = vector.shape_cast %20 : vector<1x4x32xf32> to vector<4x32xf32>
    %cst_23 = arith.constant dense<0.000000e+00> : vector<286x32xf32>
    %22 = tpu.matmul %19, %21, %cst_23 {dimension_numbers = #tpu.dot_dimension_numbers<[1], [0], [0], [1], [0, 0, 1, 1], [], []>} : vector<286x4xf32>, vector<4x32xf32>, vector<286x32xf32> -> vector<286x32xf32>
    %23 = arith.addf %17, %22 : vector<286x32xf32>
    %c0_24 = arith.constant 0 : index
    %c19 = arith.constant 19 : index
    %c0_25 = arith.constant 0 : index
    %24 = vector.load %arg1[%c0_24, %c19, %c0_25] : memref<1x324x4xf32, #tpu.memory_space<vmem>>, vector<1x286x4xf32>
    %25 = vector.shape_cast %24 : vector<1x286x4xf32> to vector<286x4xf32>
    %c4 = arith.constant 4 : index
    %c0_26 = arith.constant 0 : index
    %c0_27 = arith.constant 0 : index
    %26 = vector.load %arg2[%c4, %c0_26, %c0_27] : memref<9x4x32xf32, #tpu.memory_space<vmem>>, vector<1x4x32xf32>
    %27 = vector.shape_cast %26 : vector<1x4x32xf32> to vector<4x32xf32>
    %cst_28 = arith.constant dense<0.000000e+00> : vector<286x32xf32>
    %28 = tpu.matmul %25, %27, %cst_28 {dimension_numbers = #tpu.dot_dimension_numbers<[1], [0], [0], [1], [0, 0, 1, 1], [], []>} : vector<286x4xf32>, vector<4x32xf32>, vector<286x32xf32> -> vector<286x32xf32>
    %29 = arith.addf %23, %28 : vector<286x32xf32>
    %c0_29 = arith.constant 0 : index
    %c20 = arith.constant 20 : index
    %c0_30 = arith.constant 0 : index
    %30 = vector.load %arg1[%c0_29, %c20, %c0_30] : memref<1x324x4xf32, #tpu.memory_space<vmem>>, vector<1x286x4xf32>
    %31 = vector.shape_cast %30 : vector<1x286x4xf32> to vector<286x4xf32>
    %c5 = arith.constant 5 : index
    %c0_31 = arith.constant 0 : index
    %c0_32 = arith.constant 0 : index
    %32 = vector.load %arg2[%c5, %c0_31, %c0_32] : memref<9x4x32xf32, #tpu.memory_space<vmem>>, vector<1x4x32xf32>
    %33 = vector.shape_cast %32 : vector<1x4x32xf32> to vector<4x32xf32>
    %cst_33 = arith.constant dense<0.000000e+00> : vector<286x32xf32>
    %34 = tpu.matmul %31, %33, %cst_33 {dimension_numbers = #tpu.dot_dimension_numbers<[1], [0], [0], [1], [0, 0, 1, 1], [], []>} : vector<286x4xf32>, vector<4x32xf32>, vector<286x32xf32> -> vector<286x32xf32>
    %35 = arith.addf %29, %34 : vector<286x32xf32>
    %c0_34 = arith.constant 0 : index
    %c36 = arith.constant 36 : index
    %c0_35 = arith.constant 0 : index
    %36 = vector.load %arg1[%c0_34, %c36, %c0_35] : memref<1x324x4xf32, #tpu.memory_space<vmem>>, vector<1x286x4xf32>
    %37 = vector.shape_cast %36 : vector<1x286x4xf32> to vector<286x4xf32>
    %c6 = arith.constant 6 : index
    %c0_36 = arith.constant 0 : index
    %c0_37 = arith.constant 0 : index
    %38 = vector.load %arg2[%c6, %c0_36, %c0_37] : memref<9x4x32xf32, #tpu.memory_space<vmem>>, vector<1x4x32xf32>
    %39 = vector.shape_cast %38 : vector<1x4x32xf32> to vector<4x32xf32>
    %cst_38 = arith.constant dense<0.000000e+00> : vector<286x32xf32>
    %40 = tpu.matmul %37, %39, %cst_38 {dimension_numbers = #tpu.dot_dimension_numbers<[1], [0], [0], [1], [0, 0, 1, 1], [], []>} : vector<286x4xf32>, vector<4x32xf32>, vector<286x32xf32> -> vector<286x32xf32>
    %41 = arith.addf %35, %40 : vector<286x32xf32>
    %c0_39 = arith.constant 0 : index
    %c37 = arith.constant 37 : index
    %c0_40 = arith.constant 0 : index
    %42 = vector.load %arg1[%c0_39, %c37, %c0_40] : memref<1x324x4xf32, #tpu.memory_space<vmem>>, vector<1x286x4xf32>
    %43 = vector.shape_cast %42 : vector<1x286x4xf32> to vector<286x4xf32>
    %c7 = arith.constant 7 : index
    %c0_41 = arith.constant 0 : index
    %c0_42 = arith.constant 0 : index
    %44 = vector.load %arg2[%c7, %c0_41, %c0_42] : memref<9x4x32xf32, #tpu.memory_space<vmem>>, vector<1x4x32xf32>
    %45 = vector.shape_cast %44 : vector<1x4x32xf32> to vector<4x32xf32>
    %cst_43 = arith.constant dense<0.000000e+00> : vector<286x32xf32>
    %46 = tpu.matmul %43, %45, %cst_43 {dimension_numbers = #tpu.dot_dimension_numbers<[1], [0], [0], [1], [0, 0, 1, 1], [], []>} : vector<286x4xf32>, vector<4x32xf32>, vector<286x32xf32> -> vector<286x32xf32>
    %47 = arith.addf %41, %46 : vector<286x32xf32>
    %c0_44 = arith.constant 0 : index
    %c38 = arith.constant 38 : index
    %c0_45 = arith.constant 0 : index
    %48 = vector.load %arg1[%c0_44, %c38, %c0_45] : memref<1x324x4xf32, #tpu.memory_space<vmem>>, vector<1x286x4xf32>
    %49 = vector.shape_cast %48 : vector<1x286x4xf32> to vector<286x4xf32>
    %c8 = arith.constant 8 : index
    %c0_46 = arith.constant 0 : index
    %c0_47 = arith.constant 0 : index
    %50 = vector.load %arg2[%c8, %c0_46, %c0_47] : memref<9x4x32xf32, #tpu.memory_space<vmem>>, vector<1x4x32xf32>
    %51 = vector.shape_cast %50 : vector<1x4x32xf32> to vector<4x32xf32>
    %cst_48 = arith.constant dense<0.000000e+00> : vector<286x32xf32>
    %52 = tpu.matmul %49, %51, %cst_48 {dimension_numbers = #tpu.dot_dimension_numbers<[1], [0], [0], [1], [0, 0, 1, 1], [], []>} : vector<286x4xf32>, vector<4x32xf32>, vector<286x32xf32> -> vector<286x32xf32>
    %53 = arith.addf %47, %52 : vector<286x32xf32>
    %c0_49 = arith.constant 0 : index
    %c0_50 = arith.constant 0 : index
    %54 = vector.load %arg3[%c0_49, %c0_50] : memref<1x32xf32, #tpu.memory_space<vmem>>, vector<1x32xf32>
    %55 = vector.broadcast %54 : vector<1x32xf32> to vector<286x32xf32>
    %56 = arith.addf %53, %55 : vector<286x32xf32>
    %cst_51 = arith.constant 0.000000e+00 : f32
    %57 = vector.broadcast %cst_51 : f32 to vector<286x32xf32>
    %58 = arith.maximumf %56, %57 : vector<286x32xf32>
    %59 = vector.broadcast %0 : vector<286x1xf32> to vector<286x32xf32>
    %60 = arith.mulf %58, %59 : vector<286x32xf32>
    %cst_52 = arith.constant 0.000000e+00 : f32
    %61 = vector.broadcast %cst_52 : f32 to vector<324x32xf32>
    %c0_53 = arith.constant 0 : index
    %c0_54 = arith.constant 0 : index
    %62 = vector.load %arg8[%c0_53, %c0_54] : memref<324x32xf32, #tpu.memory_space<vmem>>, vector<324x32xf32>
    tpu.vector_store %arg8[%c0_53, %c0_54], %61 {strides = array<i32>} : memref<324x32xf32, #tpu.memory_space<vmem>>, vector<324x32xf32>,
    %c19_55 = arith.constant 19 : index
    %c0_56 = arith.constant 0 : index
    %63 = vector.load %arg8[%c19_55, %c0_56] : memref<324x32xf32, #tpu.memory_space<vmem>>, vector<286x32xf32>
    tpu.vector_store %arg8[%c19_55, %c0_56], %60 {strides = array<i32>} : memref<324x32xf32, #tpu.memory_space<vmem>>, vector<286x32xf32>,
    %c0_57 = arith.constant 0 : index
    %c0_58 = arith.constant 0 : index
    %64 = vector.load %arg8[%c0_57, %c0_58] : memref<324x32xf32, #tpu.memory_space<vmem>>, vector<286x32xf32>
    %c0_59 = arith.constant 0 : index
    %c0_60 = arith.constant 0 : index
    %c0_61 = arith.constant 0 : index
    %65 = vector.load %arg4[%c0_59, %c0_60, %c0_61] : memref<9x32x32xf32, #tpu.memory_space<vmem>>, vector<1x32x32xf32>
    %66 = vector.shape_cast %65 : vector<1x32x32xf32> to vector<32x32xf32>
    %cst_62 = arith.constant dense<0.000000e+00> : vector<286x32xf32>
    %67 = tpu.matmul %64, %66, %cst_62 {dimension_numbers = #tpu.dot_dimension_numbers<[1], [0], [0], [1], [0, 0, 1, 1], [], []>} : vector<286x32xf32>, vector<32x32xf32>, vector<286x32xf32> -> vector<286x32xf32>
    %c1_63 = arith.constant 1 : index
    %c0_64 = arith.constant 0 : index
    %68 = vector.load %arg8[%c1_63, %c0_64] : memref<324x32xf32, #tpu.memory_space<vmem>>, vector<286x32xf32>
    %c1_65 = arith.constant 1 : index
    %c0_66 = arith.constant 0 : index
    %c0_67 = arith.constant 0 : index
    %69 = vector.load %arg4[%c1_65, %c0_66, %c0_67] : memref<9x32x32xf32, #tpu.memory_space<vmem>>, vector<1x32x32xf32>
    %70 = vector.shape_cast %69 : vector<1x32x32xf32> to vector<32x32xf32>
    %cst_68 = arith.constant dense<0.000000e+00> : vector<286x32xf32>
    %71 = tpu.matmul %68, %70, %cst_68 {dimension_numbers = #tpu.dot_dimension_numbers<[1], [0], [0], [1], [0, 0, 1, 1], [], []>} : vector<286x32xf32>, vector<32x32xf32>, vector<286x32xf32> -> vector<286x32xf32>
    %72 = arith.addf %67, %71 : vector<286x32xf32>
    %c2_69 = arith.constant 2 : index
    %c0_70 = arith.constant 0 : index
    %73 = vector.load %arg8[%c2_69, %c0_70] : memref<324x32xf32, #tpu.memory_space<vmem>>, vector<286x32xf32>
    %c2_71 = arith.constant 2 : index
    %c0_72 = arith.constant 0 : index
    %c0_73 = arith.constant 0 : index
    %74 = vector.load %arg4[%c2_71, %c0_72, %c0_73] : memref<9x32x32xf32, #tpu.memory_space<vmem>>, vector<1x32x32xf32>
    %75 = vector.shape_cast %74 : vector<1x32x32xf32> to vector<32x32xf32>
    %cst_74 = arith.constant dense<0.000000e+00> : vector<286x32xf32>
    %76 = tpu.matmul %73, %75, %cst_74 {dimension_numbers = #tpu.dot_dimension_numbers<[1], [0], [0], [1], [0, 0, 1, 1], [], []>} : vector<286x32xf32>, vector<32x32xf32>, vector<286x32xf32> -> vector<286x32xf32>
    %77 = arith.addf %72, %76 : vector<286x32xf32>
    %c18_75 = arith.constant 18 : index
    %c0_76 = arith.constant 0 : index
    %78 = vector.load %arg8[%c18_75, %c0_76] : memref<324x32xf32, #tpu.memory_space<vmem>>, vector<286x32xf32>
    %c3_77 = arith.constant 3 : index
    %c0_78 = arith.constant 0 : index
    %c0_79 = arith.constant 0 : index
    %79 = vector.load %arg4[%c3_77, %c0_78, %c0_79] : memref<9x32x32xf32, #tpu.memory_space<vmem>>, vector<1x32x32xf32>
    %80 = vector.shape_cast %79 : vector<1x32x32xf32> to vector<32x32xf32>
    %cst_80 = arith.constant dense<0.000000e+00> : vector<286x32xf32>
    %81 = tpu.matmul %78, %80, %cst_80 {dimension_numbers = #tpu.dot_dimension_numbers<[1], [0], [0], [1], [0, 0, 1, 1], [], []>} : vector<286x32xf32>, vector<32x32xf32>, vector<286x32xf32> -> vector<286x32xf32>
    %82 = arith.addf %77, %81 : vector<286x32xf32>
    %c19_81 = arith.constant 19 : index
    %c0_82 = arith.constant 0 : index
    %83 = vector.load %arg8[%c19_81, %c0_82] : memref<324x32xf32, #tpu.memory_space<vmem>>, vector<286x32xf32>
    %c4_83 = arith.constant 4 : index
    %c0_84 = arith.constant 0 : index
    %c0_85 = arith.constant 0 : index
    %84 = vector.load %arg4[%c4_83, %c0_84, %c0_85] : memref<9x32x32xf32, #tpu.memory_space<vmem>>, vector<1x32x32xf32>
    %85 = vector.shape_cast %84 : vector<1x32x32xf32> to vector<32x32xf32>
    %cst_86 = arith.constant dense<0.000000e+00> : vector<286x32xf32>
    %86 = tpu.matmul %83, %85, %cst_86 {dimension_numbers = #tpu.dot_dimension_numbers<[1], [0], [0], [1], [0, 0, 1, 1], [], []>} : vector<286x32xf32>, vector<32x32xf32>, vector<286x32xf32> -> vector<286x32xf32>
    %87 = arith.addf %82, %86 : vector<286x32xf32>
    %c20_87 = arith.constant 20 : index
    %c0_88 = arith.constant 0 : index
    %88 = vector.load %arg8[%c20_87, %c0_88] : memref<324x32xf32, #tpu.memory_space<vmem>>, vector<286x32xf32>
    %c5_89 = arith.constant 5 : index
    %c0_90 = arith.constant 0 : index
    %c0_91 = arith.constant 0 : index
    %89 = vector.load %arg4[%c5_89, %c0_90, %c0_91] : memref<9x32x32xf32, #tpu.memory_space<vmem>>, vector<1x32x32xf32>
    %90 = vector.shape_cast %89 : vector<1x32x32xf32> to vector<32x32xf32>
    %cst_92 = arith.constant dense<0.000000e+00> : vector<286x32xf32>
    %91 = tpu.matmul %88, %90, %cst_92 {dimension_numbers = #tpu.dot_dimension_numbers<[1], [0], [0], [1], [0, 0, 1, 1], [], []>} : vector<286x32xf32>, vector<32x32xf32>, vector<286x32xf32> -> vector<286x32xf32>
    %92 = arith.addf %87, %91 : vector<286x32xf32>
    %c36_93 = arith.constant 36 : index
    %c0_94 = arith.constant 0 : index
    %93 = vector.load %arg8[%c36_93, %c0_94] : memref<324x32xf32, #tpu.memory_space<vmem>>, vector<286x32xf32>
    %c6_95 = arith.constant 6 : index
    %c0_96 = arith.constant 0 : index
    %c0_97 = arith.constant 0 : index
    %94 = vector.load %arg4[%c6_95, %c0_96, %c0_97] : memref<9x32x32xf32, #tpu.memory_space<vmem>>, vector<1x32x32xf32>
    %95 = vector.shape_cast %94 : vector<1x32x32xf32> to vector<32x32xf32>
    %cst_98 = arith.constant dense<0.000000e+00> : vector<286x32xf32>
    %96 = tpu.matmul %93, %95, %cst_98 {dimension_numbers = #tpu.dot_dimension_numbers<[1], [0], [0], [1], [0, 0, 1, 1], [], []>} : vector<286x32xf32>, vector<32x32xf32>, vector<286x32xf32> -> vector<286x32xf32>
    %97 = arith.addf %92, %96 : vector<286x32xf32>
    %c37_99 = arith.constant 37 : index
    %c0_100 = arith.constant 0 : index
    %98 = vector.load %arg8[%c37_99, %c0_100] : memref<324x32xf32, #tpu.memory_space<vmem>>, vector<286x32xf32>
    %c7_101 = arith.constant 7 : index
    %c0_102 = arith.constant 0 : index
    %c0_103 = arith.constant 0 : index
    %99 = vector.load %arg4[%c7_101, %c0_102, %c0_103] : memref<9x32x32xf32, #tpu.memory_space<vmem>>, vector<1x32x32xf32>
    %100 = vector.shape_cast %99 : vector<1x32x32xf32> to vector<32x32xf32>
    %cst_104 = arith.constant dense<0.000000e+00> : vector<286x32xf32>
    %101 = tpu.matmul %98, %100, %cst_104 {dimension_numbers = #tpu.dot_dimension_numbers<[1], [0], [0], [1], [0, 0, 1, 1], [], []>} : vector<286x32xf32>, vector<32x32xf32>, vector<286x32xf32> -> vector<286x32xf32>
    %102 = arith.addf %97, %101 : vector<286x32xf32>
    %c38_105 = arith.constant 38 : index
    %c0_106 = arith.constant 0 : index
    %103 = vector.load %arg8[%c38_105, %c0_106] : memref<324x32xf32, #tpu.memory_space<vmem>>, vector<286x32xf32>
    %c8_107 = arith.constant 8 : index
    %c0_108 = arith.constant 0 : index
    %c0_109 = arith.constant 0 : index
    %104 = vector.load %arg4[%c8_107, %c0_108, %c0_109] : memref<9x32x32xf32, #tpu.memory_space<vmem>>, vector<1x32x32xf32>
    %105 = vector.shape_cast %104 : vector<1x32x32xf32> to vector<32x32xf32>
    %cst_110 = arith.constant dense<0.000000e+00> : vector<286x32xf32>
    %106 = tpu.matmul %103, %105, %cst_110 {dimension_numbers = #tpu.dot_dimension_numbers<[1], [0], [0], [1], [0, 0, 1, 1], [], []>} : vector<286x32xf32>, vector<32x32xf32>, vector<286x32xf32> -> vector<286x32xf32>
    %107 = arith.addf %102, %106 : vector<286x32xf32>
    %c0_111 = arith.constant 0 : index
    %c0_112 = arith.constant 0 : index
    %108 = vector.load %arg5[%c0_111, %c0_112] : memref<1x32xf32, #tpu.memory_space<vmem>>, vector<1x32xf32>
    %109 = vector.broadcast %108 : vector<1x32xf32> to vector<286x32xf32>
    %110 = arith.addf %107, %109 : vector<286x32xf32>
    %cst_113 = arith.constant 0.000000e+00 : f32
    %111 = vector.broadcast %cst_113 : f32 to vector<286x32xf32>
    %112 = arith.maximumf %110, %111 : vector<286x32xf32>
    %113 = vector.broadcast %0 : vector<286x1xf32> to vector<286x32xf32>
    %114 = arith.mulf %112, %113 : vector<286x32xf32>
    %c0_114 = arith.constant 0 : index
    %c0_115 = arith.constant 0 : index
    %c0_116 = arith.constant 0 : index
    %115 = vector.load %arg7[%c0_114, %c0_115, %c0_116] : memref<1x286x32xf32, #tpu.memory_space<vmem>>, vector<1x286x32xf32>
    %116 = vector.shape_cast %115 : vector<1x286x32xf32> to vector<286x32xf32>
    %117 = vector.shape_cast %114 : vector<286x32xf32> to vector<1x286x32xf32>
    tpu.vector_store %arg7[%c0_114, %c0_115, %c0_116], %117 {strides = array<i32>} : memref<1x286x32xf32, #tpu.memory_space<vmem>>, vector<1x286x32xf32>,
    return
  }
  func.func @transform_0(%arg0: i32) -> (i32, i32, i32) {
    %c0_i32 = arith.constant 0 : i32
    %c0_i32_0 = arith.constant 0 : i32
    %c0_i32_1 = arith.constant 0 : i32
    return %arg0, %c0_i32, %c0_i32_0 : i32, i32, i32
  }
  func.func @transform_1(%arg0: i32) -> (i32, i32, i32) {
    %c0_i32 = arith.constant 0 : i32
    %c0_i32_0 = arith.constant 0 : i32
    %c0_i32_1 = arith.constant 0 : i32
    %c0_i32_2 = arith.constant 0 : i32
    return %c0_i32, %c0_i32_0, %c0_i32_1 : i32, i32, i32
  }
  func.func @transform_2(%arg0: i32) -> (i32, i32) {
    %c0_i32 = arith.constant 0 : i32
    %c0_i32_0 = arith.constant 0 : i32
    %c0_i32_1 = arith.constant 0 : i32
    return %c0_i32, %c0_i32_0 : i32, i32
  }
  func.func @transform_3(%arg0: i32) -> (i32, i32, i32) {
    %c0_i32 = arith.constant 0 : i32
    %c0_i32_0 = arith.constant 0 : i32
    %c0_i32_1 = arith.constant 0 : i32
    %c0_i32_2 = arith.constant 0 : i32
    return %c0_i32, %c0_i32_0, %c0_i32_1 : i32, i32, i32
  }
  func.func @transform_4(%arg0: i32) -> (i32, i32) {
    %c0_i32 = arith.constant 0 : i32
    %c0_i32_0 = arith.constant 0 : i32
    %c0_i32_1 = arith.constant 0 : i32
    return %c0_i32, %c0_i32_0 : i32, i32
  }
  func.func @transform_5(%arg0: i32) -> (i32, i32) {
    %c0_i32 = arith.constant 0 : i32
    %c0_i32_0 = arith.constant 0 : i32
    %c0_i32_1 = arith.constant 0 : i32
    return %c0_i32, %c0_i32_0 : i32, i32
  }
  func.func @transform_6(%arg0: i32) -> (i32, i32, i32) {
    %c0_i32 = arith.constant 0 : i32
    %c0_i32_0 = arith.constant 0 : i32
    %c0_i32_1 = arith.constant 0 : i32
    return %arg0, %c0_i32, %c0_i32_0 : i32, i32, i32
  }
}

</mosaic_0001>

<bundles_post_ra>
// kernel: conv_block_forward.1
= control target key start
LH: loop header
LB: loop body
LE: loop exit
PB: predicated region body
PF: predicated region fallthrough
CT: control target
= control target key end

     0   :  { %s11635_s21 = smov 0   ;;  %s13522_s0 = inlined_call_operand.vmem [shape: f32[2,324,4], index: 0, kind: input, shape index: {}]   ;;  %s13523_s1 = inlined_call_operand.vmem [shape: f32[9,4,32], index: 1, kind: input, shape index: {}]   ;;  %s13524_s2 = inlined_call_operand.vmem [shape: f32[1,32], index: 2, kind: input, shape index: {}]   ;;  %s13525_s3 = inlined_call_operand.vmem [shape: f32[9,32,32], index: 3, kind: input, shape index: {}]   ;;  %s13526_s4 = inlined_call_operand.vmem [shape: f32[1,32], index: 4, kind: input, shape index: {}]   ;;  %s13527_s5 = inlined_call_operand.vmem [shape: f32[286,1], index: 5, kind: input, shape index: {}]   ;;  %s13528_s6 = inlined_call_operand.vmem [shape: f32[2,286,32], index: 6, kind: output, shape index: {}]  }
   0x1 LB: > { %s8465_s22 = sadd.s32 4294967295, %s11596_s21   ;;  %p8469_p0 = scmp.ge.s32.totalorder %s11596_s21, 1  ;;  %s11596_s21 = sphi %s11635_s21, %s16_s21  }
   0x2   : > { %p212_p1 = scmp.lt.s32.totalorder %s11596_s21, 3 }
   0x4   : > { %p213_p2 = pnand %p8469_p0, %p212_p1 }
   0x6   : > { %216 = sbr.rel (%p213_p2) target bundleno = 1685 (0x695), region = 44 }
   0xd   : > { %v8472_v0 = vld [vmem:[%s13523_s1 + $0x4] sm:$0xf]  ;;  %vm472_vm0 = vcmask 1043456   ;;  %p242_p3 = scmp.lt.s32.totalorder %s8465_s22, 1  ;;  %v324_v1 = vld [vmem:[%s13523_s1] sm:$0xf] }
   0xe   : > { %9866 = vmatprep.subr.msk.mxu0 %vm472_vm0, %v8472_v0  ;;  %vm363_vm1 = vcmask 31744   ;;  %v11667_v5 = vld [vmem:[%s13523_s1 + $0x8] sm:$0xf]  ;;  %v11747_v42 = vld [vmem:[%s13523_s1 + $0xc] sm:$0xf]  ;;  %vm4382_vm2 = vcmask 261120  }
   0xf   : > { %9867 = vmatpush3.msk.msra.mxu0 %vm472_vm0, %v8472_v0  ;;  %s13568_s22 = smov (!%p242_p3, %s8465_s22), 1  ;;  %vm4460_vm3 = vcmask 259072   ;;  %vm4423_vm4 = vcmask 257024  }
  0x10   : > { %9922 = vmatprep.subr.msk.mxu0 %vm472_vm0, %v324_v1  ;;  %s11576_s27 = smul.u32 328, %s13568_s22 }
  0x11   : > { %s11577_s18 = smul.u32 288, %s13568_s22 }
  0x12   : > { %s11658_s30 = scalar_lea.vmem %s13522_s0, %s11576_s27 }
  0x13   : > { %v325_v2 = vld [vmem:[%s11658_s30 + $0x1] sm:$0xff]  ;;  %v326_v3 = vld [vmem:[%s11658_s30 + $0x9] sm:$0xff]  ;;  %v327_v4 = vld [vmem:[%s11658_s30 + $0x11] sm:$0xff]  ;;  %s13375_s23 = scalar_lea.vmem %s13528_s6, %s11577_s18 }
  0x14   : > { %9868 = vmatprep.mubr.msk.f32.mxu0 %vm363_vm1, %v325_v2  ;;  %v328_v6 = vld [vmem:[%s11658_s30 + $0x19] sm:$0xff]  ;;  %v329_v7 = vld [vmem:[%s11658_s30 + $0x21] sm:$0xff]  ;;  %v330_v8 = vld [vmem:[%s11658_s30 + $0x29] sm:$0xff] }
  0x15   : > { %9869 = vmatmul.mubr.msk.f32.vlgmr.msra.gmra.mrb[0].mxu0 %vm363_vm1, %v326_v3  ;;  %v331_v9 = vld [vmem:[%s11658_s30 + $0x31] sm:$0xff]  ;;  %v332_v10 = vld [vmem:[%s11658_s30 + $0x39] sm:$0xff]  ;;  %v333_v11 = vld [vmem:[%s11658_s30 + $0x41] sm:$0xff] }
  0x16   : > { %9923 = vmatpush3.msk.msra.mxu0 %vm472_vm0, %v324_v1  ;;  %9871 = vmatprep.mubr.msk.f32.mxu0 %vm363_vm1, %v327_v4  ;;  %v334_v12 = vld [vmem:[%s11658_s30 + $0x49] sm:$0xff]  ;;  %v335_v13 = vld [vmem:[%s11658_s30 + $0x51] sm:$0xff]  ;;  %v336_v14 = vld [vmem:[%s11658_s30 + $0x59] sm:$0xff] }
  0x17   : > { %9978 = vmatprep.subr.msk.mxu0 %vm472_vm0, %v11667_v5  ;;  %v337_v15 = vld [vmem:[%s11658_s30 + $0x61] sm:$0xff]  ;;  %v338_v16 = vld [vmem:[%s11658_s30 + $0x69] sm:$0xff]  ;;  %v339_v17 = vld [vmem:[%s11658_s30 + $0x71] sm:$0xff] }
  0x18   : > { %v340_v18 = vld [vmem:[%s11658_s30 + $0x79] sm:$0xff]  ;;  %v341_v19 = vld [vmem:[%s11658_s30 + $0x81] sm:$0xff]  ;;  %v342_v20 = vld [vmem:[%s11658_s30 + $0x89] sm:$0xff] }
  0x19   : > { %9872 = vmatmul.mubr.msk.f32.gmra.mrb[2].mxu0 %vm363_vm1, %v328_v6  ;;  %v343_v21 = vld [vmem:[%s11658_s30 + $0x91] sm:$0xff]  ;;  %v344_v22 = vld [vmem:[%s11658_s30 + $0x99] sm:$0xff]  ;;  %v345_v23 = vld [vmem:[%s11658_s30 + $0xa1] sm:$0xff] }
  0x1a   : > { %9874 = vmatprep.mubr.msk.f32.mxu0 %vm363_vm1, %v329_v7  ;;  %v346_v24 = vld [vmem:[%s11658_s30 + $0xa9] sm:$0xff]  ;;  %v347_v25 = vld [vmem:[%s11658_s30 + $0xb1] sm:$0xff]  ;;  %v348_v26 = vld [vmem:[%s11658_s30 + $0xb9] sm:$0xff] }
  0x1b   : > { %v349_v27 = vld [vmem:[%s11658_s30 + $0xc1] sm:$0xff]  ;;  %v350_v28 = vld [vmem:[%s11658_s30 + $0xc9] sm:$0xff]  ;;  %v351_v29 = vld [vmem:[%s11658_s30 + $0xd1] sm:$0xff] }
  0x1c   : > { %v352_v30 = vld [vmem:[%s11658_s30 + $0xd9] sm:$0xff]  ;;  %v353_v31 = vld [vmem:[%s11658_s30 + $0xe1] sm:$0xff]  ;;  %v354_v32 = vld [vmem:[%s11658_s30 + $0xe9] sm:$0xff] }
  0x1d   : > { %9875 = vmatmul.mubr.msk.f32.gmra.mrb[4].mxu0 %vm363_vm1, %v330_v8  ;;  %v355_v33 = vld [vmem:[%s11658_s30 + $0xf1] sm:$0xff]  ;;  %v356_v34 = vld [vmem:[%s11658_s30 + $0xf9] sm:$0xff]  ;;  %v357_v35 = vld [vmem:[%s11658_s30 + $0x101] sm:$0xff] }
  0x1e   : > { %9877 = vmatprep.mubr.msk.f32.mxu0 %vm363_vm1, %v331_v9  ;;  %v358_v36 = vld [vmem:[%s11658_s30 + $0x109] sm:$0xff]  ;;  %v359_v37 = vld [vmem:[%s11658_s30 + $0x111] sm:$0xff]  ;;  %v360_v38 = vld [vmem:[%s11658_s30 + $0x119] sm:$0x3f] }
  0x1f   : > { %v288_v39 = vld [vmem:[%s11658_s30] sm:$0xff]  ;;  %v289_v40 = vld [vmem:[%s11658_s30 + $0x8] sm:$0xff]  ;;  %v290_v41 = vld [vmem:[%s11658_s30 + $0x10] sm:$0xff] }
  0x20   : > { %v291_v43 = vld [vmem:[%s11658_s30 + $0x18] sm:$0xff]  ;;  %v292_v44 = vld [vmem:[%s11658_s30 + $0x20] sm:$0xff]  ;;  %v293_v45 = vld [vmem:[%s11658_s30 + $0x28] sm:$0xff] }
  0x21   : > { %9878 = vmatmul.mubr.msk.f32.gmra.mrb[6].mxu0 %vm363_vm1, %v332_v10  ;;  %v294_v46 = vld [vmem:[%s11658_s30 + $0x30] sm:$0xff]  ;;  %v295_v47 = vld [vmem:[%s11658_s30 + $0x38] sm:$0xff]  ;;  %v296_v48 = vld [vmem:[%s11658_s30 + $0x40] sm:$0xff] }
  0x22   : > { %9880 = vmatprep.mubr.msk.f32.mxu0 %vm363_vm1, %v333_v11  ;;  %v297_v49 = vld [vmem:[%s11658_s30 + $0x48] sm:$0xff]  ;;  %v298_v50 = vld [vmem:[%s11658_s30 + $0x50] sm:$0xff]  ;;  %v299_v51 = vld [vmem:[%s11658_s30 + $0x58] sm:$0xff] }
  0x23   : > { %v300_v52 = vld [vmem:[%s11658_s30 + $0x60] sm:$0xff]  ;;  %v301_v53 = vld [vmem:[%s11658_s30 + $0x68] sm:$0xff]  ;;  %v302_v54 = vld [vmem:[%s11658_s30 + $0x70] sm:$0xff] }
  0x24   : > { %v303_v55 = vld [vmem:[%s11658_s30 + $0x78] sm:$0xff]  ;;  %v304_v56 = vld [vmem:[%s11658_s30 + $0x80] sm:$0xff]  ;;  %v305_v57 = vld [vmem:[%s11658_s30 + $0x88] sm:$0xff] }
  0x25   : > { %9881 = vmatmul.mubr.msk.f32.gmra.mrb[8].mxu0 %vm363_vm1, %v334_v12  ;;  %v306_v58 = vld [vmem:[%s11658_s30 + $0x90] sm:$0xff]  ;;  %v307_v59 = vld [vmem:[%s11658_s30 + $0x98] sm:$0xff]  ;;  %v308_v60 = vld [vmem:[%s11658_s30 + $0xa0] sm:$0xff] }
  0x26   : > { %9883 = vmatprep.mubr.msk.f32.mxu0 %vm363_vm1, %v335_v13  ;;  %v309_v61 = vld [vmem:[%s11658_s30 + $0xa8] sm:$0xff]  ;;  %v310_v62 = vld [vmem:[%s11658_s30 + $0xb0] sm:$0xff]  ;;  %v311_v63 = vld [vmem:[%s11658_s30 + $0xb8] sm:$0xff] }
  0x27   : > { %v312_v0 = vld [vmem:[%s11658_s30 + $0xc0] sm:$0xff]  ;;  %v313_v1 = vld [vmem:[%s11658_s30 + $0xc8] sm:$0xff]  ;;  %v314_v2 = vld [vmem:[%s11658_s30 + $0xd0] sm:$0xff] }
  0x28   : > { %v315_v3 = vld [vmem:[%s11658_s30 + $0xd8] sm:$0xff]  ;;  %v316_v4 = vld [vmem:[%s11658_s30 + $0xe0] sm:$0xff]  ;;  %v318_v6 = vld [vmem:[%s11658_s30 + $0xf0] sm:$0xff] }
  0x29   : > { %9884 = vmatmul.mubr.msk.f32.gmra.mrb[10].mxu0 %vm363_vm1, %v336_v14  ;;  %v319_v7 = vld [vmem:[%s11658_s30 + $0xf8] sm:$0xff]  ;;  %v320_v8 = vld [vmem:[%s11658_s30 + $0x100] sm:$0xff]  ;;  %v321_v9 = vld [vmem:[%s11658_s30 + $0x108] sm:$0xff] }
  0x2a   : > { %9886 = vmatprep.mubr.msk.f32.mxu0 %vm363_vm1, %v337_v15  ;;  %v322_v10 = vld [vmem:[%s11658_s30 + $0x110] sm:$0xff]  ;;  %v323_v11 = vld [vmem:[%s11658_s30 + $0x118] sm:$0x3f]  ;;  %v1077_v12 = vld [vmem:[%s11658_s30 + $0x2] sm:$0xff] }
  0x2b   : > { %v1078_v13 = vld [vmem:[%s11658_s30 + $0xa] sm:$0xff]  ;;  %v11825_v14 = vld [vmem:[%s11658_s30 + $0x12] sm:$0xff] }
  0x2c   : > { %v11830_v15 = vld [vmem:[%s13523_s1 + $0x10] sm:$0xf] }
  0x2d   : > { %9887 = vmatmul.mubr.msk.f32.gmra.mrb[12].mxu0 %vm363_vm1, %v338_v16  ;;  %v11838_v16 = vld [vmem:[%s11658_s30 + $0x1a] sm:$0xff] }
  0x2e   : > { %9889 = vmatprep.mubr.msk.f32.mxu0 %vm363_vm1, %v339_v17  ;;  %v11841_v17 = vld [vmem:[%s11658_s30 + $0x22] sm:$0xff] }
  0x31   : > { %9890 = vmatmul.mubr.msk.f32.gmra.mrb[14].mxu0 %vm363_vm1, %v340_v18  ;;  %v11850_v18 = vld [vmem:[%s11658_s30 + $0x2a] sm:$0xff] }
  0x32   : > { %9892 = vmatprep.mubr.msk.f32.mxu0 %vm363_vm1, %v341_v19  ;;  %v11853_v19 = vld [vmem:[%s11658_s30 + $0x32] sm:$0xff] }
  0x35   : > { %9893 = vmatmul.mubr.msk.f32.gmra.mrb[16].mxu0 %vm363_vm1, %v342_v20  ;;  %v11860_v20 = vld [vmem:[%s11658_s30 + $0x3a] sm:$0xff] }
  0x36   : > { %9895 = vmatprep.mubr.msk.f32.mxu0 %vm363_vm1, %v343_v21  ;;  %v11863_v21 = vld [vmem:[%s11658_s30 + $0x42] sm:$0xff] }
  0x39   : > { %9896 = vmatmul.mubr.msk.f32.gmra.mrb[18].mxu0 %vm363_vm1, %v344_v22  ;;  %v11870_v22 = vld [vmem:[%s11658_s30 + $0x4a] sm:$0xff] }
  0x3a   : > { %9898 = vmatprep.mubr.msk.f32.mxu0 %vm363_vm1, %v345_v23  ;;  %v11873_v23 = vld [vmem:[%s11658_s30 + $0x52] sm:$0xff] }
  0x3d   : > { %9899 = vmatmul.mubr.msk.f32.gmra.mrb[20].mxu0 %vm363_vm1, %v346_v24  ;;  %v1088_v24 = vld [vmem:[%s11658_s30 + $0x5a] sm:$0xff] }
  0x3e   : > { %9901 = vmatprep.mubr.msk.f32.mxu0 %vm363_vm1, %v347_v25  ;;  %v1089_v25 = vld [vmem:[%s11658_s30 + $0x62] sm:$0xff] }
  0x41   : > { %9902 = vmatmul.mubr.msk.f32.gmra.mrb[22].mxu0 %vm363_vm1, %v348_v26  ;;  %v1090_v26 = vld [vmem:[%s11658_s30 + $0x6a] sm:$0xff] }
  0x42   : > { %9904 = vmatprep.mubr.msk.f32.mxu0 %vm363_vm1, %v349_v27  ;;  %v1091_v27 = vld [vmem:[%s11658_s30 + $0x72] sm:$0xff] }
  0x45   : > { %9905 = vmatmul.mubr.msk.f32.gmra.mrb[24].mxu0 %vm363_vm1, %v350_v28  ;;  %v1092_v28 = vld [vmem:[%s11658_s30 + $0x7a] sm:$0xff] }
  0x46   : > { %9907 = vmatprep.mubr.msk.f32.mxu0 %vm363_vm1, %v351_v29  ;;  %v1093_v29 = vld [vmem:[%s11658_s30 + $0x82] sm:$0xff] }
  0x49   : > { %9908 = vmatmul.mubr.msk.f32.gmra.mrb[26].mxu0 %vm363_vm1, %v352_v30  ;;  %v1094_v30 = vld [vmem:[%s11658_s30 + $0x8a] sm:$0xff] }
  0x4a   : > { %9910 = vmatprep.mubr.msk.f32.mxu0 %vm363_vm1, %v353_v31  ;;  %v1095_v31 = vld [vmem:[%s11658_s30 + $0x92] sm:$0xff] }
  0x4d   : > { %9911 = vmatmul.mubr.msk.f32.gmra.mrb[28].mxu0 %vm363_vm1, %v354_v32  ;;  %v1096_v32 = vld [vmem:[%s11658_s30 + $0x9a] sm:$0xff] }
  0x4e   : > { %9913 = vmatprep.mubr.msk.f32.mxu0 %vm363_vm1, %v355_v33  ;;  %v1097_v33 = vld [vmem:[%s11658_s30 + $0xa2] sm:$0xff] }
  0x51   : > { %9914 = vmatmul.mubr.msk.f32.gmra.mrb[30].mxu0 %vm363_vm1, %v356_v34  ;;  %v1098_v34 = vld [vmem:[%s11658_s30 + $0xaa] sm:$0xff] }
  0x52   : > { %9916 = vmatprep.mubr.msk.f32.mxu0 %vm363_vm1, %v357_v35  ;;  %v1099_v35 = vld [vmem:[%s11658_s30 + $0xb2] sm:$0xff] }
  0x55   : > { %9917 = vmatmul.mubr.msk.f32.gmra.mrb[32].mxu0 %vm363_vm1, %v358_v36  ;;  %v1100_v36 = vld [vmem:[%s11658_s30 + $0xba] sm:$0xff] }
  0x56   : > { %9919 = vmatprep.mubr.msk.f32.mxu0 %vm363_vm1, %v359_v37  ;;  %v1101_v37 = vld [vmem:[%s11658_s30 + $0xc2] sm:$0xff] }
  0x59   : > { %9920 = vmatmul.mubr.msk.f32.gmra.mrb[34].mxu0 %vm363_vm1, %v360_v38  ;;  %v1102_v38 = vld [vmem:[%s11658_s30 + $0xca] sm:$0xff] }
  0x5a   : > { %9924 = vmatprep.mubr.msk.f32.mxu0 %vm363_vm1, %v288_v39  ;;  %v1103_v39 = vld [vmem:[%s11658_s30 + $0xd2] sm:$0xff] }
  0x5d   : > { %9925 = vmatmul.mubr.msk.f32.vlgmr.msra.gmra.mrb[0].mxu0 %vm363_vm1, %v289_v40  ;;  %v1104_v40 = vld [vmem:[%s11658_s30 + $0xda] sm:$0xff] }
  0x5e   : > { %9979 = vmatpush3.msk.msra.mxu0 %vm472_vm0, %v11667_v5  ;;  %9927 = vmatprep.mubr.msk.f32.mxu0 %vm363_vm1, %v290_v41  ;;  %v317_v5 = vld [vmem:[%s11658_s30 + $0xe8] sm:$0xff] }
  0x5f   : > { %10034 = vmatprep.subr.msk.mxu0 %vm472_vm0, %v11747_v42  ;;  %v1105_v41 = vld [vmem:[%s11658_s30 + $0xe2] sm:$0xff] }
  0x61   : > { %9928 = vmatmul.mubr.msk.f32.gmra.mrb[2].mxu0 %vm363_vm1, %v291_v43  ;;  %v1107_v43 = vld [vmem:[%s11658_s30 + $0xf2] sm:$0xff] }
  0x62   : > { %9930 = vmatprep.mubr.msk.f32.mxu0 %vm363_vm1, %v292_v44  ;;  %v1108_v44 = vld [vmem:[%s11658_s30 + $0xfa] sm:$0xff] }
  0x65   : > { %9931 = vmatmul.mubr.msk.f32.gmra.mrb[4].mxu0 %vm363_vm1, %v293_v45  ;;  %v1109_v45 = vld [vmem:[%s11658_s30 + $0x102] sm:$0xff] }
  0x66   : > { %9933 = vmatprep.mubr.msk.f32.mxu0 %vm363_vm1, %v294_v46  ;;  %v1110_v46 = vld [vmem:[%s11658_s30 + $0x10a] sm:$0xff] }
  0x69   : > { %9934 = vmatmul.mubr.msk.f32.gmra.mrb[6].mxu0 %vm363_vm1, %v295_v47  ;;  %v1111_v47 = vld [vmem:[%s11658_s30 + $0x112] sm:$0xff] }
  0x6a   : > { %9936 = vmatprep.mubr.msk.f32.mxu0 %vm363_vm1, %v296_v48  ;;  %v1112_v48 = vld [vmem:[%s11658_s30 + $0x11a] sm:$0x3f] }
  0x6d   : > { %9937 = vmatmul.mubr.msk.f32.gmra.mrb[8].mxu0 %vm363_vm1, %v297_v49  ;;  %v8661_v49 = vld [vmem:[%s13523_s1 + $0x14] sm:$0xf] }
  0x6e   : > { %9939 = vmatprep.mubr.msk.f32.mxu0 %vm363_vm1, %v298_v50  ;;  %v1540_v50 = vld [vmem:[%s11658_s30 + $0x11a] sm:$0xff] }
  0x71   : > { %9940 = vmatmul.mubr.msk.f32.gmra.mrb[10].mxu0 %vm363_vm1, %v299_v51  ;;  %v1541_v51 = vld [vmem:[%s11658_s30 + $0x122] sm:$0xff] }
  0x72   : > { %9942 = vmatprep.mubr.msk.f32.mxu0 %vm363_vm1, %v300_v52  ;;  %v1542_v52 = vld [vmem:[%s11658_s30 + $0x12a] sm:$0x3f] }
  0x75   : > { %9943 = vmatmul.mubr.msk.f32.gmra.mrb[12].mxu0 %vm363_vm1, %v301_v53  ;;  %v1937_v53 = vld [vmem:[%s11658_s30 + $0x13] sm:$0xff] }
  0x76   : > { %9945 = vmatprep.mubr.msk.f32.mxu0 %vm363_vm1, %v302_v54  ;;  %v1938_v54 = vld [vmem:[%s11658_s30 + $0x1b] sm:$0xff] }
  0x79   : > { %9946 = vmatmul.mubr.msk.f32.gmra.mrb[14].mxu0 %vm363_vm1, %v303_v55  ;;  %v1939_v55 = vld [vmem:[%s11658_s30 + $0x23] sm:$0xff] }
  0x7a   : > { %9948 = vmatprep.mubr.msk.f32.mxu0 %vm363_vm1, %v304_v56  ;;  %v11990_v56 = vld [vmem:[%s13523_s1 + $0x18] sm:$0xf] }
  0x7d   : > { %9949 = vmatmul.mubr.msk.f32.gmra.mrb[16].mxu0 %vm363_vm1, %v305_v57  ;;  %v1940_v57 = vld [vmem:[%s11658_s30 + $0x2b] sm:$0xff] }
  0x7e   : > { %9951 = vmatprep.mubr.msk.f32.mxu0 %vm363_vm1, %v306_v58  ;;  %v1941_v58 = vld [vmem:[%s11658_s30 + $0x33] sm:$0xff] }
  0x81   : > { %9952 = vmatmul.mubr.msk.f32.gmra.mrb[18].mxu0 %vm363_vm1, %v307_v59  ;;  %v1942_v59 = vld [vmem:[%s11658_s30 + $0x3b] sm:$0xff] }
  0x82   : > { %9954 = vmatprep.mubr.msk.f32.mxu0 %vm363_vm1, %v308_v60  ;;  %v1943_v60 = vld [vmem:[%s11658_s30 + $0x43] sm:$0xff] }
  0x85   : > { %9955 = vmatmul.mubr.msk.f32.gmra.mrb[20].mxu0 %vm363_vm1, %v309_v61  ;;  %v1944_v61 = vld [vmem:[%s11658_s30 + $0x4b] sm:$0xff] }
  0x86   : > { %9957 = vmatprep.mubr.msk.f32.mxu0 %vm363_vm1, %v310_v62  ;;  %v1945_v62 = vld [vmem:[%s11658_s30 + $0x53] sm:$0xff] }
  0x89   : > { %9958 = vmatmul.mubr.msk.f32.gmra.mrb[22].mxu0 %vm363_vm1, %v311_v63  ;;  %v1946_v63 = vld [vmem:[%s11658_s30 + $0x5b] sm:$0xff] }
  0x8a   : > { %9960 = vmatprep.mubr.msk.f32.mxu0 %vm363_vm1, %v312_v0  ;;  %v1947_v0 = vld [vmem:[%s11658_s30 + $0x63] sm:$0xff] }
  0x8d   : > { %9961 = vmatmul.mubr.msk.f32.gmra.mrb[24].mxu0 %vm363_vm1, %v313_v1  ;;  %v1948_v1 = vld [vmem:[%s11658_s30 + $0x6b] sm:$0xff] }
  0x8e   : > { %9963 = vmatprep.mubr.msk.f32.mxu0 %vm363_vm1, %v314_v2  ;;  %v1949_v2 = vld [vmem:[%s11658_s30 + $0x73] sm:$0xff] }
  0x91   : > { %9964 = vmatmul.mubr.msk.f32.gmra.mrb[26].mxu0 %vm363_vm1, %v315_v3  ;;  %v1950_v3 = vld [vmem:[%s11658_s30 + $0x7b] sm:$0xff] }
  0x92   : > { %9966 = vmatprep.mubr.msk.f32.mxu0 %vm363_vm1, %v316_v4  ;;  %v1951_v4 = vld [vmem:[%s11658_s30 + $0x83] sm:$0xff] }
  0x95   : > { %9967 = vmatmul.mubr.msk.f32.gmra.mrb[28].mxu0 %vm363_vm1, %v317_v5  ;;  %v1952_v5 = vld [vmem:[%s11658_s30 + $0x8b] sm:$0xff] }
  0x96   : > { %9969 = vmatprep.mubr.msk.f32.mxu0 %vm363_vm1, %v318_v6  ;;  %v1953_v6 = vld [vmem:[%s11658_s30 + $0x93] sm:$0xff] }
  0x99   : > { %9970 = vmatmul.mubr.msk.f32.gmra.mrb[30].mxu0 %vm363_vm1, %v319_v7  ;;  %v1954_v7 = vld [vmem:[%s11658_s30 + $0x9b] sm:$0xff] }
  0x9a   : > { %9972 = vmatprep.mubr.msk.f32.mxu0 %vm363_vm1, %v320_v8  ;;  %v1955_v8 = vld [vmem:[%s11658_s30 + $0xa3] sm:$0xff] }
  0x9d   : > { %9973 = vmatmul.mubr.msk.f32.gmra.mrb[32].mxu0 %vm363_vm1, %v321_v9  ;;  %v1956_v9 = vld [vmem:[%s11658_s30 + $0xab] sm:$0xff] }
  0x9e   : > { %9975 = vmatprep.mubr.msk.f32.mxu0 %vm363_vm1, %v322_v10  ;;  %v1957_v10 = vld [vmem:[%s11658_s30 + $0xb3] sm:$0xff] }
  0xa1   : > { %9976 = vmatmul.mubr.msk.f32.gmra.mrb[34].mxu0 %vm363_vm1, %v323_v11  ;;  %v1958_v11 = vld [vmem:[%s11658_s30 + $0xbb] sm:$0xff] }
  0xa2   : > { %9980 = vmatprep.mubr.msk.f32.mxu0 %vm363_vm1, %v1077_v12  ;;  %v1959_v12 = vld [vmem:[%s11658_s30 + $0xc3] sm:$0xff] }
  0xa5   : > { %9981 = vmatmul.mubr.msk.f32.vlgmr.msra.gmra.mrb[0].mxu0 %vm363_vm1, %v1078_v13  ;;  %v1960_v13 = vld [vmem:[%s11658_s30 + $0xcb] sm:$0xff] }
  0xa6   : > { %10035 = vmatpush3.msk.msra.mxu0 %vm472_vm0, %v11747_v42  ;;  %9983 = vmatprep.mubr.msk.f32.mxu0 %vm363_vm1, %v11825_v14  ;;  %v1106_v42 = vld [vmem:[%s11658_s30 + $0xea] sm:$0xff] }
  0xa7   : > { %10090 = vmatprep.subr.msk.mxu0 %vm472_vm0, %v11830_v15 }
  0xa9   : > { %9984 = vmatmul.mubr.msk.f32.gmra.mrb[2].mxu0 %vm363_vm1, %v11838_v16 }
  0xaa   : > { %9986 = vmatprep.mubr.msk.f32.mxu0 %vm363_vm1, %v11841_v17 }
  0xad   : > { %9987 = vmatmul.mubr.msk.f32.gmra.mrb[4].mxu0 %vm363_vm1, %v11850_v18 }
  0xae   : > { %9989 = vmatprep.mubr.msk.f32.mxu0 %vm363_vm1, %v11853_v19 }
  0xb1   : > { %9990 = vmatmul.mubr.msk.f32.gmra.mrb[6].mxu0 %vm363_vm1, %v11860_v20 }
  0xb2   : > { %9992 = vmatprep.mubr.msk.f32.mxu0 %vm363_vm1, %v11863_v21 }
  0xb5   : > { %9993 = vmatmul.mubr.msk.f32.gmra.mrb[8].mxu0 %vm363_vm1, %v11870_v22 }
  0xb6   : > { %9995 = vmatprep.mubr.msk.f32.mxu0 %vm363_vm1, %v11873_v23 }
  0xb9   : > { %9996 = vmatmul.mubr.msk.f32.gmra.mrb[10].mxu0 %vm363_vm1, %v1088_v24 }
  0xba   : > { %9998 = vmatprep.mubr.msk.f32.mxu0 %vm363_vm1, %v1089_v25 }
  0xbd   : > { %9999 = vmatmul.mubr.msk.f32.gmra.mrb[12].mxu0 %vm363_vm1, %v1090_v26 }
  0xbe   : > { %10001 = vmatprep.mubr.msk.f32.mxu0 %vm363_vm1, %v1091_v27 }
  0xc1   : > { %10002 = vmatmul.mubr.msk.f32.gmra.mrb[14].mxu0 %vm363_vm1, %v1092_v28 }
  0xc2   : > { %10004 = vmatprep.mubr.msk.f32.mxu0 %vm363_vm1, %v1093_v29 }
  0xc5   : > { %10005 = vmatmul.mubr.msk.f32.gmra.mrb[16].mxu0 %vm363_vm1, %v1094_v30 }
  0xc6   : > { %10007 = vmatprep.mubr.msk.f32.mxu0 %vm363_vm1, %v1095_v31 }
  0xc9   : > { %10008 = vmatmul.mubr.msk.f32.gmra.mrb[18].mxu0 %vm363_vm1, %v1096_v32 }
  0xca   : > { %10010 = vmatprep.mubr.msk.f32.mxu0 %vm363_vm1, %v1097_v33 }
  0xcd   : > { %10011 = vmatmul.mubr.msk.f32.gmra.mrb[20].mxu0 %vm363_vm1, %v1098_v34 }
  0xce   : > { %10013 = vmatprep.mubr.msk.f32.mxu0 %vm363_vm1, %v1099_v35 }
  0xd1   : > { %10014 = vmatmul.mubr.msk.f32.gmra.mrb[22].mxu0 %vm363_vm1, %v1100_v36 }
  0xd2   : > { %10016 = vmatprep.mubr.msk.f32.mxu0 %vm363_vm1, %v1101_v37 }
  0xd5   : > { %10017 = vmatmul.mubr.msk.f32.gmra.mrb[24].mxu0 %vm363_vm1, %v1102_v38 }
  0xd6   : > { %10019 = vmatprep.mubr.msk.f32.mxu0 %vm363_vm1, %v1103_v39 }
  0xd9   : > { %10020 = vmatmul.mubr.msk.f32.gmra.mrb[26].mxu0 %vm363_vm1, %v1104_v40 }
  0xda   : > { %10022 = vmatprep.mubr.msk.f32.mxu0 %vm363_vm1, %v1105_v41 }
  0xdd   : > { %10023 = vmatmul.mubr.msk.f32.gmra.mrb[28].mxu0 %vm363_vm1, %v1106_v42 }
  0xde   : > { %10025 = vmatprep.mubr.msk.f32.mxu0 %vm363_vm1, %v1107_v43 }
  0xe1   : > { %10026 = vmatmul.mubr.msk.f32.gmra.mrb[30].mxu0 %vm363_vm1, %v1108_v44 }
  0xe2   : > { %10028 = vmatprep.mubr.msk.f32.mxu0 %vm363_vm1, %v1109_v45 }
  0xe5   : > { %10029 = vmatmul.mubr.msk.f32.gmra.mrb[32].mxu0 %vm363_vm1, %v1110_v46 }
  0xe6   : > { %10031 = vmatprep.mubr.msk.f32.mxu0 %vm363_vm1, %v1111_v47 }
  0xe9   : > { %10032 = vmatmul.mubr.msk.f32.gmra.mrb[34].mxu0 %vm363_vm1, %v1112_v48  ;;  %v2388_v48 = vld [vmem:[%s11658_s30 + $0xbc] sm:$0xff] }
  0xea   : > { %10036 = vmatprep.mubr.msk.f32.mxu0 %vm363_vm1, %v11825_v14  ;;  %v1961_v14 = vld [vmem:[%s11658_s30 + $0xd3] sm:$0xff] }
  0xed   : > { %10037 = vmatmul.mubr.msk.f32.vlgmr.msra.gmra.mrb[0].mxu0 %vm363_vm1, %v11838_v16  ;;  %v1963_v16 = vld [vmem:[%s11658_s30 + $0xe3] sm:$0xff] }
  0xee   : > { %10091 = vmatpush3.msk.msra.mxu0 %vm472_vm0, %v11830_v15  ;;  %10039 = vmatprep.mubr.msk.f32.mxu0 %vm363_vm1, %v11841_v17  ;;  %v1962_v15 = vld [vmem:[%s11658_s30 + $0xdb] sm:$0xff]  ;;  %v1964_v17 = vld [vmem:[%s11658_s30 + $0xeb] sm:$0xff] }
  0xef   : > { %10146 = vmatprep.subr.msk.mxu0 %vm472_vm0, %v8661_v49 }
  0xf1   : > { %10040 = vmatmul.mubr.msk.f32.gmra.mrb[2].mxu0 %vm363_vm1, %v11850_v18  ;;  %v1965_v18 = vld [vmem:[%s11658_s30 + $0xf3] sm:$0xff] }
  0xf2   : > { %10042 = vmatprep.mubr.msk.f32.mxu0 %vm363_vm1, %v11853_v19  ;;  %v1966_v19 = vld [vmem:[%s11658_s30 + $0xfb] sm:$0xff] }
  0xf5   : > { %10043 = vmatmul.mubr.msk.f32.gmra.mrb[4].mxu0 %vm363_vm1, %v11860_v20  ;;  %v1967_v20 = vld [vmem:[%s11658_s30 + $0x103] sm:$0xff] }
  0xf6   : > { %10045 = vmatprep.mubr.msk.f32.mxu0 %vm363_vm1, %v11863_v21  ;;  %v1968_v21 = vld [vmem:[%s11658_s30 + $0x10b] sm:$0xff] }
  0xf9   : > { %10046 = vmatmul.mubr.msk.f32.gmra.mrb[6].mxu0 %vm363_vm1, %v11870_v22  ;;  %v1969_v22 = vld [vmem:[%s11658_s30 + $0x113] sm:$0xff] }
  0xfa   : > { %10048 = vmatprep.mubr.msk.f32.mxu0 %vm363_vm1, %v11873_v23  ;;  %v1970_v23 = vld [vmem:[%s11658_s30 + $0x11b] sm:$0xff] }
  0xfd   : > { %10049 = vmatmul.mubr.msk.f32.gmra.mrb[8].mxu0 %vm363_vm1, %v1088_v24  ;;  %v1971_v24 = vld [vmem:[%s11658_s30 + $0x123] sm:$0xff] }
  0xfe   : > { %10051 = vmatprep.mubr.msk.f32.mxu0 %vm363_vm1, %v1089_v25  ;;  %v1972_v25 = vld [vmem:[%s11658_s30 + $0x12b] sm:$0x3f] }
 0x101   : > { %10052 = vmatmul.mubr.msk.f32.gmra.mrb[10].mxu0 %vm363_vm1, %v1090_v26  ;;  %v2367_v26 = vld [vmem:[%s11658_s30 + $0x14] sm:$0xff] }
 0x102   : > { %10054 = vmatprep.mubr.msk.f32.mxu0 %vm363_vm1, %v1091_v27  ;;  %v2368_v27 = vld [vmem:[%s11658_s30 + $0x1c] sm:$0xff] }
 0x105   : > { %10055 = vmatmul.mubr.msk.f32.gmra.mrb[12].mxu0 %vm363_vm1, %v1092_v28  ;;  %v12067_v28 = vld [vmem:[%s11658_s30 + $0x24] sm:$0xff] }
 0x106   : > { %10057 = vmatprep.mubr.msk.f32.mxu0 %vm363_vm1, %v1093_v29  ;;  %v12072_v29 = vld [vmem:[%s13523_s1 + $0x1c] sm:$0xf] }
 0x109   : > { %10058 = vmatmul.mubr.msk.f32.gmra.mrb[14].mxu0 %vm363_vm1, %v1094_v30  ;;  %v12080_v30 = vld [vmem:[%s11658_s30 + $0x2c] sm:$0xff] }
 0x10a   : > { %10060 = vmatprep.mubr.msk.f32.mxu0 %vm363_vm1, %v1095_v31  ;;  %v12083_v31 = vld [vmem:[%s11658_s30 + $0x34] sm:$0xff] }
 0x10d   : > { %10061 = vmatmul.mubr.msk.f32.gmra.mrb[16].mxu0 %vm363_vm1, %v1096_v32  ;;  %v12092_v32 = vld [vmem:[%s11658_s30 + $0x3c] sm:$0xff] }
 0x10e   : > { %10063 = vmatprep.mubr.msk.f32.mxu0 %vm363_vm1, %v1097_v33  ;;  %v12095_v33 = vld [vmem:[%s11658_s30 + $0x44] sm:$0xff] }
 0x111   : > { %10064 = vmatmul.mubr.msk.f32.gmra.mrb[18].mxu0 %vm363_vm1, %v1098_v34  ;;  %v12102_v34 = vld [vmem:[%s11658_s30 + $0x4c] sm:$0xff] }
 0x112   : > { %10066 = vmatprep.mubr.msk.f32.mxu0 %vm363_vm1, %v1099_v35  ;;  %v12105_v35 = vld [vmem:[%s11658_s30 + $0x54] sm:$0xff] }
 0x115   : > { %10067 = vmatmul.mubr.msk.f32.gmra.mrb[20].mxu0 %vm363_vm1, %v1100_v36  ;;  %v12112_v36 = vld [vmem:[%s11658_s30 + $0x5c] sm:$0xff] }
 0x116   : > { %10069 = vmatprep.mubr.msk.f32.mxu0 %vm363_vm1, %v1101_v37  ;;  %v12115_v37 = vld [vmem:[%s11658_s30 + $0x64] sm:$0xff] }
 0x119   : > { %10070 = vmatmul.mubr.msk.f32.gmra.mrb[22].mxu0 %vm363_vm1, %v1102_v38  ;;  %v2378_v38 = vld [vmem:[%s11658_s30 + $0x6c] sm:$0xff] }
 0x11a   : > { %10072 = vmatprep.mubr.msk.f32.mxu0 %vm363_vm1, %v1103_v39  ;;  %v2379_v39 = vld [vmem:[%s11658_s30 + $0x74] sm:$0xff] }
 0x11d   : > { %10073 = vmatmul.mubr.msk.f32.gmra.mrb[24].mxu0 %vm363_vm1, %v1104_v40  ;;  %v2380_v40 = vld [vmem:[%s11658_s30 + $0x7c] sm:$0xff] }
 0x11e   : > { %10075 = vmatprep.mubr.msk.f32.mxu0 %vm363_vm1, %v1105_v41  ;;  %v2381_v41 = vld [vmem:[%s11658_s30 + $0x84] sm:$0xff] }
 0x121   : > { %10076 = vmatmul.mubr.msk.f32.gmra.mrb[26].mxu0 %vm363_vm1, %v1106_v42  ;;  %v2382_v42 = vld [vmem:[%s11658_s30 + $0x8c] sm:$0xff] }
 0x122   : > { %10078 = vmatprep.mubr.msk.f32.mxu0 %vm363_vm1, %v1107_v43  ;;  %v2383_v43 = vld [vmem:[%s11658_s30 + $0x94] sm:$0xff] }
 0x125   : > { %10079 = vmatmul.mubr.msk.f32.gmra.mrb[28].mxu0 %vm363_vm1, %v1108_v44  ;;  %v2384_v44 = vld [vmem:[%s11658_s30 + $0x9c] sm:$0xff] }
 0x126   : > { %10081 = vmatprep.mubr.msk.f32.mxu0 %vm363_vm1, %v1109_v45  ;;  %v2385_v45 = vld [vmem:[%s11658_s30 + $0xa4] sm:$0xff] }
 0x129   : > { %10082 = vmatmul.mubr.msk.f32.gmra.mrb[30].mxu0 %vm363_vm1, %v1110_v46  ;;  %v2386_v46 = vld [vmem:[%s11658_s30 + $0xac] sm:$0xff] }
 0x12a   : > { %10084 = vmatprep.mubr.msk.f32.mxu0 %vm363_vm1, %v1111_v47  ;;  %v2387_v47 = vld [vmem:[%s11658_s30 + $0xb4] sm:$0xff] }
 0x12d   : > { %10085 = vmatmul.mubr.msk.f32.gmra.mrb[32].mxu0 %vm363_vm1, %v1540_v50  ;;  %v2390_v50 = vld [vmem:[%s11658_s30 + $0xcc] sm:$0xff] }
 0x12e   : > { %10087 = vmatprep.mubr.msk.f32.mxu0 %vm363_vm1, %v1541_v51  ;;  %v2391_v51 = vld [vmem:[%s11658_s30 + $0xd4] sm:$0xff] }
 0x131   : > { %10088 = vmatmul.mubr.msk.f32.gmra.mrb[34].mxu0 %vm363_vm1, %v1542_v52  ;;  %v2392_v52 = vld [vmem:[%s11658_s30 + $0xdc] sm:$0xff] }
 0x132   : > { %10092 = vmatprep.mubr.msk.f32.mxu0 %vm363_vm1, %v1937_v53  ;;  %v12151_v53 = vld [vmem:[%s11658_s30 + $0xe4] sm:$0xff] }
 0x135   : > { %10093 = vmatmul.mubr.msk.f32.vlgmr.msra.gmra.mrb[0].mxu0 %vm363_vm1, %v1938_v54  ;;  %v12157_v54 = vld [vmem:[%s11658_s30 + $0xec] sm:$0xff] }
 0x136   : > { %10147 = vmatpush3.msk.msra.mxu0 %vm472_vm0, %v8661_v49  ;;  %10095 = vmatprep.mubr.msk.f32.mxu0 %vm363_vm1, %v1939_v55  ;;  %v2389_v49 = vld [vmem:[%s11658_s30 + $0xc4] sm:$0xff]  ;;  %v12160_v55 = vld [vmem:[%s11658_s30 + $0xf4] sm:$0xff] }
 0x137   : > { %10202 = vmatprep.subr.msk.mxu0 %vm472_vm0, %v11990_v56 }
 0x139   : > { %10096 = vmatmul.mubr.msk.f32.gmra.mrb[2].mxu0 %vm363_vm1, %v1940_v57  ;;  %v12170_v57 = vld [vmem:[%s11658_s30 + $0x104] sm:$0xff] }
 0x13a   : > { %10098 = vmatprep.mubr.msk.f32.mxu0 %vm363_vm1, %v1941_v58  ;;  %v12177_v58 = vld [vmem:[%s11658_s30 + $0x10c] sm:$0xff] }
 0x13d   : > { %10099 = vmatmul.mubr.msk.f32.gmra.mrb[4].mxu0 %vm363_vm1, %v1942_v59  ;;  %v12180_v59 = vld [vmem:[%s11658_s30 + $0x114] sm:$0xff] }
 0x13e   : > { %10101 = vmatprep.mubr.msk.f32.mxu0 %vm363_vm1, %v1943_v60  ;;  %v12187_v60 = vld [vmem:[%s11658_s30 + $0x11c] sm:$0xff] }
 0x141   : > { %10102 = vmatmul.mubr.msk.f32.gmra.mrb[6].mxu0 %vm363_vm1, %v1944_v61  ;;  %v12190_v61 = vld [vmem:[%s11658_s30 + $0x124] sm:$0xff] }
 0x142   : > { %10104 = vmatprep.mubr.msk.f32.mxu0 %vm363_vm1, %v1945_v62  ;;  %v2402_v62 = vld [vmem:[%s11658_s30 + $0x12c] sm:$0x3f] }
 0x145   : > { %10105 = vmatmul.mubr.msk.f32.gmra.mrb[8].mxu0 %vm363_vm1, %v1946_v63  ;;  %v12203_v63 = vld [vmem:[%s13523_s1 + $0x20] sm:$0xf] }
 0x146   : > { %10107 = vmatprep.mubr.msk.f32.mxu0 %vm363_vm1, %v1947_v0  ;;  %v252_v0 = vld [vmem:[%s13527_s5] sm:$0xff] }
 0x149   : > { %10108 = vmatmul.mubr.msk.f32.gmra.mrb[10].mxu0 %vm363_vm1, %v1948_v1  ;;  %v11598_v1 = vmov 0  }
 0x14a   : > { %10110 = vmatprep.mubr.msk.f32.mxu0 %vm363_vm1, %v1949_v2  ;;  %11588 = vset.pattern.permute.xlu0 %v11598_v1  ;;  %v254_v2 = vld [vmem:[%s13527_s5 + $0x10] sm:$0xff] }
 0x14b   : > { %4168 = vperm.xlu0 %11588, %v252_v0   ;;  %11589 = vset.pattern.permute.xlu1 %v11598_v1  ;;  %v3251_v0 = vld [vmem:[%s11658_s30 + $0xe5] sm:$0xff]  ;;  %v3252_v1 = vld [vmem:[%s11658_s30 + $0xed] sm:$0xff] }
 0x14c   : > { %4178 = vperm.xlu1 %11589, %v254_v2   ;;  %v3253_v2 = vld [vmem:[%s11658_s30 + $0xf5] sm:$0xff] }
 0x14d   : > { %10111 = vmatmul.mubr.msk.f32.gmra.mrb[12].mxu0 %vm363_vm1, %v1950_v3  ;;  %v253_v3 = vld [vmem:[%s13527_s5 + $0x8] sm:$0xff] }
 0x14e   : > { %10113 = vmatprep.mubr.msk.f32.mxu0 %vm363_vm1, %v1951_v4  ;;  %v255_v4 = vld [vmem:[%s13527_s5 + $0x18] sm:$0xff] }
 0x14f   : > { %4173 = vperm.xlu0 %11588, %v253_v3   ;;  %v3254_v3 = vld [vmem:[%s11658_s30 + $0xfd] sm:$0xff] }
 0x150   : > { %4183 = vperm.xlu1 %11589, %v255_v4   ;;  %v3255_v4 = vld [vmem:[%s11658_s30 + $0x105] sm:$0xff] }
 0x151   : > { %10114 = vmatmul.mubr.msk.f32.gmra.mrb[14].mxu0 %vm363_vm1, %v1952_v5  ;;  %v256_v5 = vld [vmem:[%s13527_s5 + $0x20] sm:$0xff] }
 0x152   : > { %10116 = vmatprep.mubr.msk.f32.mxu0 %vm363_vm1, %v1953_v6  ;;  %v257_v6 = vld [vmem:[%s13527_s5 + $0x28] sm:$0xff] }
 0x153   : > { %4188 = vperm.xlu0 %11588, %v256_v5   ;;  %v3256_v5 = vld [vmem:[%s11658_s30 + $0x10d] sm:$0xff] }
 0x154   : > { %4193 = vperm.xlu1 %11589, %v257_v6   ;;  %v3257_v6 = vld [vmem:[%s11658_s30 + $0x115] sm:$0xff] }
 0x155   : > { %10117 = vmatmul.mubr.msk.f32.gmra.mrb[16].mxu0 %vm363_vm1, %v1954_v7  ;;  %v258_v7 = vld [vmem:[%s13527_s5 + $0x30] sm:$0xff] }
 0x156   : > { %10119 = vmatprep.mubr.msk.f32.mxu0 %vm363_vm1, %v1955_v8  ;;  %v259_v8 = vld [vmem:[%s13527_s5 + $0x38] sm:$0xff] }
 0x157   : > { %4198 = vperm.xlu0 %11588, %v258_v7   ;;  %v3258_v7 = vld [vmem:[%s11658_s30 + $0x11d] sm:$0xff] }
 0x158   : > { %4203 = vperm.xlu1 %11589, %v259_v8   ;;  %v3259_v8 = vld [vmem:[%s11658_s30 + $0x125] sm:$0xff] }
 0x159   : > { %10120 = vmatmul.mubr.msk.f32.gmra.mrb[18].mxu0 %vm363_vm1, %v1956_v9  ;;  %v260_v9 = vld [vmem:[%s13527_s5 + $0x40] sm:$0xff] }
 0x15a   : > { %10122 = vmatprep.mubr.msk.f32.mxu0 %vm363_vm1, %v1957_v10  ;;  %v261_v10 = vld [vmem:[%s13527_s5 + $0x48] sm:$0xff] }
 0x15b   : > { %4208 = vperm.xlu0 %11588, %v260_v9   ;;  %v3260_v9 = vld [vmem:[%s11658_s30 + $0x12d] sm:$0xff] }
 0x15c   : > { %4213 = vperm.xlu1 %11589, %v261_v10   ;;  %v3261_v10 = vld [vmem:[%s11658_s30 + $0x135] sm:$0xff] }
 0x15d   : > { %10123 = vmatmul.mubr.msk.f32.gmra.mrb[20].mxu0 %vm363_vm1, %v1958_v11  ;;  %v262_v11 = vld [vmem:[%s13527_s5 + $0x50] sm:$0xff] }
 0x15e   : > { %10125 = vmatprep.mubr.msk.f32.mxu0 %vm363_vm1, %v1959_v12  ;;  %v263_v12 = vld [vmem:[%s13527_s5 + $0x58] sm:$0xff] }
 0x15f   : > { %4218 = vperm.xlu0 %11588, %v262_v11   ;;  %v3262_v11 = vld [vmem:[%s11658_s30 + $0x13d] sm:$0x3f] }
 0x160   : > { %4223 = vperm.xlu1 %11589, %v263_v12   ;;  %v3657_v12 = vld [vmem:[%s11658_s30 + $0x26] sm:$0xff] }
 0x161   : > { %10126 = vmatmul.mubr.msk.f32.gmra.mrb[22].mxu0 %vm363_vm1, %v1960_v13  ;;  %v264_v13 = vld [vmem:[%s13527_s5 + $0x60] sm:$0xff] }
 0x162   : > { %10128 = vmatprep.mubr.msk.f32.mxu0 %vm363_vm1, %v1961_v14  ;;  %v265_v14 = vld [vmem:[%s13527_s5 + $0x68] sm:$0xff] }
 0x163   : > { %4228 = vperm.xlu0 %11588, %v264_v13   ;;  %v3658_v13 = vld [vmem:[%s11658_s30 + $0x2e] sm:$0xff] }
 0x164   : > { %4233 = vperm.xlu1 %11589, %v265_v14   ;;  %v3659_v14 = vld [vmem:[%s11658_s30 + $0x36] sm:$0xff] }
 0x165   : > { %10129 = vmatmul.mubr.msk.f32.gmra.mrb[24].mxu0 %vm363_vm1, %v1962_v15  ;;  %v266_v15 = vld [vmem:[%s13527_s5 + $0x70] sm:$0xff] }
 0x166   : > { %10131 = vmatprep.mubr.msk.f32.mxu0 %vm363_vm1, %v1963_v16  ;;  %v2830_v16 = vld [vmem:[%s11658_s30 + $0x12c] sm:$0xff] }
 0x167   : > { %4238 = vperm.xlu0 %11588, %v266_v15   ;;  %v3660_v15 = vld [vmem:[%s11658_s30 + $0x3e] sm:$0xff] }
 0x169   : > { %10132 = vmatmul.mubr.msk.f32.gmra.mrb[26].mxu0 %vm363_vm1, %v1964_v17  ;;  %v2831_v17 = vld [vmem:[%s11658_s30 + $0x134] sm:$0xff] }
 0x16a   : > { %10134 = vmatprep.mubr.msk.f32.mxu0 %vm363_vm1, %v1965_v18  ;;  %v267_v18 = vld [vmem:[%s13527_s5 + $0x78] sm:$0xff] }
 0x16b   : > { %4243 = vperm.xlu1 %11589, %v267_v18   ;;  %v3663_v18 = vld [vmem:[%s11658_s30 + $0x56] sm:$0xff] }
 0x16d   : > { %10135 = vmatmul.mubr.msk.f32.gmra.mrb[28].mxu0 %vm363_vm1, %v1966_v19  ;;  %v268_v19 = vld [vmem:[%s13527_s5 + $0x80] sm:$0xff] }
 0x16e   : > { %10137 = vmatprep.mubr.msk.f32.mxu0 %vm363_vm1, %v1967_v20  ;;  %v2832_v20 = vld [vmem:[%s11658_s30 + $0x13c] sm:$0x3f]  ;;  %4248 = vperm.xlu0 %11588, %v268_v19  }
 0x16f   : > { %v3664_v19 = vld [vmem:[%s11658_s30 + $0x5e] sm:$0xff] }
 0x171   : > { %10138 = vmatmul.mubr.msk.f32.gmra.mrb[30].mxu0 %vm363_vm1, %v1968_v21  ;;  %v3227_v21 = vld [vmem:[%s11658_s30 + $0x25] sm:$0xff] }
 0x172   : > { %10140 = vmatprep.mubr.msk.f32.mxu0 %vm363_vm1, %v1969_v22  ;;  %v269_v22 = vld [vmem:[%s13527_s5 + $0x88] sm:$0xff] }
 0x173   : > { %4253 = vperm.xlu1 %11589, %v269_v22   ;;  %v3667_v22 = vld [vmem:[%s11658_s30 + $0x76] sm:$0xff] }
 0x175   : > { %10141 = vmatmul.mubr.msk.f32.gmra.mrb[32].mxu0 %vm363_vm1, %v1970_v23  ;;  %v270_v23 = vld [vmem:[%s13527_s5 + $0x90] sm:$0xff] }
 0x176   : > { %10143 = vmatprep.mubr.msk.f32.mxu0 %vm363_vm1, %v1971_v24  ;;  %v3228_v24 = vld [vmem:[%s11658_s30 + $0x2d] sm:$0xff]  ;;  %4258 = vperm.xlu0 %11588, %v270_v23   ;;  %v3668_v23 = vld [vmem:[%s11658_s30 + $0x7e] sm:$0xff] }
 0x179   : > { %10144 = vmatmul.mubr.msk.f32.gmra.mrb[34].mxu0 %vm363_vm1, %v1972_v25  ;;  %v3229_v25 = vld [vmem:[%s11658_s30 + $0x35] sm:$0xff] }
 0x17a   : > { %10148 = vmatprep.mubr.msk.f32.mxu0 %vm363_vm1, %v2367_v26  ;;  %v271_v26 = vld [vmem:[%s13527_s5 + $0x98] sm:$0xff] }
 0x17b   : > { %4263 = vperm.xlu1 %11589, %v271_v26   ;;  %v3671_v26 = vld [vmem:[%s11658_s30 + $0x96] sm:$0xff] }
 0x17d   : > { %10149 = vmatmul.mubr.msk.f32.vlgmr.msra.gmra.mrb[0].mxu0 %vm363_vm1, %v2368_v27  ;;  %v272_v27 = vld [vmem:[%s13527_s5 + $0xa0] sm:$0xff] }
 0x17e   : > { %10203 = vmatpush3.msk.msra.mxu0 %vm472_vm0, %v11990_v56  ;;  %10151 = vmatprep.mubr.msk.f32.mxu0 %vm363_vm1, %v12067_v28  ;;  %v12167_v56 = vld [vmem:[%s11658_s30 + $0xfc] sm:$0xff] }
 0x17f   : > { %10258 = vmatprep.subr.msk.mxu0 %vm472_vm0, %v12072_v29  ;;  %4268 = vperm.xlu0 %11588, %v272_v27   ;;  %v3672_v27 = vld [vmem:[%s11658_s30 + $0x9e] sm:$0xff] }
 0x181   : > { %10152 = vmatmul.mubr.msk.f32.gmra.mrb[2].mxu0 %vm363_vm1, %v12080_v30 }
 0x182   : > { %10154 = vmatprep.mubr.msk.f32.mxu0 %vm363_vm1, %v12083_v31 }
 0x185   : > { %10155 = vmatmul.mubr.msk.f32.gmra.mrb[4].mxu0 %vm363_vm1, %v12092_v32 }
 0x186   : > { %10157 = vmatprep.mubr.msk.f32.mxu0 %vm363_vm1, %v12095_v33 }
 0x189   : > { %10158 = vmatmul.mubr.msk.f32.gmra.mrb[6].mxu0 %vm363_vm1, %v12102_v34 }
 0x18a   : > { %10160 = vmatprep.mubr.msk.f32.mxu0 %vm363_vm1, %v12105_v35 }
 0x18d   : > { %10161 = vmatmul.mubr.msk.f32.gmra.mrb[8].mxu0 %vm363_vm1, %v12112_v36 }
 0x18e   : > { %10163 = vmatprep.mubr.msk.f32.mxu0 %vm363_vm1, %v12115_v37 }
 0x191   : > { %10164 = vmatmul.mubr.msk.f32.gmra.mrb[10].mxu0 %vm363_vm1, %v2378_v38 }
 0x192   : > { %10166 = vmatprep.mubr.msk.f32.mxu0 %vm363_vm1, %v2379_v39 }
 0x195   : > { %10167 = vmatmul.mubr.msk.f32.gmra.mrb[12].mxu0 %vm363_vm1, %v2380_v40 }
 0x196   : > { %10169 = vmatprep.mubr.msk.f32.mxu0 %vm363_vm1, %v2381_v41 }
 0x199   : > { %10170 = vmatmul.mubr.msk.f32.gmra.mrb[14].mxu0 %vm363_vm1, %v2382_v42 }
 0x19a   : > { %10172 = vmatprep.mubr.msk.f32.mxu0 %vm363_vm1, %v2383_v43 }
 0x19d   : > { %10173 = vmatmul.mubr.msk.f32.gmra.mrb[16].mxu0 %vm363_vm1, %v2384_v44 }
 0x19e   : > { %10175 = vmatprep.mubr.msk.f32.mxu0 %vm363_vm1, %v2385_v45 }
 0x1a1   : > { %10176 = vmatmul.mubr.msk.f32.gmra.mrb[18].mxu0 %vm363_vm1, %v2386_v46 }
 0x1a2   : > { %10178 = vmatprep.mubr.msk.f32.mxu0 %vm363_vm1, %v2387_v47 }
 0x1a5   : > { %10179 = vmatmul.mubr.msk.f32.gmra.mrb[20].mxu0 %vm363_vm1, %v2388_v48 }
 0x1a6   : > { %10181 = vmatprep.mubr.msk.f32.mxu0 %vm363_vm1, %v2389_v49 }
 0x1a9   : > { %10182 = vmatmul.mubr.msk.f32.gmra.mrb[22].mxu0 %vm363_vm1, %v2390_v50 }
 0x1aa   : > { %10184 = vmatprep.mubr.msk.f32.mxu0 %vm363_vm1, %v2391_v51 }
 0x1ad   : > { %10185 = vmatmul.mubr.msk.f32.gmra.mrb[24].mxu0 %vm363_vm1, %v2392_v52 }
 0x1ae   : > { %10187 = vmatprep.mubr.msk.f32.mxu0 %vm363_vm1, %v12151_v53 }
 0x1b1   : > { %10188 = vmatmul.mubr.msk.f32.gmra.mrb[26].mxu0 %vm363_vm1, %v12157_v54 }
 0x1b2   : > { %10190 = vmatprep.mubr.msk.f32.mxu0 %vm363_vm1, %v12160_v55 }
 0x1b5   : > { %10191 = vmatmul.mubr.msk.f32.gmra.mrb[28].mxu0 %vm363_vm1, %v12167_v56 }
 0x1b6   : > { %10193 = vmatprep.mubr.msk.f32.mxu0 %vm363_vm1, %v12170_v57 }
 0x1b9   : > { %10194 = vmatmul.mubr.msk.f32.gmra.mrb[30].mxu0 %vm363_vm1, %v12177_v58 }
 0x1ba   : > { %10196 = vmatprep.mubr.msk.f32.mxu0 %vm363_vm1, %v12180_v59 }
 0x1bd   : > { %10197 = vmatmul.mubr.msk.f32.gmra.mrb[32].mxu0 %vm363_vm1, %v12187_v60 }
 0x1be   : > { %10199 = vmatprep.mubr.msk.f32.mxu0 %vm363_vm1, %v12190_v61 }
 0x1c1   : > { %10200 = vmatmul.mubr.msk.f32.gmra.mrb[34].mxu0 %vm363_vm1, %v2402_v62  ;;  %v3249_v62 = vld [vmem:[%s11658_s30 + $0xd5] sm:$0xff] }
 0x1c2   : > { %10204 = vmatprep.mubr.msk.f32.mxu0 %vm363_vm1, %v12067_v28  ;;  %v3230_v28 = vld [vmem:[%s11658_s30 + $0x3d] sm:$0xff] }
 0x1c5   : > { %10205 = vmatmul.mubr.msk.f32.vlgmr.msra.gmra.mrb[0].mxu0 %vm363_vm1, %v12080_v30  ;;  %v273_v30 = vld [vmem:[%s13527_s5 + $0xa8] sm:$0xff] }
 0x1c6   : > { %10259 = vmatpush3.msk.msra.mxu0 %vm472_vm0, %v12072_v29  ;;  %10207 = vmatprep.mubr.msk.f32.mxu0 %vm363_vm1, %v12083_v31  ;;  %v3231_v29 = vld [vmem:[%s11658_s30 + $0x45] sm:$0xff]  ;;  %v274_v31 = vld [vmem:[%s13527_s5 + $0xb0] sm:$0xff] }
 0x1c7   : > { %10314 = vmatprep.subr.msk.mxu0 %vm472_vm0, %v12203_v63  ;;  %4273 = vperm.xlu1 %11589, %v273_v30   ;;  %v3675_v30 = vld [vmem:[%s11658_s30 + $0xb6] sm:$0xff] }
 0x1c8   : > { %4278 = vperm.xlu0 %11588, %v274_v31   ;;  %v3676_v31 = vld [vmem:[%s11658_s30 + $0xbe] sm:$0xff] }
 0x1c9   : > { %10208 = vmatmul.mubr.msk.f32.gmra.mrb[2].mxu0 %vm363_vm1, %v12092_v32  ;;  %v3232_v32 = vld [vmem:[%s11658_s30 + $0x4d] sm:$0xff] }
 0x1ca   : > { %10210 = vmatprep.mubr.msk.f32.mxu0 %vm363_vm1, %v12095_v33  ;;  %v3233_v33 = vld [vmem:[%s11658_s30 + $0x55] sm:$0xff] }
 0x1cd   : > { %10211 = vmatmul.mubr.msk.f32.gmra.mrb[4].mxu0 %vm363_vm1, %v12102_v34  ;;  %v275_v34 = vld [vmem:[%s13527_s5 + $0xb8] sm:$0xff] }
 0x1ce   : > { %10213 = vmatprep.mubr.msk.f32.mxu0 %vm363_vm1, %v12105_v35  ;;  %v276_v35 = vld [vmem:[%s13527_s5 + $0xc0] sm:$0xff]  ;;  %4283 = vperm.xlu1 %11589, %v275_v34   ;;  %v3679_v34 = vld [vmem:[%s11658_s30 + $0xd6] sm:$0xff] }
 0x1cf   : > { %4288 = vperm.xlu0 %11588, %v276_v35   ;;  %v3680_v35 = vld [vmem:[%s11658_s30 + $0xde] sm:$0xff] }
 0x1d1   : > { %10214 = vmatmul.mubr.msk.f32.gmra.mrb[6].mxu0 %vm363_vm1, %v12112_v36  ;;  %v3234_v36 = vld [vmem:[%s11658_s30 + $0x5d] sm:$0xff] }
 0x1d2   : > { %10216 = vmatprep.mubr.msk.f32.mxu0 %vm363_vm1, %v12115_v37  ;;  %v3235_v37 = vld [vmem:[%s11658_s30 + $0x65] sm:$0xff] }
 0x1d5   : > { %10217 = vmatmul.mubr.msk.f32.gmra.mrb[8].mxu0 %vm363_vm1, %v2378_v38  ;;  %v277_v38 = vld [vmem:[%s13527_s5 + $0xc8] sm:$0xff] }
 0x1d6   : > { %10219 = vmatprep.mubr.msk.f32.mxu0 %vm363_vm1, %v2379_v39  ;;  %v278_v39 = vld [vmem:[%s13527_s5 + $0xd0] sm:$0xff]  ;;  %4293 = vperm.xlu1 %11589, %v277_v38  }
 0x1d7   : > { %4298 = vperm.xlu0 %11588, %v278_v39   ;;  %v3683_v38 = vld [vmem:[%s11658_s30 + $0xf6] sm:$0xff]  ;;  %v3684_v39 = vld [vmem:[%s11658_s30 + $0xfe] sm:$0xff] }
 0x1d9   : > { %10220 = vmatmul.mubr.msk.f32.gmra.mrb[10].mxu0 %vm363_vm1, %v2380_v40  ;;  %v3236_v40 = vld [vmem:[%s11658_s30 + $0x6d] sm:$0xff] }
 0x1da   : > { %10222 = vmatprep.mubr.msk.f32.mxu0 %vm363_vm1, %v2381_v41  ;;  %v3237_v41 = vld [vmem:[%s11658_s30 + $0x75] sm:$0xff] }
 0x1dd   : > { %10223 = vmatmul.mubr.msk.f32.gmra.mrb[12].mxu0 %vm363_vm1, %v2382_v42  ;;  %v279_v42 = vld [vmem:[%s13527_s5 + $0xd8] sm:$0xff] }
 0x1de   : > { %10225 = vmatprep.mubr.msk.f32.mxu0 %vm363_vm1, %v2383_v43  ;;  %v280_v43 = vld [vmem:[%s13527_s5 + $0xe0] sm:$0xff]  ;;  %4303 = vperm.xlu1 %11589, %v279_v42   ;;  %v3687_v42 = vld [vmem:[%s11658_s30 + $0x116] sm:$0xff] }
 0x1df   : > { %4308 = vperm.xlu0 %11588, %v280_v43   ;;  %v3688_v43 = vld [vmem:[%s11658_s30 + $0x11e] sm:$0xff] }
 0x1e1   : > { %10226 = vmatmul.mubr.msk.f32.gmra.mrb[14].mxu0 %vm363_vm1, %v2384_v44  ;;  %v3238_v44 = vld [vmem:[%s11658_s30 + $0x7d] sm:$0xff] }
 0x1e2   : > { %10228 = vmatprep.mubr.msk.f32.mxu0 %vm363_vm1, %v2385_v45  ;;  %v3239_v45 = vld [vmem:[%s11658_s30 + $0x85] sm:$0xff] }
 0x1e5   : > { %10229 = vmatmul.mubr.msk.f32.gmra.mrb[16].mxu0 %vm363_vm1, %v2386_v46  ;;  %v281_v46 = vld [vmem:[%s13527_s5 + $0xe8] sm:$0xff] }
 0x1e6   : > { %10231 = vmatprep.mubr.msk.f32.mxu0 %vm363_vm1, %v2387_v47  ;;  %v282_v47 = vld [vmem:[%s13527_s5 + $0xf0] sm:$0xff]  ;;  %4313 = vperm.xlu1 %11589, %v281_v46  }
 0x1e7   : > { %4318 = vperm.xlu0 %11588, %v282_v47   ;;  %v3691_v46 = vld [vmem:[%s11658_s30 + $0x136] sm:$0xff]  ;;  %v3692_v47 = vld [vmem:[%s11658_s30 + $0x13e] sm:$0x3f] }
 0x1e9   : > { %10232 = vmatmul.mubr.msk.f32.gmra.mrb[18].mxu0 %vm363_vm1, %v2388_v48  ;;  %v3240_v48 = vld [vmem:[%s11658_s30 + $0x8d] sm:$0xff] }
 0x1ea   : > { %10234 = vmatprep.mubr.msk.f32.mxu0 %vm363_vm1, %v2389_v49  ;;  %v3241_v49 = vld [vmem:[%s11658_s30 + $0x95] sm:$0xff] }
 0x1ed   : > { %10235 = vmatmul.mubr.msk.f32.gmra.mrb[20].mxu0 %vm363_vm1, %v2390_v50  ;;  %v283_v50 = vld [vmem:[%s13527_s5 + $0xf8] sm:$0xff] }
 0x1ee   : > { %10237 = vmatprep.mubr.msk.f32.mxu0 %vm363_vm1, %v2391_v51  ;;  %v284_v51 = vld [vmem:[%s13527_s5 + $0x100] sm:$0xff]  ;;  %4323 = vperm.xlu1 %11589, %v283_v50  }
 0x1ef   : > { %4328 = vperm.xlu0 %11588, %v284_v51   ;;  %v13529_v51 = vmov 0.0  }
 0x1f0   : > { %4386 = vst.msk [vmem:[#allocation2 + $0x18] sm:$0xff] %vm4382_vm2, %v13529_v51  ;;  %4387 = vst.msk [vmem:[#allocation2 + $0x20] sm:$0xff] %vm4382_vm2, %v13529_v51 }
 0x1f1   : > { %10238 = vmatmul.mubr.msk.f32.gmra.mrb[22].mxu0 %vm363_vm1, %v2392_v52  ;;  %v3242_v52 = vld [vmem:[%s11658_s30 + $0x9d] sm:$0xff]  ;;  %4383 = vst.msk [vmem:[#allocation2] sm:$0xff] %vm4382_vm2, %v13529_v51  ;;  %4384 = vst.msk [vmem:[#allocation2 + $0x8] sm:$0xff] %vm4382_vm2, %v13529_v51 }
 0x1f2   : > { %10240 = vmatprep.mubr.msk.f32.mxu0 %vm363_vm1, %v12151_v53  ;;  %v3243_v53 = vld [vmem:[%s11658_s30 + $0xa5] sm:$0xff]  ;;  %4385 = vst.msk [vmem:[#allocation2 + $0x10] sm:$0xff] %vm4382_vm2, %v13529_v51  ;;  %4388 = vst.msk [vmem:[#allocation2 + $0x28] sm:$0xff] %vm4382_vm2, %v13529_v51 }
 0x1f3   : > { %4389 = vst.msk [vmem:[#allocation2 + $0x30] sm:$0xff] %vm4382_vm2, %v13529_v51  ;;  %4390 = vst.msk [vmem:[#allocation2 + $0x38] sm:$0xff] %vm4382_vm2, %v13529_v51 }
 0x1f4   : > { %4391 = vst.msk [vmem:[#allocation2 + $0x40] sm:$0xff] %vm4382_vm2, %v13529_v51  ;;  %4392 = vst.msk [vmem:[#allocation2 + $0x48] sm:$0xff] %vm4382_vm2, %v13529_v51 }
 0x1f5   : > { %10241 = vmatmul.mubr.msk.f32.gmra.mrb[24].mxu0 %vm363_vm1, %v12157_v54  ;;  %v285_v54 = vld [vmem:[%s13527_s5 + $0x108] sm:$0xff]  ;;  %4393 = vst.msk [vmem:[#allocation2 + $0x50] sm:$0xff] %vm4382_vm2, %v13529_v51  ;;  %4394 = vst.msk [vmem:[#allocation2 + $0x58] sm:$0xff] %vm4382_vm2, %v13529_v51 }
 0x1f6   : > { %10243 = vmatprep.mubr.msk.f32.mxu0 %vm363_vm1, %v12160_v55  ;;  %v286_v55 = vld [vmem:[%s13527_s5 + $0x110] sm:$0xff]  ;;  %4333 = vperm.xlu1 %11589, %v285_v54   ;;  %4395 = vst.msk [vmem:[#allocation2 + $0x60] sm:$0xff] %vm4382_vm2, %v13529_v51  ;;  %4396 = vst.msk [vmem:[#allocation2 + $0x68] sm:$0xff] %vm4382_vm2, %v13529_v51 }
 0x1f7   : > { %4338 = vperm.xlu0 %11588, %v286_v55   ;;  %4397 = vst.msk [vmem:[#allocation2 + $0x70] sm:$0xff] %vm4382_vm2, %v13529_v51  ;;  %4398 = vst.msk [vmem:[#allocation2 + $0x78] sm:$0xff] %vm4382_vm2, %v13529_v51 }
 0x1f8   : > { %4399 = vst.msk [vmem:[#allocation2 + $0x80] sm:$0xff] %vm4382_vm2, %v13529_v51  ;;  %4400 = vst.msk [vmem:[#allocation2 + $0x88] sm:$0xff] %vm4382_vm2, %v13529_v51  ;;  %v4502_v55 = vld [vmem:[#allocation2 + $0x1] sm:$0xff] }
 0x1f9   : > { %10244 = vmatmul.mubr.msk.f32.gmra.mrb[26].mxu0 %vm363_vm1, %v12167_v56  ;;  %v3244_v56 = vld [vmem:[%s11658_s30 + $0xad] sm:$0xff]  ;;  %4401 = vst.msk [vmem:[#allocation2 + $0x90] sm:$0xff] %vm4382_vm2, %v13529_v51  ;;  %4402 = vst.msk [vmem:[#allocation2 + $0x98] sm:$0xff] %vm4382_vm2, %v13529_v51  ;;  %10378 = vmatprep.mubr.msk.f32.mxu1 %vm4382_vm2, %v4502_v55 }
 0x1fa   : > { %10246 = vmatprep.mubr.msk.f32.mxu0 %vm363_vm1, %v12170_v57  ;;  %v3245_v57 = vld [vmem:[%s11658_s30 + $0xb5] sm:$0xff]  ;;  %4403 = vst.msk [vmem:[#allocation2 + $0xa0] sm:$0xff] %vm4382_vm2, %v13529_v51  ;;  %4404 = vst.msk [vmem:[#allocation2 + $0xa8] sm:$0xff] %vm4382_vm2, %v13529_v51 }
 0x1fb   : > { %4405 = vst.msk [vmem:[#allocation2 + $0xb0] sm:$0xff] %vm4382_vm2, %v13529_v51  ;;  %4406 = vst.msk [vmem:[#allocation2 + $0xb8] sm:$0xff] %vm4382_vm2, %v13529_v51 }
 0x1fc   : > { %4407 = vst.msk [vmem:[#allocation2 + $0xc0] sm:$0xff] %vm4382_vm2, %v13529_v51  ;;  %4408 = vst.msk [vmem:[#allocation2 + $0xc8] sm:$0xff] %vm4382_vm2, %v13529_v51 }
 0x1fd   : > { %10247 = vmatmul.mubr.msk.f32.gmra.mrb[28].mxu0 %vm363_vm1, %v12177_v58  ;;  %v287_v58 = vld [vmem:[%s13527_s5 + $0x118] sm:$0x3f]  ;;  %4409 = vst.msk [vmem:[#allocation2 + $0xd0] sm:$0xff] %vm4382_vm2, %v13529_v51  ;;  %4410 = vst.msk [vmem:[#allocation2 + $0xd8] sm:$0xff] %vm4382_vm2, %v13529_v51 }
 0x1fe   : > { %10249 = vmatprep.mubr.msk.f32.mxu0 %vm363_vm1, %v12180_v59  ;;  %v3246_v59 = vld [vmem:[%s11658_s30 + $0xbd] sm:$0xff]  ;;  %4343 = vperm.xlu1 %11589, %v287_v58   ;;  %4411 = vst.msk [vmem:[#allocation2 + $0xe0] sm:$0xff] %vm4382_vm2, %v13529_v51  ;;  %4412 = vst.msk [vmem:[#allocation2 + $0xe8] sm:$0xff] %vm4382_vm2, %v13529_v51  ;;  %v4499_v58 = vld [vmem:[%s13525_s3 + $0x8] sm:$0xff] }
 0x1ff   : > { %4413 = vst.msk [vmem:[#allocation2 + $0xf0] sm:$0xff] %vm4382_vm2, %v13529_v51  ;;  %4414 = vst.msk [vmem:[#allocation2 + $0xf8] sm:$0xff] %vm4382_vm2, %v13529_v51 }
 0x200   : > { %4415 = vst.msk [vmem:[#allocation2 + $0x100] sm:$0xff] %vm4382_vm2, %v13529_v51  ;;  %4416 = vst.msk [vmem:[#allocation2 + $0x108] sm:$0xff] %vm4382_vm2, %v13529_v51 }
 0x201   : > { %10250 = vmatmul.mubr.msk.f32.gmra.mrb[30].mxu0 %vm363_vm1, %v12187_v60  ;;  %v3247_v60 = vld [vmem:[%s11658_s30 + $0xc5] sm:$0xff]  ;;  %4417 = vst.msk [vmem:[#allocation2 + $0x110] sm:$0xff] %vm4382_vm2, %v13529_v51  ;;  %4418 = vst.msk [vmem:[#allocation2 + $0x118] sm:$0xff] %vm4382_vm2, %v13529_v51 }
 0x202   : > { %10252 = vmatprep.mubr.msk.f32.mxu0 %vm363_vm1, %v12190_v61  ;;  %v3248_v61 = vld [vmem:[%s11658_s30 + $0xcd] sm:$0xff]  ;;  %4419 = vst.msk [vmem:[#allocation2 + $0x120] sm:$0xff] %vm4382_vm2, %v13529_v51  ;;  %4420 = vst.msk [vmem:[#allocation2 + $0x128] sm:$0xff] %vm4382_vm2, %v13529_v51 }
 0x203   : > { %4421 = vst.msk [vmem:[#allocation2 + $0x130] sm:$0xff] %vm4382_vm2, %v13529_v51  ;;  %4422 = vst.msk [vmem:[#allocation2 + $0x138] sm:$0xff] %vm4382_vm2, %v13529_v51 }
 0x205   : > { %10253 = vmatmul.mubr.msk.f32.gmra.mrb[32].mxu0 %vm363_vm1, %v2830_v16  ;;  %v3661_v16 = vld [vmem:[%s11658_s30 + $0x46] sm:$0xff] }
 0x206   : > { %10255 = vmatprep.mubr.msk.f32.mxu0 %vm363_vm1, %v2831_v17  ;;  %v3662_v17 = vld [vmem:[%s11658_s30 + $0x4e] sm:$0xff] }
 0x209   : > { %10256 = vmatmul.mubr.msk.f32.gmra.mrb[34].mxu0 %vm363_vm1, %v2832_v20  ;;  %v3665_v20 = vld [vmem:[%s11658_s30 + $0x66] sm:$0xff] }
 0x20a   : > { %10260 = vmatprep.mubr.msk.f32.mxu0 %vm363_vm1, %v3227_v21  ;;  %v3666_v21 = vld [vmem:[%s11658_s30 + $0x6e] sm:$0xff] }
 0x20d   : > { %10261 = vmatmul.mubr.msk.f32.vlgmr.msra.gmra.mrb[0].mxu0 %vm363_vm1, %v3228_v24  ;;  %v3669_v24 = vld [vmem:[%s11658_s30 + $0x86] sm:$0xff] }
 0x20e   : > { %10315 = vmatpush3.msk.msra.mxu0 %vm472_vm0, %v12203_v63  ;;  %10263 = vmatprep.mubr.msk.f32.mxu0 %vm363_vm1, %v3229_v25  ;;  %v3250_v63 = vld [vmem:[%s11658_s30 + $0xdd] sm:$0xff]  ;;  %v3670_v25 = vld [vmem:[%s11658_s30 + $0x8e] sm:$0xff] }
 0x211   : > { %10264 = vmatmul.mubr.msk.f32.gmra.mrb[2].mxu0 %vm363_vm1, %v3230_v28  ;;  %v3673_v28 = vld [vmem:[%s11658_s30 + $0xa6] sm:$0xff] }
 0x212   : > { %10266 = vmatprep.mubr.msk.f32.mxu0 %vm363_vm1, %v3231_v29  ;;  %v3674_v29 = vld [vmem:[%s11658_s30 + $0xae] sm:$0xff] }
 0x215   : > { %10267 = vmatmul.mubr.msk.f32.gmra.mrb[4].mxu0 %vm363_vm1, %v3232_v32  ;;  %v3677_v32 = vld [vmem:[%s11658_s30 + $0xc6] sm:$0xff] }
 0x216   : > { %10269 = vmatprep.mubr.msk.f32.mxu0 %vm363_vm1, %v3233_v33  ;;  %v3678_v33 = vld [vmem:[%s11658_s30 + $0xce] sm:$0xff] }
 0x219   : > { %10270 = vmatmul.mubr.msk.f32.gmra.mrb[6].mxu0 %vm363_vm1, %v3234_v36  ;;  %v3681_v36 = vld [vmem:[%s11658_s30 + $0xe6] sm:$0xff] }
 0x21a   : > { %10272 = vmatprep.mubr.msk.f32.mxu0 %vm363_vm1, %v3235_v37  ;;  %v3682_v37 = vld [vmem:[%s11658_s30 + $0xee] sm:$0xff] }
 0x21d   : > { %10273 = vmatmul.mubr.msk.f32.gmra.mrb[8].mxu0 %vm363_vm1, %v3236_v40  ;;  %v3685_v40 = vld [vmem:[%s11658_s30 + $0x106] sm:$0xff] }
 0x21e   : > { %10275 = vmatprep.mubr.msk.f32.mxu0 %vm363_vm1, %v3237_v41  ;;  %v3686_v41 = vld [vmem:[%s11658_s30 + $0x10e] sm:$0xff] }
 0x221   : > { %10276 = vmatmul.mubr.msk.f32.gmra.mrb[10].mxu0 %vm363_vm1, %v3238_v44  ;;  %v3689_v44 = vld [vmem:[%s11658_s30 + $0x126] sm:$0xff] }
 0x222   : > { %10278 = vmatprep.mubr.msk.f32.mxu0 %vm363_vm1, %v3239_v45  ;;  %v3690_v45 = vld [vmem:[%s11658_s30 + $0x12e] sm:$0xff] }
 0x225   : > { %10279 = vmatmul.mubr.msk.f32.gmra.mrb[12].mxu0 %vm363_vm1, %v3240_v48  ;;  %v8814_v48 = vld [vmem:[%s13525_s3 + $0x20] sm:$0xff] }
 0x226   : > { %10281 = vmatprep.mubr.msk.f32.mxu0 %vm363_vm1, %v3241_v49  ;;  %v8815_v49 = vld [vmem:[%s13525_s3 + $0x28] sm:$0xff] }
 0x227   : > { %v10928_v50 = vpack.c.bf16 %v8815_v49, %v8814_v48 }
 0x229   : > { %10282 = vmatmul.mubr.msk.f32.gmra.mrb[14].mxu0 %vm363_vm1, %v3242_v52  ;;  %10929 = vmatprep.subr.bf16.mxu1 %v10928_v50  ;;  %v8816_v52 = vld [vmem:[%s13525_s3 + $0x30] sm:$0xff] }
 0x22a   : > { %10284 = vmatprep.mubr.msk.f32.mxu0 %vm363_vm1, %v3243_v53  ;;  %10931 = vmatpush3.bf16.msra.mxu1 %v10928_v50  ;;  %v8817_v53 = vld [vmem:[%s13525_s3 + $0x38] sm:$0xff] }
 0x22b   : > { %v10932_v54 = vpack.c.bf16 %v8817_v53, %v8816_v52 }
 0x22d   : > { %10285 = vmatmul.mubr.msk.f32.gmra.mrb[16].mxu0 %vm363_vm1, %v3244_v56  ;;  %10933 = vmatprep.subr.bf16.mxu1 %v10932_v54  ;;  %v4503_v56 = vld [vmem:[#allocation2 + $0x9] sm:$0xff] }
 0x22e   : > { %10287 = vmatprep.mubr.msk.f32.mxu0 %vm363_vm1, %v3245_v57  ;;  %10935 = vmatpush3.bf16.msra.mxu1 %v10932_v54  ;;  %v4498_v57 = vld [vmem:[%s13525_s3] sm:$0xff] }
 0x231   : > { %10288 = vmatmul.mubr.msk.f32.gmra.mrb[18].mxu0 %vm363_vm1, %v3246_v59  ;;  %10379 = vmatmul.mubr.msk.f32.vlgmr.msra.gmra.mrb[0].mxu1 %vm4382_vm2, %v4503_v56  ;;  %v10936_v59 = vpack.c.bf16 %v4499_v58, %v4498_v57 }
 0x232   : > { %10290 = vmatprep.mubr.msk.f32.mxu0 %vm363_vm1, %v3247_v60  ;;  %v4500_v60 = vld [vmem:[%s13525_s3 + $0x10] sm:$0xff] }
 0x233   : > { %10937 = vmatprep.subr.bf16.mxu1 %v10936_v59 }
 0x234   : > { %10939 = vmatpush3.bf16.msra.mxu1 %v10936_v59 }
 0x235   : > { %10291 = vmatmul.mubr.msk.f32.gmra.mrb[20].mxu0 %vm363_vm1, %v3248_v61  ;;  %v4501_v61 = vld [vmem:[%s13525_s3 + $0x18] sm:$0xff] }
 0x236   : > { %10293 = vmatprep.mubr.msk.f32.mxu0 %vm363_vm1, %v3249_v62  ;;  %v10940_v62 = vpack.c.bf16 %v4501_v61, %v4500_v60 }
 0x238   : > { %10941 = vmatprep.subr.bf16.mxu1 %v10940_v62 }
 0x239   : > { %10294 = vmatmul.mubr.msk.f32.gmra.mrb[22].mxu0 %vm363_vm1, %v3250_v63  ;;  %10943 = vmatpush3.bf16.msra.mxu1 %v10940_v62  ;;  %v8890_v63 = vld [vmem:[%s13525_s3 + $0x40] sm:$0xff] }
 0x23a   : > { %10296 = vmatprep.mubr.msk.f32.mxu0 %vm363_vm1, %v3251_v0  ;;  %v8891_v0 = vld [vmem:[%s13525_s3 + $0x48] sm:$0xff] }
 0x23d   : > { %10297 = vmatmul.mubr.msk.f32.gmra.mrb[24].mxu0 %vm363_vm1, %v3252_v1  ;;  %v12630_v1 = vpack.c.bf16 %v8891_v0, %v8890_v63 }
 0x23e   : > { %10299 = vmatprep.mubr.msk.f32.mxu0 %vm363_vm1, %v3253_v2  ;;  %v12633_v2 = vpop.permute.xlu1 %4178 }
 0x23f   : > { %10945 = vmatprep.subr.bf16.mxu1 %v12630_v1 }
 0x241   : > { %10300 = vmatmul.mubr.msk.f32.gmra.mrb[26].mxu0 %vm363_vm1, %v3254_v3  ;;  %v12635_v3 = vpop.permute.xlu0 %4168 }
 0x242   : > { %10302 = vmatprep.mubr.msk.f32.mxu0 %vm363_vm1, %v3255_v4  ;;  %v12637_v4 = vpop.permute.xlu1 %4183 }
 0x245   : > { %10303 = vmatmul.mubr.msk.f32.gmra.mrb[28].mxu0 %vm363_vm1, %v3256_v5  ;;  %v12639_v5 = vpop.permute.xlu0 %4173 }
 0x246   : > { %10305 = vmatprep.mubr.msk.f32.mxu0 %vm363_vm1, %v3257_v6  ;;  %v12641_v6 = vpop.permute.xlu1 %4193 }
 0x249   : > { %10306 = vmatmul.mubr.msk.f32.gmra.mrb[30].mxu0 %vm363_vm1, %v3258_v7  ;;  %v12643_v7 = vpop.permute.xlu0 %4188 }
 0x24a   : > { %10308 = vmatprep.mubr.msk.f32.mxu0 %vm363_vm1, %v3259_v8  ;;  %v12645_v8 = vpop.permute.xlu1 %4203 }
 0x24d   : > { %10309 = vmatmul.mubr.msk.f32.gmra.mrb[32].mxu0 %vm363_vm1, %v3260_v9  ;;  %v12647_v9 = vpop.permute.xlu0 %4198 }
 0x24e   : > { %10311 = vmatprep.mubr.msk.f32.mxu0 %vm363_vm1, %v3261_v10  ;;  %v12649_v10 = vpop.permute.xlu1 %4213 }
 0x251   : > { %10312 = vmatmul.mubr.msk.f32.gmra.mrb[34].mxu0 %vm363_vm1, %v3262_v11  ;;  %v12651_v11 = vpop.permute.xlu0 %4208 }
 0x252   : > { %10316 = vmatprep.mubr.msk.f32.mxu0 %vm363_vm1, %v3657_v12  ;;  %v12656_v12 = vld [vmem:[%s13524_s2] ss:$0 sm:$0xff] }
 0x255   : > { %10317 = vmatmul.mubr.msk.f32.vlgmr.msra.gmra.mrb[0].mxu0 %vm363_vm1, %v3658_v13  ;;  %v12658_v13 = vpop.permute.xlu1 %4223 }
 0x256   : > { %10319 = vmatprep.mubr.msk.f32.mxu0 %vm363_vm1, %v3659_v14 }
 0x259   : > { %10320 = vmatmul.mubr.msk.f32.gmra.mrb[2].mxu0 %vm363_vm1, %v3660_v15  ;;  %v12660_v15 = vpop.permute.xlu0 %4218 }
 0x25a   : > { %10322 = vmatprep.mubr.msk.f32.mxu0 %vm363_vm1, %v3661_v16 }
 0x25d   : > { %10323 = vmatmul.mubr.msk.f32.gmra.mrb[4].mxu0 %vm363_vm1, %v3662_v17 }
 0x25e   : > { %10325 = vmatprep.mubr.msk.f32.mxu0 %vm363_vm1, %v3663_v18 }
 0x261   : > { %10326 = vmatmul.mubr.msk.f32.gmra.mrb[6].mxu0 %vm363_vm1, %v3664_v19 }
 0x262   : > { %10328 = vmatprep.mubr.msk.f32.mxu0 %vm363_vm1, %v3665_v20 }
 0x265   : > { %10329 = vmatmul.mubr.msk.f32.gmra.mrb[8].mxu0 %vm363_vm1, %v3666_v21 }
 0x266   : > { %10331 = vmatprep.mubr.msk.f32.mxu0 %vm363_vm1, %v3667_v22 }
 0x269   : > { %10332 = vmatmul.mubr.msk.f32.gmra.mrb[10].mxu0 %vm363_vm1, %v3668_v23 }
 0x26a   : > { %10334 = vmatprep.mubr.msk.f32.mxu0 %vm363_vm1, %v3669_v24 }
 0x26d   : > { %10335 = vmatmul.mubr.msk.f32.gmra.mrb[12].mxu0 %vm363_vm1, %v3670_v25  ;;  %v12666_v25 = vpop.permute.xlu1 %4233 }
 0x26e   : > { %10337 = vmatprep.mubr.msk.f32.mxu0 %vm363_vm1, %v3671_v26 }
 0x271   : > { %10338 = vmatmul.mubr.msk.f32.gmra.mrb[14].mxu0 %vm363_vm1, %v3672_v27 }
 0x272   : > { %10340 = vmatprep.mubr.msk.f32.mxu0 %vm363_vm1, %v3673_v28  ;;  %v12670_v28 = vpop.permute.xlu0 %4228 }
 0x275   : > { %10341 = vmatmul.mubr.msk.f32.gmra.mrb[16].mxu0 %vm363_vm1, %v3674_v29 }
 0x276   : > { %10343 = vmatprep.mubr.msk.f32.mxu0 %vm363_vm1, %v3675_v30 }
 0x279   : > { %10344 = vmatmul.mubr.msk.f32.gmra.mrb[18].mxu0 %vm363_vm1, %v3676_v31 }
 0x27a   : > { %10346 = vmatprep.mubr.msk.f32.mxu0 %vm363_vm1, %v3677_v32 }
 0x27d   : > { %10347 = vmatmul.mubr.msk.f32.gmra.mrb[20].mxu0 %vm363_vm1, %v3678_v33 }
 0x27e   : > { %10349 = vmatprep.mubr.msk.f32.mxu0 %vm363_vm1, %v3679_v34 }
 0x281   : > { %10350 = vmatmul.mubr.msk.f32.gmra.mrb[22].mxu0 %vm363_vm1, %v3680_v35 }
 0x282   : > { %10352 = vmatprep.mubr.msk.f32.mxu0 %vm363_vm1, %v3681_v36 }
 0x285   : > { %10353 = vmatmul.mubr.msk.f32.gmra.mrb[24].mxu0 %vm363_vm1, %v3682_v37 }
 0x286   : > { %10355 = vmatprep.mubr.msk.f32.mxu0 %vm363_vm1, %v3683_v38  ;;  %v12679_v38 = vpop.permute.xlu1 %4243 }
 0x289   : > { %10356 = vmatmul.mubr.msk.f32.gmra.mrb[26].mxu0 %vm363_vm1, %v3684_v39 }
 0x28a   : > { %10358 = vmatprep.mubr.msk.f32.mxu0 %vm363_vm1, %v3685_v40  ;;  %v12694_v56 = vpop.permute.xlu1 %4253 }
 0x28d   : > { %10359 = vmatmul.mubr.msk.f32.gmra.mrb[28].mxu0 %vm363_vm1, %v3686_v41  ;;  %v12682_v41 = vpop.permute.xlu0 %4238 }
 0x28e   : > { %10361 = vmatprep.mubr.msk.f32.mxu0 %vm363_vm1, %v3687_v42 }
 0x291   : > { %10362 = vmatmul.mubr.msk.f32.gmra.mrb[30].mxu0 %vm363_vm1, %v3688_v43  ;;  %v12698_v59 = vpop.permute.xlu0 %4248 }
 0x292   : > { %10364 = vmatprep.mubr.msk.f32.mxu0 %vm363_vm1, %v3689_v44 }
 0x295   : > { %10365 = vmatmul.mubr.msk.f32.gmra.mrb[32].mxu0 %vm363_vm1, %v3690_v45 }
 0x296   : > { %10367 = vmatprep.mubr.msk.f32.mxu0 %vm363_vm1, %v3691_v46 }
 0x299   : > { %10368 = vmatmul.mubr.msk.f32.gmra.mrb[34].mxu0 %vm363_vm1, %v3692_v47 }
 0x328   : > { %v10318_v14 = vpop.f32.mrb[0].mxu0 }
 0x329   : > { %v4095_v16 = vadd.f32 %v10318_v14, %v12656_v12  ;;  %v3872_v17 = vpop.f32.mrb[1].mxu0 }
 0x32a   : > { %v4094_v18 = vadd.f32 %v12656_v12, %v3872_v17 }
 0x32b   : > { %v4131_v19 = vmax.f32 %v4095_v16, 0.0 }
 0x32c   : > { %v4130_v20 = vmax.f32 %v4094_v18, 0.0  ;;  %v10321_v21 = vpop.f32.mrb[2].mxu0 }
 0x32d   : > { %v4347_v22 = vmul.f32 %v12639_v5, %v4131_v19  ;;  %v4097_v23 = vadd.f32 %v10321_v21, %v12656_v12  ;;  %v3882_v24 = vpop.f32.mrb[3].mxu0 }
 0x32e   : > { %v4346_v26 = vmul.f32 %v12635_v3, %v4130_v20  ;;  %v4096_v27 = vadd.f32 %v12656_v12, %v3882_v24 }
 0x32f   : > { %4426 = vst.msk [vmem:[#allocation2 + $0x1b] sm:$0xff] %vm4382_vm2, %v4347_v22  ;;  %v4133_v29 = vmax.f32 %v4097_v23, 0.0  ;;  %v12709_v23 = vpop.permute.xlu1 %4263 }
 0x330   : > { %4425 = vst.msk [vmem:[#allocation2 + $0x13] sm:$0xff] %vm4382_vm2, %v4346_v26  ;;  %v4132_v30 = vmax.f32 %v4096_v27, 0.0  ;;  %v10324_v31 = vpop.f32.mrb[4].mxu0  ;;  %v12713_v27 = vpop.permute.xlu0 %4258 }
 0x331   : > { %v4349_v32 = vmul.f32 %v12637_v4, %v4133_v29  ;;  %v4099_v33 = vadd.f32 %v10324_v31, %v12656_v12  ;;  %v3892_v34 = vpop.f32.mrb[5].mxu0 }
 0x332   : > { %v4348_v35 = vmul.f32 %v12633_v2, %v4132_v30  ;;  %v4098_v36 = vadd.f32 %v12656_v12, %v3892_v34 }
 0x333   : > { %4428 = vst.msk [vmem:[#allocation2 + $0x2b] sm:$0xff] %vm4382_vm2, %v4349_v32  ;;  %v4135_v37 = vmax.f32 %v4099_v33, 0.0 }
 0x334   : > { %4427 = vst.msk [vmem:[#allocation2 + $0x23] sm:$0xff] %vm4382_vm2, %v4348_v35  ;;  %v4134_v39 = vmax.f32 %v4098_v36, 0.0  ;;  %v10327_v40 = vpop.f32.mrb[6].mxu0 }
 0x335   : > { %v4351_v42 = vmul.f32 %v12641_v6, %v4135_v37  ;;  %v4101_v43 = vadd.f32 %v10327_v40, %v12656_v12  ;;  %v3902_v44 = vpop.f32.mrb[7].mxu0 }
 0x336   : > { %v4350_v45 = vmul.f32 %v12643_v7, %v4134_v39  ;;  %v4100_v46 = vadd.f32 %v12656_v12, %v3902_v44  ;;  %v12726_v44 = vpop.permute.xlu1 %4273 }
 0x337   : > { %4430 = vst.msk [vmem:[#allocation2 + $0x3b] sm:$0xff] %vm4382_vm2, %v4351_v42  ;;  %v4137_v47 = vmax.f32 %v4101_v43, 0.0  ;;  %v4504_v48 = vld [vmem:[#allocation2 + $0x11] sm:$0xff]  ;;  %v4505_v49 = vld [vmem:[#allocation2 + $0x19] sm:$0xff] }
 0x338   : > { %4429 = vst.msk [vmem:[#allocation2 + $0x33] sm:$0xff] %vm4382_vm2, %v4350_v45  ;;  %v4136_v50 = vmax.f32 %v4100_v46, 0.0  ;;  %v10330_v52 = vpop.f32.mrb[8].mxu0  ;;  %10381 = vmatprep.mubr.msk.f32.mxu1 %vm4382_vm2, %v4504_v48 }
 0x339   : > { %v4353_v53 = vmul.f32 %v12645_v8, %v4137_v47  ;;  %v4103_v54 = vadd.f32 %v10330_v52, %v12656_v12  ;;  %v3912_v55 = vpop.f32.mrb[9].mxu0  ;;  %10382 = vmatmul.mubr.msk.f32.gmra.mrb[2].mxu1 %vm4382_vm2, %v4505_v49  ;;  %v12730_v47 = vpop.permute.xlu0 %4268 }
 0x33a   : > { %v4352_v57 = vmul.f32 %v12647_v9, %v4136_v50  ;;  %v4102_v58 = vadd.f32 %v12656_v12, %v3912_v55 }
 0x33b   : > { %4432 = vst.msk [vmem:[#allocation2 + $0x4b] sm:$0xff] %vm4382_vm2, %v4353_v53  ;;  %v4139_v60 = vmax.f32 %v4103_v54, 0.0  ;;  %v4506_v61 = vld [vmem:[#allocation2 + $0x21] sm:$0xff]  ;;  %v4507_v62 = vld [vmem:[#allocation2 + $0x29] sm:$0xff] }
 0x33c   : > { %4431 = vst.msk [vmem:[#allocation2 + $0x43] sm:$0xff] %vm4382_vm2, %v4352_v57  ;;  %v4138_v63 = vmax.f32 %v4102_v58, 0.0  ;;  %v10333_v0 = vpop.f32.mrb[10].mxu0  ;;  %10384 = vmatprep.mubr.msk.f32.mxu1 %vm4382_vm2, %v4506_v61 }
 0x33d   : > { %v4355_v14 = vmul.f32 %v12649_v10, %v4139_v60  ;;  %v4105_v16 = vadd.f32 %v10333_v0, %v12656_v12  ;;  %v3922_v17 = vpop.f32.mrb[11].mxu0  ;;  %10385 = vmatmul.mubr.msk.f32.gmra.mrb[4].mxu1 %vm4382_vm2, %v4507_v62  ;;  %v12741_v0 = vpop.permute.xlu1 %4283 }
 0x33e   : > { %v4354_v18 = vmul.f32 %v12651_v11, %v4138_v63  ;;  %v4104_v19 = vadd.f32 %v12656_v12, %v3922_v17  ;;  %v12745_v17 = vpop.permute.xlu0 %4278 }
 0x33f   : > { %4434 = vst.msk [vmem:[#allocation2 + $0x5b] sm:$0xff] %vm4382_vm2, %v4355_v14  ;;  %v4141_v20 = vmax.f32 %v4105_v16, 0.0  ;;  %v4508_v21 = vld [vmem:[#allocation2 + $0x31] sm:$0xff]  ;;  %v4509_v22 = vld [vmem:[#allocation2 + $0x39] sm:$0xff] }
 0x340   : > { %4433 = vst.msk [vmem:[#allocation2 + $0x53] sm:$0xff] %vm4382_vm2, %v4354_v18  ;;  %v4140_v24 = vmax.f32 %v4104_v19, 0.0  ;;  %v10336_v26 = vpop.f32.mrb[12].mxu0  ;;  %10387 = vmatprep.mubr.msk.f32.mxu1 %vm4382_vm2, %v4508_v21 }
 0x341   : > { %v4357_v29 = vmul.f32 %v12658_v13, %v4141_v20  ;;  %v4107_v30 = vadd.f32 %v10336_v26, %v12656_v12  ;;  %v3932_v31 = vpop.f32.mrb[13].mxu0  ;;  %10388 = vmatmul.mubr.msk.f32.gmra.mrb[6].mxu1 %vm4382_vm2, %v4509_v22 }
 0x342   : > { %v4356_v32 = vmul.f32 %v12660_v15, %v4140_v24  ;;  %v4106_v33 = vadd.f32 %v12656_v12, %v3932_v31 }
 0x343   : > { %4436 = vst.msk [vmem:[#allocation2 + $0x6b] sm:$0xff] %vm4382_vm2, %v4357_v29  ;;  %v4143_v34 = vmax.f32 %v4107_v30, 0.0  ;;  %v4510_v35 = vld [vmem:[#allocation2 + $0x41] sm:$0xff]  ;;  %v4511_v36 = vld [vmem:[#allocation2 + $0x49] sm:$0xff] }
 0x344   : > { %4435 = vst.msk [vmem:[#allocation2 + $0x63] sm:$0xff] %vm4382_vm2, %v4356_v32  ;;  %v4142_v37 = vmax.f32 %v4106_v33, 0.0  ;;  %v10339_v39 = vpop.f32.mrb[14].mxu0  ;;  %10390 = vmatprep.mubr.msk.f32.mxu1 %vm4382_vm2, %v4510_v35  ;;  %v12758_v35 = vpop.permute.xlu1 %4293 }
 0x345   : > { %v4359_v40 = vmul.f32 %v12666_v25, %v4143_v34  ;;  %v4109_v42 = vadd.f32 %v10339_v39, %v12656_v12  ;;  %v3942_v43 = vpop.f32.mrb[15].mxu0  ;;  %10391 = vmatmul.mubr.msk.f32.gmra.mrb[8].mxu1 %vm4382_vm2, %v4511_v36  ;;  %13542 = vst [vmem:[#allocation3_spill] sm:$0xff] %v12758_v35  ;;  %v12762_v39 = vpop.permute.xlu0 %4288 }
 0x346   : > { %v4358_v45 = vmul.f32 %v12670_v28, %v4142_v37  ;;  %v4108_v46 = vadd.f32 %v12656_v12, %v3942_v43  ;;  %13543 = vst [vmem:[#allocation4_spill] sm:$0xff] %v12762_v39 }
 0x347   : > { %4438 = vst.msk [vmem:[#allocation2 + $0x7b] sm:$0xff] %vm4382_vm2, %v4359_v40  ;;  %v4145_v48 = vmax.f32 %v4109_v42, 0.0  ;;  %v4512_v49 = vld [vmem:[#allocation2 + $0x51] sm:$0xff]  ;;  %v4513_v50 = vld [vmem:[#allocation2 + $0x59] sm:$0xff] }
 0x348   : > { %4437 = vst.msk [vmem:[#allocation2 + $0x73] sm:$0xff] %vm4382_vm2, %v4358_v45  ;;  %v4144_v52 = vmax.f32 %v4108_v46, 0.0  ;;  %v10342_v53 = vpop.f32.mrb[16].mxu0  ;;  %10393 = vmatprep.mubr.msk.f32.mxu1 %vm4382_vm2, %v4512_v49 }
 0x349   : > { %v4361_v54 = vmul.f32 %v12679_v38, %v4145_v48  ;;  %v4111_v55 = vadd.f32 %v10342_v53, %v12656_v12  ;;  %v3952_v57 = vpop.f32.mrb[17].mxu0  ;;  %10394 = vmatmul.mubr.msk.f32.gmra.mrb[10].mxu1 %vm4382_vm2, %v4513_v50 }
 0x34a   : > { %v4360_v58 = vmul.f32 %v12682_v41, %v4144_v52  ;;  %v4110_v60 = vadd.f32 %v12656_v12, %v3952_v57 }
 0x34b   : > { %4440 = vst.msk [vmem:[#allocation2 + $0x8b] sm:$0xff] %vm4382_vm2, %v4361_v54  ;;  %v4147_v61 = vmax.f32 %v4111_v55, 0.0  ;;  %v4514_v62 = vld [vmem:[#allocation2 + $0x61] sm:$0xff]  ;;  %v4515_v63 = vld [vmem:[#allocation2 + $0x69] sm:$0xff] }
 0x34c   : > { %4439 = vst.msk [vmem:[#allocation2 + $0x83] sm:$0xff] %vm4382_vm2, %v4360_v58  ;;  %v4146_v14 = vmax.f32 %v4110_v60, 0.0  ;;  %v10345_v16 = vpop.f32.mrb[18].mxu0  ;;  %10396 = vmatprep.mubr.msk.f32.mxu1 %vm4382_vm2, %v4514_v62  ;;  %v12773_v58 = vpop.permute.xlu1 %4303 }
 0x34d   : > { %v4363_v18 = vmul.f32 %v12694_v56, %v4147_v61  ;;  %v4113_v19 = vadd.f32 %v10345_v16, %v12656_v12  ;;  %v3962_v20 = vpop.f32.mrb[19].mxu0  ;;  %10397 = vmatmul.mubr.msk.f32.gmra.mrb[12].mxu1 %vm4382_vm2, %v4515_v63  ;;  %13544 = vst [vmem:[#allocation5_spill] sm:$0xff] %v12773_v58  ;;  %v12777_v62 = vpop.permute.xlu0 %4298 }
 0x34e   : > { %v4362_v21 = vmul.f32 %v12698_v59, %v4146_v14  ;;  %v4112_v22 = vadd.f32 %v12656_v12, %v3962_v20  ;;  %13545 = vst [vmem:[#allocation6_spill] sm:$0xff] %v12777_v62 }
 0x34f   : > { %4442 = vst.msk [vmem:[#allocation2 + $0x9b] sm:$0xff] %vm4382_vm2, %v4363_v18  ;;  %v4149_v24 = vmax.f32 %v4113_v19, 0.0  ;;  %v4516_v26 = vld [vmem:[#allocation2 + $0x71] sm:$0xff]  ;;  %v4517_v29 = vld [vmem:[#allocation2 + $0x79] sm:$0xff] }
 0x350   : > { %4441 = vst.msk [vmem:[#allocation2 + $0x93] sm:$0xff] %vm4382_vm2, %v4362_v21  ;;  %v4148_v30 = vmax.f32 %v4112_v22, 0.0  ;;  %v10348_v31 = vpop.f32.mrb[20].mxu0  ;;  %10399 = vmatprep.mubr.msk.f32.mxu1 %vm4382_vm2, %v4516_v26 }
 0x351   : > { %v4365_v32 = vmul.f32 %v12709_v23, %v4149_v24  ;;  %v4115_v33 = vadd.f32 %v10348_v31, %v12656_v12  ;;  %v3972_v34 = vpop.f32.mrb[21].mxu0  ;;  %10400 = vmatmul.mubr.msk.f32.gmra.mrb[14].mxu1 %vm4382_vm2, %v4517_v29 }
 0x352   : > { %v4364_v36 = vmul.f32 %v12713_v27, %v4148_v30  ;;  %v4114_v37 = vadd.f32 %v12656_v12, %v3972_v34 }
 0x353   : > { %4444 = vst.msk [vmem:[#allocation2 + $0xab] sm:$0xff] %vm4382_vm2, %v4365_v32  ;;  %v4151_v40 = vmax.f32 %v4115_v33, 0.0  ;;  %v4518_v42 = vld [vmem:[#allocation2 + $0x81] sm:$0xff]  ;;  %v4519_v43 = vld [vmem:[#allocation2 + $0x89] sm:$0xff]  ;;  %v12790_v32 = vpop.permute.xlu1 %4313 }
 0x354   : > { %4443 = vst.msk [vmem:[#allocation2 + $0xa3] sm:$0xff] %vm4382_vm2, %v4364_v36  ;;  %v4150_v45 = vmax.f32 %v4114_v37, 0.0  ;;  %v10351_v46 = vpop.f32.mrb[22].mxu0  ;;  %10402 = vmatprep.mubr.msk.f32.mxu1 %vm4382_vm2, %v4518_v42  ;;  %13546 = vst [vmem:[#allocation7_spill] sm:$0xff] %v12790_v32  ;;  %v12794_v36 = vpop.permute.xlu0 %4308 }
 0x355   : > { %v4367_v48 = vmul.f32 %v12726_v44, %v4151_v40  ;;  %v4117_v49 = vadd.f32 %v10351_v46, %v12656_v12  ;;  %v3982_v50 = vpop.f32.mrb[23].mxu0  ;;  %10403 = vmatmul.mubr.msk.f32.gmra.mrb[16].mxu1 %vm4382_vm2, %v4519_v43  ;;  %13547 = vst [vmem:[#allocation8_spill] sm:$0xff] %v12794_v36 }
 0x356   : > { %v4366_v52 = vmul.f32 %v12730_v47, %v4150_v45  ;;  %v4116_v53 = vadd.f32 %v12656_v12, %v3982_v50 }
 0x357   : > { %4446 = vst.msk [vmem:[#allocation2 + $0xbb] sm:$0xff] %vm4382_vm2, %v4367_v48  ;;  %v4153_v54 = vmax.f32 %v4117_v49, 0.0  ;;  %v4520_v55 = vld [vmem:[#allocation2 + $0x91] sm:$0xff]  ;;  %v4521_v57 = vld [vmem:[#allocation2 + $0x99] sm:$0xff] }
 0x358   : > { %4445 = vst.msk [vmem:[#allocation2 + $0xb3] sm:$0xff] %vm4382_vm2, %v4366_v52  ;;  %v4152_v60 = vmax.f32 %v4116_v53, 0.0  ;;  %v10354_v61 = vpop.f32.mrb[24].mxu0  ;;  %10405 = vmatprep.mubr.msk.f32.mxu1 %vm4382_vm2, %v4520_v55 }
 0x359   : > { %v4369_v63 = vmul.f32 %v12741_v0, %v4153_v54  ;;  %v4119_v14 = vadd.f32 %v10354_v61, %v12656_v12  ;;  %v3992_v16 = vpop.f32.mrb[25].mxu0  ;;  %10406 = vmatmul.mubr.msk.f32.gmra.mrb[18].mxu1 %vm4382_vm2, %v4521_v57  ;;  %v12805_v57 = vpop.permute.xlu1 %4323 }
 0x35a   : > { %v4368_v18 = vmul.f32 %v12745_v17, %v4152_v60  ;;  %v4118_v19 = vadd.f32 %v12656_v12, %v3992_v16  ;;  %13548 = vst [vmem:[#allocation9_spill] sm:$0xff] %v12805_v57 }
 0x35b   : > { %4448 = vst.msk [vmem:[#allocation2 + $0xcb] sm:$0xff] %vm4382_vm2, %v4369_v63  ;;  %v4155_v20 = vmax.f32 %v4119_v14, 0.0  ;;  %v4522_v21 = vld [vmem:[#allocation2 + $0xa1] sm:$0xff]  ;;  %v4523_v22 = vld [vmem:[#allocation2 + $0xa9] sm:$0xff]  ;;  %v12809_v63 = vpop.permute.xlu0 %4318 }
 0x35c   : > { %4447 = vst.msk [vmem:[#allocation2 + $0xc3] sm:$0xff] %vm4382_vm2, %v4368_v18  ;;  %v4154_v24 = vmax.f32 %v4118_v19, 0.0  ;;  %v10357_v26 = vpop.f32.mrb[26].mxu0  ;;  %10408 = vmatprep.mubr.msk.f32.mxu1 %vm4382_vm2, %v4522_v21  ;;  %13549 = vst [vmem:[#allocation10_spill] sm:$0xff] %v12809_v63 }
 0x35d   : > { %v4371_v29 = vmul.f32 %v12758_v35, %v4155_v20  ;;  %v4121_v30 = vadd.f32 %v10357_v26, %v12656_v12  ;;  %v4002_v31 = vpop.f32.mrb[27].mxu0  ;;  %10409 = vmatmul.mubr.msk.f32.gmra.mrb[20].mxu1 %vm4382_vm2, %v4523_v22  ;;  %v9011_v35 = vld [vmem:[%s13525_s3 + $0xa8] sm:$0xff] }
 0x35e   : > { %v4370_v33 = vmul.f32 %v12762_v39, %v4154_v24  ;;  %v4120_v34 = vadd.f32 %v12656_v12, %v4002_v31  ;;  %v9010_v39 = vld [vmem:[%s13525_s3 + $0xa0] sm:$0xff] }
 0x35f   : > { %4450 = vst.msk [vmem:[#allocation2 + $0xdb] sm:$0xff] %vm4382_vm2, %v4371_v29  ;;  %v4157_v37 = vmax.f32 %v4121_v30, 0.0  ;;  %v4524_v40 = vld [vmem:[#allocation2 + $0xb1] sm:$0xff]  ;;  %v4525_v42 = vld [vmem:[#allocation2 + $0xb9] sm:$0xff] }
 0x360   : > { %4449 = vst.msk [vmem:[#allocation2 + $0xd3] sm:$0xff] %vm4382_vm2, %v4370_v33  ;;  %v4156_v43 = vmax.f32 %v4120_v34, 0.0  ;;  %v10360_v45 = vpop.f32.mrb[28].mxu0  ;;  %10411 = vmatprep.mubr.msk.f32.mxu1 %vm4382_vm2, %v4524_v40  ;;  %v12822_v34 = vpop.permute.xlu1 %4333 }
 0x361   : > { %v4373_v46 = vmul.f32 %v12773_v58, %v4157_v37  ;;  %v4123_v48 = vadd.f32 %v10360_v45, %v12656_v12  ;;  %v4012_v49 = vpop.f32.mrb[29].mxu0  ;;  %10412 = vmatmul.mubr.msk.f32.gmra.mrb[22].mxu1 %vm4382_vm2, %v4525_v42  ;;  %13550 = vst [vmem:[#allocation11_spill] sm:$0xff] %v12822_v34  ;;  %v12826_v42 = vpop.permute.xlu0 %4328 }
 0x362   : > { %v4372_v50 = vmul.f32 %v12777_v62, %v4156_v43  ;;  %v4122_v52 = vadd.f32 %v12656_v12, %v4012_v49  ;;  %13551 = vst [vmem:[#allocation12_spill] sm:$0xff] %v12826_v42  ;;  %v8973_v62 = vld [vmem:[%s13525_s3 + $0x98] sm:$0xff] }
 0x363   : > { %4452 = vst.msk [vmem:[#allocation2 + $0xeb] sm:$0xff] %vm4382_vm2, %v4373_v46  ;;  %v4159_v53 = vmax.f32 %v4123_v48, 0.0  ;;  %v4526_v54 = vld [vmem:[#allocation2 + $0xc1] sm:$0xff]  ;;  %v4527_v55 = vld [vmem:[#allocation2 + $0xc9] sm:$0xff] }
 0x364   : > { %4451 = vst.msk [vmem:[#allocation2 + $0xe3] sm:$0xff] %vm4382_vm2, %v4372_v50  ;;  %v4158_v60 = vmax.f32 %v4122_v52, 0.0  ;;  %v10363_v61 = vpop.f32.mrb[30].mxu0  ;;  %10414 = vmatprep.mubr.msk.f32.mxu1 %vm4382_vm2, %v4526_v54 }
 0x365   : > { %v4375_v14 = vmul.f32 %v12790_v32, %v4159_v53  ;;  %v4125_v16 = vadd.f32 %v10363_v61, %v12656_v12  ;;  %v4022_v18 = vpop.f32.mrb[31].mxu0  ;;  %10415 = vmatmul.mubr.msk.f32.gmra.mrb[24].mxu1 %vm4382_vm2, %v4527_v55  ;;  %v8972_v32 = vld [vmem:[%s13525_s3 + $0x90] sm:$0xff] }
 0x366   : > { %v4374_v19 = vmul.f32 %v12794_v36, %v4158_v60  ;;  %v4124_v20 = vadd.f32 %v12656_v12, %v4022_v18  ;;  %v10964_v58 = vpack.c.bf16 %v8973_v62, %v8972_v32  ;;  %v9013_v62 = vld [vmem:[%s13525_s3 + $0xb8] sm:$0xff] }
 0x367   : > { %4454 = vst.msk [vmem:[#allocation2 + $0xfb] sm:$0xff] %vm4382_vm2, %v4375_v14  ;;  %v4161_v21 = vmax.f32 %v4125_v16, 0.0  ;;  %v4528_v22 = vld [vmem:[#allocation2 + $0xd1] sm:$0xff]  ;;  %v4529_v24 = vld [vmem:[#allocation2 + $0xd9] sm:$0xff]  ;;  %v12837_v16 = vpop.permute.xlu1 %4343 }
 0x368   : > { %4453 = vst.msk [vmem:[#allocation2 + $0xf3] sm:$0xff] %vm4382_vm2, %v4374_v19  ;;  %v4160_v26 = vmax.f32 %v4124_v20, 0.0  ;;  %v10366_v29 = vpop.f32.mrb[32].mxu0  ;;  %10417 = vmatprep.mubr.msk.f32.mxu1 %vm4382_vm2, %v4528_v22  ;;  %13552 = vst [vmem:[#allocation13_spill] sm:$0xff] %v12837_v16  ;;  %v12841_v19 = vpop.permute.xlu0 %4338  ;;  %v6109_v32 = vld [vmem:[#allocation2 + $0x13] sm:$0xff] }
 0x369   : > { %v4377_v30 = vmul.f32 %v12805_v57, %v4161_v21  ;;  %v4127_v31 = vadd.f32 %v10366_v29, %v12656_v12  ;;  %v4032_v33 = vpop.f32.mrb[33].mxu0  ;;  %10418 = vmatmul.mubr.msk.f32.gmra.mrb[26].mxu1 %vm4382_vm2, %v4529_v24  ;;  %13553 = vst [vmem:[#allocation14_spill] sm:$0xff] %v12841_v19  ;;  %v4462_v29 = vld [vmem:[#allocation2] sm:$0xff] }
 0x36a   : > { %v4376_v37 = vmul.f32 %v12809_v63, %v4160_v26  ;;  %v4126_v40 = vadd.f32 %v12656_v12, %v4032_v33  ;;  %v4463_v33 = vld [vmem:[#allocation2 + $0x8] sm:$0xff] }
 0x36b   : > { %4456 = vst.msk [vmem:[#allocation2 + $0x10b] sm:$0xff] %vm4382_vm2, %v4377_v30  ;;  %v4163_v43 = vmax.f32 %v4127_v31, 0.0  ;;  %v4530_v45 = vld [vmem:[#allocation2 + $0xe1] sm:$0xff]  ;;  %v4531_v46 = vld [vmem:[#allocation2 + $0xe9] sm:$0xff]  ;;  %v8893_v31 = vld [vmem:[%s13525_s3 + $0x58] sm:$0xff] }
 0x36c   : > { %4455 = vst.msk [vmem:[#allocation2 + $0x103] sm:$0xff] %vm4382_vm2, %v4376_v37  ;;  %v4162_v48 = vmax.f32 %v4126_v40, 0.0  ;;  %v10369_v49 = vpop.f32.mrb[34].mxu0  ;;  %10420 = vmatprep.mubr.msk.f32.mxu1 %vm4382_vm2, %v4530_v45  ;;  %v8892_v30 = vld [vmem:[%s13525_s3 + $0x50] sm:$0xff]  ;;  %v8930_v40 = vld [vmem:[%s13525_s3 + $0x60] sm:$0xff] }
 0x36d   : > { %v4379_v50 = vmul.f32 %v12822_v34, %v4163_v43  ;;  %v4129_v52 = vadd.f32 %v10369_v49, %v12656_v12  ;;  %v4042_v53 = vpop.f32.mrb[35].mxu0  ;;  %10421 = vmatmul.mubr.msk.f32.gmra.mrb[28].mxu1 %vm4382_vm2, %v4531_v46  ;;  %v10948_v37 = vpack.c.bf16 %v8893_v31, %v8892_v30  ;;  %v8931_v43 = vld [vmem:[%s13525_s3 + $0x68] sm:$0xff]  ;;  %v4464_v45 = vld [vmem:[#allocation2 + $0x10] sm:$0xff]  ;;  %v4466_v49 = vld [vmem:[#allocation2 + $0x20] sm:$0xff] }
 0x36e   : > { %v4378_v54 = vmul.f32 %v12826_v42, %v4162_v48  ;;  %v4128_v55 = vadd.f32 %v12656_v12, %v4042_v53  ;;  %v12868_v46 = vpack.c.bf16 %v8931_v43, %v8930_v40  ;;  %v4465_v48 = vld [vmem:[#allocation2 + $0x18] sm:$0xff]  ;;  %v4470_v53 = vld [vmem:[#allocation2 + $0x40] sm:$0xff]  ;;  %v4484_v30 = vld [vmem:[#allocation2 + $0xb0] sm:$0xff] }
 0x36f   : > { %4458 = vst.msk [vmem:[#allocation2 + $0x11b] sm:$0xff] %vm4382_vm2, %v4379_v50  ;;  %v4165_v60 = vmax.f32 %v4129_v52, 0.0  ;;  %v4532_v61 = vld [vmem:[#allocation2 + $0xf1] sm:$0xff]  ;;  %v4533_v14 = vld [vmem:[#allocation2 + $0xf9] sm:$0xff]  ;;  %v4467_v50 = vld [vmem:[#allocation2 + $0x28] sm:$0xff] }
 0x370   : > { %4457 = vst.msk [vmem:[#allocation2 + $0x113] sm:$0xff] %vm4382_vm2, %v4378_v54  ;;  %v4164_v18 = vmax.f32 %v4128_v55, 0.0  ;;  %10423 = vmatprep.mubr.msk.f32.mxu1 %vm4382_vm2, %v4532_v61  ;;  %v4468_v52 = vld [vmem:[#allocation2 + $0x30] sm:$0xff]  ;;  %v4471_v54 = vld [vmem:[#allocation2 + $0x48] sm:$0xff]  ;;  %v4474_v61 = vld [vmem:[#allocation2 + $0x60] sm:$0xff] }
 0x371   : > { %v4381_v20 = vmul.f32 %v12837_v16, %v4165_v60  ;;  %10424 = vmatmul.mubr.msk.f32.gmra.mrb[30].mxu1 %vm4382_vm2, %v4533_v14  ;;  %v4472_v55 = vld [vmem:[#allocation2 + $0x50] sm:$0xff]  ;;  %v4473_v60 = vld [vmem:[#allocation2 + $0x58] sm:$0xff]  ;;  %v4475_v14 = vld [vmem:[#allocation2 + $0x68] sm:$0xff] }
 0x372   : > { %v4380_v12 = vmul.f32 %v12841_v19, %v4164_v18  ;;  %v4476_v18 = vld [vmem:[#allocation2 + $0x70] sm:$0xff]  ;;  %v4485_v31 = vld [vmem:[#allocation2 + $0xb8] sm:$0xff]  ;;  %v5277_v51 = vld [vmem:[#allocation2 + $0xe2] sm:$0xff] }
 0x373   : > { %4461 = vst.msk [vmem:[#allocation2 + $0x12b] sm:$0x3f] %vm4460_vm3, %v4381_v20  ;;  %v4534_v21 = vld [vmem:[#allocation2 + $0x101] sm:$0xff]  ;;  %v4535_v22 = vld [vmem:[#allocation2 + $0x109] sm:$0xff]  ;;  %v4477_v20 = vld [vmem:[#allocation2 + $0x78] sm:$0xff] }
 0x374   : > { %4459 = vst.msk [vmem:[#allocation2 + $0x123] sm:$0xff] %vm4382_vm2, %v4380_v12  ;;  %10426 = vmatprep.mubr.msk.f32.mxu1 %vm4382_vm2, %v4534_v21  ;;  %v4478_v12 = vld [vmem:[#allocation2 + $0x80] sm:$0xff]  ;;  %v4479_v21 = vld [vmem:[#allocation2 + $0x88] sm:$0xff]  ;;  %v4488_v40 = vld [vmem:[#allocation2 + $0xd0] sm:$0xff] }
 0x375   : > { %10427 = vmatmul.mubr.msk.f32.gmra.mrb[32].mxu1 %vm4382_vm2, %v4535_v22  ;;  %v4480_v22 = vld [vmem:[#allocation2 + $0x90] sm:$0xff]  ;;  %v4489_v43 = vld [vmem:[#allocation2 + $0xd8] sm:$0xff]  ;;  %v5281_v34 = vld [vmem:[#allocation2 + $0x102] sm:$0xff] }
 0x376   : > { %v5278_v19 = vld [vmem:[#allocation2 + $0xea] sm:$0xff]  ;;  %v5279_v16 = vld [vmem:[#allocation2 + $0xf2] sm:$0xff]  ;;  %v5280_v42 = vld [vmem:[#allocation2 + $0xfa] sm:$0xff] }
 0x377   : > { %v4536_v24 = vld [vmem:[#allocation2 + $0x111] sm:$0xff]  ;;  %v4537_v26 = vld [vmem:[#allocation2 + $0x119] sm:$0x3f] }
 0x378   : > { %10429 = vmatprep.mubr.msk.f32.mxu1 %vm4382_vm2, %v4536_v24  ;;  %v4481_v24 = vld [vmem:[#allocation2 + $0x98] sm:$0xff]  ;;  %v5282_v63 = vld [vmem:[#allocation2 + $0x10a] sm:$0xff] }
 0x379   : > { %10430 = vmatmul.mubr.msk.f32.gmra.mrb[34].mxu1 %vm4382_vm2, %v4537_v26  ;;  %v4482_v26 = vld [vmem:[#allocation2 + $0xa0] sm:$0xff]  ;;  %v5283_v57 = vld [vmem:[#allocation2 + $0x112] sm:$0xff]  ;;  %v5284_v36 = vld [vmem:[#allocation2 + $0x11a] sm:$0x3f] }
 0x37a   : > { %10440 = vmatprep.mubr.msk.f32.mxu1 %vm4382_vm2, %v4462_v29  ;;  %v4483_v29 = vld [vmem:[#allocation2 + $0xa8] sm:$0xff] }
 0x37d   : > { %10441 = vmatmul.mubr.msk.f32.vlgmr.msra.gmra.mrb[0].mxu1 %vm4382_vm2, %v4463_v33  ;;  %v4486_v33 = vld [vmem:[#allocation2 + $0xc0] sm:$0xff] }
 0x37e   : > { %10947 = vmatpush3.bf16.msra.mxu1 %v12630_v1  ;;  %10443 = vmatprep.mubr.msk.f32.mxu1 %vm4382_vm2, %v4464_v45  ;;  %v4469_v1 = vld [vmem:[#allocation2 + $0x38] sm:$0xff]  ;;  %v4490_v45 = vld [vmem:[#allocation2 + $0xe0] sm:$0xff] }
 0x37f   : > { %10949 = vmatprep.subr.bf16.mxu1 %v10948_v37 }
 0x381   : > { %10444 = vmatmul.mubr.msk.f32.gmra.mrb[2].mxu1 %vm4382_vm2, %v4465_v48  ;;  %v4491_v48 = vld [vmem:[#allocation2 + $0xe8] sm:$0xff] }
 0x382   : > { %10446 = vmatprep.mubr.msk.f32.mxu1 %vm4382_vm2, %v4466_v49  ;;  %10951 = vmatpush3.bf16.msra.mxu1 %v10948_v37  ;;  %v4487_v37 = vld [vmem:[#allocation2 + $0xc8] sm:$0xff]  ;;  %v4492_v49 = vld [vmem:[#allocation2 + $0xf0] sm:$0xff] }
 0x383   : > { %10953 = vmatprep.subr.bf16.mxu1 %v12868_v46 }
 0x385   : > { %10447 = vmatmul.mubr.msk.f32.gmra.mrb[4].mxu1 %vm4382_vm2, %v4467_v50  ;;  %v4493_v50 = vld [vmem:[#allocation2 + $0xf8] sm:$0xff] }
 0x386   : > { %10449 = vmatprep.mubr.msk.f32.mxu1 %vm4382_vm2, %v4468_v52  ;;  %v4494_v52 = vld [vmem:[#allocation2 + $0x100] sm:$0xff] }
 0x389   : > { %10450 = vmatmul.mubr.msk.f32.gmra.mrb[6].mxu1 %vm4382_vm2, %v4469_v1  ;;  %v4495_v1 = vld [vmem:[#allocation2 + $0x108] sm:$0xff] }
 0x38a   : > { %10452 = vmatprep.mubr.msk.f32.mxu1 %vm4382_vm2, %v4470_v53  ;;  %v4496_v53 = vld [vmem:[#allocation2 + $0x110] sm:$0xff] }
 0x38d   : > { %10453 = vmatmul.mubr.msk.f32.gmra.mrb[8].mxu1 %vm4382_vm2, %v4471_v54  ;;  %v5249_v54 = vld [vmem:[#allocation2 + $0x2] sm:$0xff] }
 0x38e   : > { %10455 = vmatprep.mubr.msk.f32.mxu1 %vm4382_vm2, %v4472_v55  ;;  %v4497_v55 = vld [vmem:[#allocation2 + $0x118] sm:$0x3f] }
 0x391   : > { %10456 = vmatmul.mubr.msk.f32.gmra.mrb[10].mxu1 %vm4382_vm2, %v4473_v60  ;;  %v8932_v60 = vld [vmem:[%s13525_s3 + $0x70] sm:$0xff] }
 0x392   : > { %10458 = vmatprep.mubr.msk.f32.mxu1 %vm4382_vm2, %v4474_v61  ;;  %v8933_v61 = vld [vmem:[%s13525_s3 + $0x78] sm:$0xff] }
 0x395   : > { %10459 = vmatmul.mubr.msk.f32.gmra.mrb[12].mxu1 %vm4382_vm2, %v4475_v14  ;;  %v5250_v14 = vld [vmem:[#allocation2 + $0xa] sm:$0xff] }
 0x396   : > { %10461 = vmatprep.mubr.msk.f32.mxu1 %vm4382_vm2, %v4476_v18  ;;  %v10956_v18 = vpack.c.bf16 %v8933_v61, %v8932_v60  ;;  %v5271_v60 = vld [vmem:[#allocation2 + $0xb2] sm:$0xff]  ;;  %v5272_v61 = vld [vmem:[#allocation2 + $0xba] sm:$0xff] }
 0x399   : > { %10462 = vmatmul.mubr.msk.f32.gmra.mrb[14].mxu1 %vm4382_vm2, %v4477_v20  ;;  %v8970_v20 = vld [vmem:[%s13525_s3 + $0x80] sm:$0xff] }
 0x39a   : > { %10464 = vmatprep.mubr.msk.f32.mxu1 %vm4382_vm2, %v4478_v12  ;;  %v8971_v12 = vld [vmem:[%s13525_s3 + $0x88] sm:$0xff] }
 0x39d   : > { %10465 = vmatmul.mubr.msk.f32.gmra.mrb[16].mxu1 %vm4382_vm2, %v4479_v21  ;;  %v12918_v21 = vld [vmem:[#allocation2 + $0x12] sm:$0xff] }
 0x39e   : > { %10467 = vmatprep.mubr.msk.f32.mxu1 %vm4382_vm2, %v4480_v22  ;;  %v12923_v22 = vpack.c.bf16 %v8971_v12, %v8970_v20  ;;  %v5275_v20 = vld [vmem:[#allocation2 + $0xd2] sm:$0xff]  ;;  %v5276_v12 = vld [vmem:[#allocation2 + $0xda] sm:$0xff] }
 0x3a1   : > { %10468 = vmatmul.mubr.msk.f32.gmra.mrb[18].mxu1 %vm4382_vm2, %v4481_v24  ;;  %v12925_v24 = vld [vmem:[#allocation2 + $0x1a] sm:$0xff] }
 0x3a2   : > { %10470 = vmatprep.mubr.msk.f32.mxu1 %vm4382_vm2, %v4482_v26  ;;  %v12929_v26 = vld [vmem:[#allocation2 + $0x22] sm:$0xff] }
 0x3a5   : > { %10471 = vmatmul.mubr.msk.f32.gmra.mrb[20].mxu1 %vm4382_vm2, %v4483_v29  ;;  %v12938_v29 = vld [vmem:[#allocation2 + $0x32] sm:$0xff] }
 0x3a6   : > { %10473 = vmatprep.mubr.msk.f32.mxu1 %vm4382_vm2, %v4484_v30  ;;  %v12942_v30 = vld [vmem:[#allocation2 + $0x3a] sm:$0xff] }
 0x3a9   : > { %10474 = vmatmul.mubr.msk.f32.gmra.mrb[22].mxu1 %vm4382_vm2, %v4485_v31  ;;  %v12946_v31 = vld [vmem:[#allocation2 + $0x42] sm:$0xff] }
 0x3aa   : > { %10476 = vmatprep.mubr.msk.f32.mxu1 %vm4382_vm2, %v4486_v33  ;;  %v12950_v33 = vld [vmem:[#allocation2 + $0x4a] sm:$0xff] }
 0x3ad   : > { %10477 = vmatmul.mubr.msk.f32.gmra.mrb[24].mxu1 %vm4382_vm2, %v4487_v37  ;;  %v12954_v37 = vld [vmem:[#allocation2 + $0x52] sm:$0xff] }
 0x3ae   : > { %10479 = vmatprep.mubr.msk.f32.mxu1 %vm4382_vm2, %v4488_v40  ;;  %v12958_v40 = vld [vmem:[#allocation2 + $0x5a] sm:$0xff] }
 0x3b1   : > { %10480 = vmatmul.mubr.msk.f32.gmra.mrb[26].mxu1 %vm4382_vm2, %v4489_v43  ;;  %v12962_v43 = vld [vmem:[#allocation2 + $0x62] sm:$0xff] }
 0x3b2   : > { %10482 = vmatprep.mubr.msk.f32.mxu1 %vm4382_vm2, %v4490_v45  ;;  %v12966_v45 = vld [vmem:[#allocation2 + $0x6a] sm:$0xff] }
 0x3b5   : > { %10483 = vmatmul.mubr.msk.f32.gmra.mrb[28].mxu1 %vm4382_vm2, %v4491_v48  ;;  %v12970_v48 = vld [vmem:[#allocation2 + $0x72] sm:$0xff] }
 0x3b6   : > { %10485 = vmatprep.mubr.msk.f32.mxu1 %vm4382_vm2, %v4492_v49  ;;  %v12974_v49 = vld [vmem:[#allocation2 + $0x7a] sm:$0xff] }
 0x3b9   : > { %10486 = vmatmul.mubr.msk.f32.gmra.mrb[30].mxu1 %vm4382_vm2, %v4493_v50  ;;  %v12978_v50 = vld [vmem:[#allocation2 + $0x82] sm:$0xff] }
 0x3ba   : > { %10488 = vmatprep.mubr.msk.f32.mxu1 %vm4382_vm2, %v4494_v52  ;;  %v12982_v52 = vld [vmem:[#allocation2 + $0x8a] sm:$0xff] }
 0x3bd   : > { %10489 = vmatmul.mubr.msk.f32.gmra.mrb[32].mxu1 %vm4382_vm2, %v4495_v1  ;;  %v5267_v1 = vld [vmem:[#allocation2 + $0x92] sm:$0xff] }
 0x3be   : > { %10491 = vmatprep.mubr.msk.f32.mxu1 %vm4382_vm2, %v4496_v53  ;;  %v5268_v53 = vld [vmem:[#allocation2 + $0x9a] sm:$0xff] }
 0x3c1   : > { %10492 = vmatmul.mubr.msk.f32.gmra.mrb[34].mxu1 %vm4382_vm2, %v4497_v55  ;;  %v5270_v55 = vld [vmem:[#allocation2 + $0xaa] sm:$0xff] }
 0x3c2   : > { %10502 = vmatprep.mubr.msk.f32.mxu1 %vm4382_vm2, %v5249_v54  ;;  %v5269_v54 = vld [vmem:[#allocation2 + $0xa2] sm:$0xff] }
 0x3c5   : > { %10503 = vmatmul.mubr.msk.f32.vlgmr.msra.gmra.mrb[0].mxu1 %vm4382_vm2, %v5250_v14  ;;  %v5273_v14 = vld [vmem:[#allocation2 + $0xc2] sm:$0xff] }
 0x3c6   : > { %10955 = vmatpush3.bf16.msra.mxu1 %v12868_v46  ;;  %10505 = vmatprep.mubr.msk.f32.mxu1 %vm4382_vm2, %v12918_v21  ;;  %v12934_v46 = vld [vmem:[#allocation2 + $0x2a] sm:$0xff] }
 0x3c7   : > { %10957 = vmatprep.subr.bf16.mxu1 %v10956_v18 }
 0x3c9   : > { %10506 = vmatmul.mubr.msk.f32.gmra.mrb[2].mxu1 %vm4382_vm2, %v12925_v24 }
 0x3ca   : > { %10508 = vmatprep.mubr.msk.f32.mxu1 %vm4382_vm2, %v12929_v26  ;;  %10959 = vmatpush3.bf16.msra.mxu1 %v10956_v18  ;;  %v5274_v18 = vld [vmem:[#allocation2 + $0xca] sm:$0xff] }
 0x3cb   : > { %10961 = vmatprep.subr.bf16.mxu1 %v12923_v22 }
 0x3cd   : > { %10509 = vmatmul.mubr.msk.f32.gmra.mrb[4].mxu1 %vm4382_vm2, %v12934_v46 }
 0x3ce   : > { %10511 = vmatprep.mubr.msk.f32.mxu1 %vm4382_vm2, %v12938_v29 }
 0x3d1   : > { %10512 = vmatmul.mubr.msk.f32.gmra.mrb[6].mxu1 %vm4382_vm2, %v12942_v30 }
 0x3d2   : > { %10514 = vmatprep.mubr.msk.f32.mxu1 %vm4382_vm2, %v12946_v31 }
 0x3d5   : > { %10515 = vmatmul.mubr.msk.f32.gmra.mrb[8].mxu1 %vm4382_vm2, %v12950_v33 }
 0x3d6   : > { %10517 = vmatprep.mubr.msk.f32.mxu1 %vm4382_vm2, %v12954_v37 }
 0x3d9   : > { %10518 = vmatmul.mubr.msk.f32.gmra.mrb[10].mxu1 %vm4382_vm2, %v12958_v40 }
 0x3da   : > { %10520 = vmatprep.mubr.msk.f32.mxu1 %vm4382_vm2, %v12962_v43 }
 0x3dd   : > { %10521 = vmatmul.mubr.msk.f32.gmra.mrb[12].mxu1 %vm4382_vm2, %v12966_v45 }
 0x3de   : > { %10523 = vmatprep.mubr.msk.f32.mxu1 %vm4382_vm2, %v12970_v48 }
 0x3e1   : > { %10524 = vmatmul.mubr.msk.f32.gmra.mrb[14].mxu1 %vm4382_vm2, %v12974_v49 }
 0x3e2   : > { %10526 = vmatprep.mubr.msk.f32.mxu1 %vm4382_vm2, %v12978_v50 }
 0x3e5   : > { %10527 = vmatmul.mubr.msk.f32.gmra.mrb[16].mxu1 %vm4382_vm2, %v12982_v52 }
 0x3e6   : > { %10529 = vmatprep.mubr.msk.f32.mxu1 %vm4382_vm2, %v5267_v1 }
 0x3e9   : > { %10530 = vmatmul.mubr.msk.f32.gmra.mrb[18].mxu1 %vm4382_vm2, %v5268_v53 }
 0x3ea   : > { %10532 = vmatprep.mubr.msk.f32.mxu1 %vm4382_vm2, %v5269_v54 }
 0x3ed   : > { %10533 = vmatmul.mubr.msk.f32.gmra.mrb[20].mxu1 %vm4382_vm2, %v5270_v55 }
 0x3ee   : > { %10535 = vmatprep.mubr.msk.f32.mxu1 %vm4382_vm2, %v5271_v60 }
 0x3f1   : > { %10536 = vmatmul.mubr.msk.f32.gmra.mrb[22].mxu1 %vm4382_vm2, %v5272_v61 }
 0x3f2   : > { %10538 = vmatprep.mubr.msk.f32.mxu1 %vm4382_vm2, %v5273_v14 }
 0x3f5   : > { %10539 = vmatmul.mubr.msk.f32.gmra.mrb[24].mxu1 %vm4382_vm2, %v5274_v18 }
 0x3f6   : > { %10541 = vmatprep.mubr.msk.f32.mxu1 %vm4382_vm2, %v5275_v20 }
 0x3f9   : > { %10542 = vmatmul.mubr.msk.f32.gmra.mrb[26].mxu1 %vm4382_vm2, %v5276_v12 }
 0x3fa   : > { %10544 = vmatprep.mubr.msk.f32.mxu1 %vm4382_vm2, %v5277_v51 }
 0x3fd   : > { %10545 = vmatmul.mubr.msk.f32.gmra.mrb[28].mxu1 %vm4382_vm2, %v5278_v19 }
 0x3fe   : > { %10547 = vmatprep.mubr.msk.f32.mxu1 %vm4382_vm2, %v5279_v16 }
 0x401   : > { %10548 = vmatmul.mubr.msk.f32.gmra.mrb[30].mxu1 %vm4382_vm2, %v5280_v42 }
 0x402   : > { %10550 = vmatprep.mubr.msk.f32.mxu1 %vm4382_vm2, %v5281_v34 }
 0x405   : > { %10551 = vmatmul.mubr.msk.f32.gmra.mrb[32].mxu1 %vm4382_vm2, %v5282_v63 }
 0x406   : > { %10553 = vmatprep.mubr.msk.f32.mxu1 %vm4382_vm2, %v5283_v57 }
 0x409   : > { %10554 = vmatmul.mubr.msk.f32.gmra.mrb[34].mxu1 %vm4382_vm2, %v5284_v36  ;;  %v10968_v36 = vpack.c.bf16 %v9011_v35, %v9010_v39  ;;  %v5712_v35 = vld [vmem:[#allocation2 + $0x11a] sm:$0xff]  ;;  %v5713_v39 = vld [vmem:[#allocation2 + $0x122] sm:$0xff] }
 0x40a   : > { %10564 = vmatprep.mubr.msk.f32.mxu1 %vm4382_vm2, %v12918_v21  ;;  %v6112_v21 = vld [vmem:[#allocation2 + $0x2b] sm:$0xff] }
 0x40d   : > { %10565 = vmatmul.mubr.msk.f32.vlgmr.msra.gmra.mrb[0].mxu1 %vm4382_vm2, %v12925_v24  ;;  %v6114_v24 = vld [vmem:[#allocation2 + $0x3b] sm:$0xff] }
 0x40e   : > { %10963 = vmatpush3.bf16.msra.mxu1 %v12923_v22  ;;  %10567 = vmatprep.mubr.msk.f32.mxu1 %vm4382_vm2, %v12929_v26  ;;  %v6113_v22 = vld [vmem:[#allocation2 + $0x33] sm:$0xff]  ;;  %v6115_v26 = vld [vmem:[#allocation2 + $0x43] sm:$0xff] }
 0x40f   : > { %10965 = vmatprep.subr.bf16.mxu1 %v10964_v58 }
 0x411   : > { %10568 = vmatmul.mubr.msk.f32.gmra.mrb[2].mxu1 %vm4382_vm2, %v12934_v46  ;;  %v6116_v46 = vld [vmem:[#allocation2 + $0x4b] sm:$0xff] }
 0x412   : > { %10570 = vmatprep.mubr.msk.f32.mxu1 %vm4382_vm2, %v12938_v29  ;;  %10967 = vmatpush3.bf16.msra.mxu1 %v10964_v58  ;;  %v5714_v58 = vld [vmem:[#allocation2 + $0x12a] sm:$0x3f]  ;;  %v6117_v29 = vld [vmem:[#allocation2 + $0x53] sm:$0xff] }
 0x413   : > { %10969 = vmatprep.subr.bf16.mxu1 %v10968_v36 }
 0x415   : > { %10571 = vmatmul.mubr.msk.f32.gmra.mrb[4].mxu1 %vm4382_vm2, %v12942_v30  ;;  %v6118_v30 = vld [vmem:[#allocation2 + $0x5b] sm:$0xff] }
 0x416   : > { %10573 = vmatprep.mubr.msk.f32.mxu1 %vm4382_vm2, %v12946_v31  ;;  %v6119_v31 = vld [vmem:[#allocation2 + $0x63] sm:$0xff] }
 0x419   : > { %10574 = vmatmul.mubr.msk.f32.gmra.mrb[6].mxu1 %vm4382_vm2, %v12950_v33  ;;  %v6120_v33 = vld [vmem:[#allocation2 + $0x6b] sm:$0xff] }
 0x41a   : > { %10576 = vmatprep.mubr.msk.f32.mxu1 %vm4382_vm2, %v12954_v37  ;;  %v6121_v37 = vld [vmem:[#allocation2 + $0x73] sm:$0xff] }
 0x41d   : > { %10577 = vmatmul.mubr.msk.f32.gmra.mrb[8].mxu1 %vm4382_vm2, %v12958_v40  ;;  %v6122_v40 = vld [vmem:[#allocation2 + $0x7b] sm:$0xff] }
 0x41e   : > { %10579 = vmatprep.mubr.msk.f32.mxu1 %vm4382_vm2, %v12962_v43  ;;  %v6123_v43 = vld [vmem:[#allocation2 + $0x83] sm:$0xff] }
 0x421   : > { %10580 = vmatmul.mubr.msk.f32.gmra.mrb[10].mxu1 %vm4382_vm2, %v12966_v45  ;;  %v6124_v45 = vld [vmem:[#allocation2 + $0x8b] sm:$0xff] }
 0x422   : > { %10582 = vmatprep.mubr.msk.f32.mxu1 %vm4382_vm2, %v12970_v48  ;;  %v6125_v48 = vld [vmem:[#allocation2 + $0x93] sm:$0xff] }
 0x425   : > { %10583 = vmatmul.mubr.msk.f32.gmra.mrb[12].mxu1 %vm4382_vm2, %v12974_v49  ;;  %v6126_v49 = vld [vmem:[#allocation2 + $0x9b] sm:$0xff] }
 0x426   : > { %10585 = vmatprep.mubr.msk.f32.mxu1 %vm4382_vm2, %v12978_v50  ;;  %v6127_v50 = vld [vmem:[#allocation2 + $0xa3] sm:$0xff] }
 0x429   : > { %10586 = vmatmul.mubr.msk.f32.gmra.mrb[14].mxu1 %vm4382_vm2, %v12982_v52  ;;  %v6128_v52 = vld [vmem:[#allocation2 + $0xab] sm:$0xff] }
 0x42a   : > { %10588 = vmatprep.mubr.msk.f32.mxu1 %vm4382_vm2, %v5267_v1  ;;  %v6129_v1 = vld [vmem:[#allocation2 + $0xb3] sm:$0xff] }
 0x42d   : > { %10589 = vmatmul.mubr.msk.f32.gmra.mrb[16].mxu1 %vm4382_vm2, %v5268_v53  ;;  %v6130_v53 = vld [vmem:[#allocation2 + $0xbb] sm:$0xff] }
 0x42e   : > { %10591 = vmatprep.mubr.msk.f32.mxu1 %vm4382_vm2, %v5269_v54  ;;  %v6131_v54 = vld [vmem:[#allocation2 + $0xc3] sm:$0xff] }
 0x431   : > { %10592 = vmatmul.mubr.msk.f32.gmra.mrb[18].mxu1 %vm4382_vm2, %v5270_v55  ;;  %v6132_v55 = vld [vmem:[#allocation2 + $0xcb] sm:$0xff] }
 0x432   : > { %10594 = vmatprep.mubr.msk.f32.mxu1 %vm4382_vm2, %v5271_v60  ;;  %v6133_v60 = vld [vmem:[#allocation2 + $0xd3] sm:$0xff] }
 0x435   : > { %10595 = vmatmul.mubr.msk.f32.gmra.mrb[20].mxu1 %vm4382_vm2, %v5272_v61  ;;  %v6134_v61 = vld [vmem:[#allocation2 + $0xdb] sm:$0xff] }
 0x436   : > { %10597 = vmatprep.mubr.msk.f32.mxu1 %vm4382_vm2, %v5273_v14  ;;  %v6135_v14 = vld [vmem:[#allocation2 + $0xe3] sm:$0xff] }
 0x439   : > { %10598 = vmatmul.mubr.msk.f32.gmra.mrb[22].mxu1 %vm4382_vm2, %v5274_v18  ;;  %v6136_v18 = vld [vmem:[#allocation2 + $0xeb] sm:$0xff] }
 0x43a   : > { %10600 = vmatprep.mubr.msk.f32.mxu1 %vm4382_vm2, %v5275_v20  ;;  %v6137_v20 = vld [vmem:[#allocation2 + $0xf3] sm:$0xff] }
 0x43d   : > { %10601 = vmatmul.mubr.msk.f32.gmra.mrb[24].mxu1 %vm4382_vm2, %v5276_v12  ;;  %v6138_v12 = vld [vmem:[#allocation2 + $0xfb] sm:$0xff] }
 0x43e   : > { %10603 = vmatprep.mubr.msk.f32.mxu1 %vm4382_vm2, %v5277_v51  ;;  %v9012_v51 = vld [vmem:[%s13525_s3 + $0xb0] sm:$0xff] }
 0x441   : > { %10604 = vmatmul.mubr.msk.f32.gmra.mrb[26].mxu1 %vm4382_vm2, %v5278_v19 }
 0x442   : > { %10606 = vmatprep.mubr.msk.f32.mxu1 %vm4382_vm2, %v5279_v16  ;;  %v6111_v16 = vld [vmem:[#allocation2 + $0x23] sm:$0xff] }
 0x445   : > { %10607 = vmatmul.mubr.msk.f32.gmra.mrb[28].mxu1 %vm4382_vm2, %v5280_v42  ;;  %v9051_v42 = vld [vmem:[%s13525_s3 + $0xc8] sm:$0xff] }
 0x446   : > { %10609 = vmatprep.mubr.msk.f32.mxu1 %vm4382_vm2, %v5281_v34  ;;  %v9050_v34 = vld [vmem:[%s13525_s3 + $0xc0] sm:$0xff] }
 0x447   : > { %v13084_v19 = vpack.c.bf16 %v9051_v42, %v9050_v34  ;;  %v6540_v42 = vld [vmem:[#allocation2 + $0x1c] sm:$0xff] }
 0x449   : > { %10610 = vmatmul.mubr.msk.f32.gmra.mrb[30].mxu1 %vm4382_vm2, %v5282_v63  ;;  %v6110_v63 = vld [vmem:[#allocation2 + $0x1b] sm:$0xff] }
 0x44a   : > { %10612 = vmatprep.mubr.msk.f32.mxu1 %vm4382_vm2, %v5283_v57  ;;  %v10972_v57 = vpack.c.bf16 %v9013_v62, %v9012_v51  ;;  %v6143_v51 = vld [vmem:[#allocation2 + $0x123] sm:$0xff]  ;;  %v6144_v62 = vld [vmem:[#allocation2 + $0x12b] sm:$0x3f] }
 0x44d   : > { %10613 = vmatmul.mubr.msk.f32.gmra.mrb[32].mxu1 %vm4382_vm2, %v5712_v35  ;;  %v6140_v35 = vld [vmem:[#allocation2 + $0x10b] sm:$0xff] }
 0x44e   : > { %10615 = vmatprep.mubr.msk.f32.mxu1 %vm4382_vm2, %v5713_v39  ;;  %v6141_v39 = vld [vmem:[#allocation2 + $0x113] sm:$0xff] }
 0x451   : > { %10616 = vmatmul.mubr.msk.f32.gmra.mrb[34].mxu1 %vm4382_vm2, %v5714_v58  ;;  %v6142_v58 = vld [vmem:[#allocation2 + $0x11b] sm:$0xff] }
 0x452   : > { %10626 = vmatprep.mubr.msk.f32.mxu1 %vm4382_vm2, %v6109_v32  ;;  %v9052_v32 = vld [vmem:[%s13525_s3 + $0xd0] sm:$0xff] }
 0x455   : > { %10627 = vmatmul.mubr.msk.f32.vlgmr.msra.gmra.mrb[0].mxu1 %vm4382_vm2, %v6110_v63  ;;  %v6539_v63 = vld [vmem:[#allocation2 + $0x14] sm:$0xff] }
 0x456   : > { %10971 = vmatpush3.bf16.msra.mxu1 %v10968_v36  ;;  %10629 = vmatprep.mubr.msk.f32.mxu1 %vm4382_vm2, %v6111_v16  ;;  %v6139_v36 = vld [vmem:[#allocation2 + $0x103] sm:$0xff] }
 0x457   : > { %10973 = vmatprep.subr.bf16.mxu1 %v10972_v57  ;;  %v9090_v16 = vld [vmem:[%s13525_s3 + $0xe0] sm:$0xff] }
 0x459   : > { %10630 = vmatmul.mubr.msk.f32.gmra.mrb[2].mxu1 %vm4382_vm2, %v6112_v21  ;;  %v9091_v21 = vld [vmem:[%s13525_s3 + $0xe8] sm:$0xff] }
 0x45a   : > { %10632 = vmatprep.mubr.msk.f32.mxu1 %vm4382_vm2, %v6113_v22  ;;  %10975 = vmatpush3.bf16.msra.mxu1 %v10972_v57  ;;  %v9053_v57 = vld [vmem:[%s13525_s3 + $0xd8] sm:$0xff]  ;;  %v13134_v22 = vld [vmem:[#allocation2 + $0x24] sm:$0xff] }
 0x45b   : > { %10977 = vmatprep.subr.bf16.mxu1 %v13084_v19  ;;  %v10980_v34 = vpack.c.bf16 %v9053_v57, %v9052_v32  ;;  %v6572_v32 = vld [vmem:[#allocation2 + $0x11c] sm:$0xff]  ;;  %v6573_v57 = vld [vmem:[#allocation2 + $0x124] sm:$0xff] }
 0x45d   : > { %10633 = vmatmul.mubr.msk.f32.gmra.mrb[4].mxu1 %vm4382_vm2, %v6114_v24  ;;  %v13139_v24 = vpack.c.bf16 %v9091_v21, %v9090_v16  ;;  %v9130_v21 = vld [vmem:[%s13525_s3 + $0x100] sm:$0xff] }
 0x45e   : > { %10635 = vmatprep.mubr.msk.f32.mxu1 %vm4382_vm2, %v6115_v26  ;;  %v13141_v26 = vld [vmem:[#allocation2 + $0x2c] sm:$0xff] }
 0x461   : > { %10636 = vmatmul.mubr.msk.f32.gmra.mrb[6].mxu1 %vm4382_vm2, %v6116_v46  ;;  %v13145_v46 = vld [vmem:[#allocation2 + $0x34] sm:$0xff] }
 0x462   : > { %10638 = vmatprep.mubr.msk.f32.mxu1 %vm4382_vm2, %v6117_v29  ;;  %v13154_v29 = vld [vmem:[#allocation2 + $0x44] sm:$0xff] }
 0x465   : > { %10639 = vmatmul.mubr.msk.f32.gmra.mrb[8].mxu1 %vm4382_vm2, %v6118_v30  ;;  %v13554_v30 = vmov 0.0  }
 0x466   : > { %10641 = vmatprep.mubr.msk.f32.mxu1 %vm4382_vm2, %v6119_v31  ;;  %4424 = vst.msk [vmem:[#allocation2 + $0x140] sm:$0xf] %vm4423_vm4, %v13554_v30  ;;  %v13159_v31 = vld [vmem:[#allocation2 + $0x4c] sm:$0xff] }
 0x467   : > { %v9131_v30 = vld [vmem:[%s13525_s3 + $0x108] sm:$0xff] }
 0x469   : > { %10642 = vmatmul.mubr.msk.f32.gmra.mrb[10].mxu1 %vm4382_vm2, %v6120_v33  ;;  %v13163_v33 = vld [vmem:[#allocation2 + $0x54] sm:$0xff] }
 0x46a   : > { %10644 = vmatprep.mubr.msk.f32.mxu1 %vm4382_vm2, %v6121_v37  ;;  %v13167_v37 = vld [vmem:[#allocation2 + $0x5c] sm:$0xff] }
 0x46d   : > { %10645 = vmatmul.mubr.msk.f32.gmra.mrb[12].mxu1 %vm4382_vm2, %v6122_v40  ;;  %v13171_v40 = vld [vmem:[#allocation2 + $0x64] sm:$0xff] }
 0x46e   : > { %10647 = vmatprep.mubr.msk.f32.mxu1 %vm4382_vm2, %v6123_v43  ;;  %v13175_v43 = vld [vmem:[#allocation2 + $0x6c] sm:$0xff] }
 0x471   : > { %10648 = vmatmul.mubr.msk.f32.gmra.mrb[14].mxu1 %vm4382_vm2, %v6124_v45  ;;  %v13179_v45 = vld [vmem:[#allocation2 + $0x74] sm:$0xff] }
 0x472   : > { %10650 = vmatprep.mubr.msk.f32.mxu1 %vm4382_vm2, %v6125_v48  ;;  %v13183_v48 = vld [vmem:[#allocation2 + $0x7c] sm:$0xff] }
 0x475   : > { %10651 = vmatmul.mubr.msk.f32.gmra.mrb[16].mxu1 %vm4382_vm2, %v6126_v49  ;;  %v13187_v49 = vld [vmem:[#allocation2 + $0x84] sm:$0xff] }
 0x476   : > { %10653 = vmatprep.mubr.msk.f32.mxu1 %vm4382_vm2, %v6127_v50  ;;  %v13191_v50 = vld [vmem:[#allocation2 + $0x8c] sm:$0xff] }
 0x479   : > { %10654 = vmatmul.mubr.msk.f32.gmra.mrb[18].mxu1 %vm4382_vm2, %v6128_v52  ;;  %v13195_v52 = vld [vmem:[#allocation2 + $0x94] sm:$0xff] }
 0x47a   : > { %10656 = vmatprep.mubr.msk.f32.mxu1 %vm4382_vm2, %v6129_v1  ;;  %v13199_v1 = vld [vmem:[#allocation2 + $0x9c] sm:$0xff] }
 0x47d   : > { %10657 = vmatmul.mubr.msk.f32.gmra.mrb[20].mxu1 %vm4382_vm2, %v6130_v53  ;;  %v6557_v53 = vld [vmem:[#allocation2 + $0xa4] sm:$0xff] }
 0x47e   : > { %10659 = vmatprep.mubr.msk.f32.mxu1 %vm4382_vm2, %v6131_v54  ;;  %v6558_v54 = vld [vmem:[#allocation2 + $0xac] sm:$0xff] }
 0x481   : > { %10660 = vmatmul.mubr.msk.f32.gmra.mrb[22].mxu1 %vm4382_vm2, %v6132_v55  ;;  %v6559_v55 = vld [vmem:[#allocation2 + $0xb4] sm:$0xff] }
 0x482   : > { %10662 = vmatprep.mubr.msk.f32.mxu1 %vm4382_vm2, %v6133_v60  ;;  %v6560_v60 = vld [vmem:[#allocation2 + $0xbc] sm:$0xff] }
 0x485   : > { %10663 = vmatmul.mubr.msk.f32.gmra.mrb[24].mxu1 %vm4382_vm2, %v6134_v61  ;;  %v6561_v61 = vld [vmem:[#allocation2 + $0xc4] sm:$0xff] }
 0x486   : > { %10665 = vmatprep.mubr.msk.f32.mxu1 %vm4382_vm2, %v6135_v14  ;;  %v6562_v14 = vld [vmem:[#allocation2 + $0xcc] sm:$0xff] }
 0x489   : > { %10666 = vmatmul.mubr.msk.f32.gmra.mrb[26].mxu1 %vm4382_vm2, %v6136_v18  ;;  %v6563_v18 = vld [vmem:[#allocation2 + $0xd4] sm:$0xff] }
 0x48a   : > { %10668 = vmatprep.mubr.msk.f32.mxu1 %vm4382_vm2, %v6137_v20  ;;  %v6564_v20 = vld [vmem:[#allocation2 + $0xdc] sm:$0xff] }
 0x48d   : > { %10669 = vmatmul.mubr.msk.f32.gmra.mrb[28].mxu1 %vm4382_vm2, %v6138_v12  ;;  %v6565_v12 = vld [vmem:[#allocation2 + $0xe4] sm:$0xff] }
 0x48e   : > { %10671 = vmatprep.mubr.msk.f32.mxu1 %vm4382_vm2, %v6139_v36  ;;  %v6566_v36 = vld [vmem:[#allocation2 + $0xec] sm:$0xff] }
 0x491   : > { %10672 = vmatmul.mubr.msk.f32.gmra.mrb[30].mxu1 %vm4382_vm2, %v6140_v35  ;;  %v6567_v35 = vld [vmem:[#allocation2 + $0xf4] sm:$0xff] }
 0x492   : > { %10674 = vmatprep.mubr.msk.f32.mxu1 %vm4382_vm2, %v6141_v39  ;;  %v6568_v39 = vld [vmem:[#allocation2 + $0xfc] sm:$0xff] }
 0x495   : > { %10675 = vmatmul.mubr.msk.f32.gmra.mrb[32].mxu1 %vm4382_vm2, %v6142_v58  ;;  %v6569_v58 = vld [vmem:[#allocation2 + $0x104] sm:$0xff] }
 0x496   : > { %10677 = vmatprep.mubr.msk.f32.mxu1 %vm4382_vm2, %v6143_v51  ;;  %v6570_v51 = vld [vmem:[#allocation2 + $0x10c] sm:$0xff] }
 0x499   : > { %10678 = vmatmul.mubr.msk.f32.gmra.mrb[34].mxu1 %vm4382_vm2, %v6144_v62  ;;  %v6571_v62 = vld [vmem:[#allocation2 + $0x114] sm:$0xff] }
 0x49a   : > { %10688 = vmatprep.mubr.msk.f32.mxu1 %vm4382_vm2, %v6539_v63  ;;  %v6574_v63 = vld [vmem:[#allocation2 + $0x12c] sm:$0x3f] }
 0x49d   : > { %10689 = vmatmul.mubr.msk.f32.vlgmr.msra.gmra.mrb[0].mxu1 %vm4382_vm2, %v6540_v42  ;;  %v9093_v42 = vld [vmem:[%s13525_s3 + $0xf8] sm:$0xff] }
 0x49e   : > { %10979 = vmatpush3.bf16.msra.mxu1 %v13084_v19  ;;  %10691 = vmatprep.mubr.msk.f32.mxu1 %vm4382_vm2, %v13134_v22  ;;  %v13150_v19 = vld [vmem:[#allocation2 + $0x3c] sm:$0xff] }
 0x49f   : > { %10981 = vmatprep.subr.bf16.mxu1 %v10980_v34 }
 0x4a1   : > { %10692 = vmatmul.mubr.msk.f32.gmra.mrb[2].mxu1 %vm4382_vm2, %v13141_v26 }
 0x4a2   : > { %10694 = vmatprep.mubr.msk.f32.mxu1 %vm4382_vm2, %v13145_v46  ;;  %10983 = vmatpush3.bf16.msra.mxu1 %v10980_v34  ;;  %v9092_v34 = vld [vmem:[%s13525_s3 + $0xf0] sm:$0xff] }
 0x4a3   : > { %10985 = vmatprep.subr.bf16.mxu1 %v13139_v24  ;;  %v10988_v16 = vpack.c.bf16 %v9093_v42, %v9092_v34  ;;  %v7427_v34 = vld [vmem:[#allocation2 + $0x105] sm:$0xff]  ;;  %v7428_v42 = vld [vmem:[#allocation2 + $0x10d] sm:$0xff] }
 0x4a5   : > { %10695 = vmatmul.mubr.msk.f32.gmra.mrb[4].mxu1 %vm4382_vm2, %v13150_v19 }
 0x4a6   : > { %10697 = vmatprep.mubr.msk.f32.mxu1 %vm4382_vm2, %v13154_v29 }
 0x4a9   : > { %10698 = vmatmul.mubr.msk.f32.gmra.mrb[6].mxu1 %vm4382_vm2, %v13159_v31 }
 0x4aa   : > { %10700 = vmatprep.mubr.msk.f32.mxu1 %vm4382_vm2, %v13163_v33 }
 0x4ad   : > { %10701 = vmatmul.mubr.msk.f32.gmra.mrb[8].mxu1 %vm4382_vm2, %v13167_v37 }
 0x4ae   : > { %10703 = vmatprep.mubr.msk.f32.mxu1 %vm4382_vm2, %v13171_v40 }
 0x4b1   : > { %10704 = vmatmul.mubr.msk.f32.gmra.mrb[10].mxu1 %vm4382_vm2, %v13175_v43 }
 0x4b2   : > { %10706 = vmatprep.mubr.msk.f32.mxu1 %vm4382_vm2, %v13179_v45 }
 0x4b5   : > { %10707 = vmatmul.mubr.msk.f32.gmra.mrb[12].mxu1 %vm4382_vm2, %v13183_v48 }
 0x4b6   : > { %10709 = vmatprep.mubr.msk.f32.mxu1 %vm4382_vm2, %v13187_v49 }
 0x4b9   : > { %10710 = vmatmul.mubr.msk.f32.gmra.mrb[14].mxu1 %vm4382_vm2, %v13191_v50 }
 0x4ba   : > { %10712 = vmatprep.mubr.msk.f32.mxu1 %vm4382_vm2, %v13195_v52 }
 0x4bd   : > { %10713 = vmatmul.mubr.msk.f32.gmra.mrb[16].mxu1 %vm4382_vm2, %v13199_v1 }
 0x4be   : > { %10715 = vmatprep.mubr.msk.f32.mxu1 %vm4382_vm2, %v6557_v53 }
 0x4c1   : > { %10716 = vmatmul.mubr.msk.f32.gmra.mrb[18].mxu1 %vm4382_vm2, %v6558_v54 }
 0x4c2   : > { %10718 = vmatprep.mubr.msk.f32.mxu1 %vm4382_vm2, %v6559_v55 }
 0x4c5   : > { %10719 = vmatmul.mubr.msk.f32.gmra.mrb[20].mxu1 %vm4382_vm2, %v6560_v60 }
 0x4c6   : > { %10721 = vmatprep.mubr.msk.f32.mxu1 %vm4382_vm2, %v6561_v61 }
 0x4c9   : > { %10722 = vmatmul.mubr.msk.f32.gmra.mrb[22].mxu1 %vm4382_vm2, %v6562_v14 }
 0x4ca   : > { %10724 = vmatprep.mubr.msk.f32.mxu1 %vm4382_vm2, %v6563_v18 }
 0x4cd   : > { %10725 = vmatmul.mubr.msk.f32.gmra.mrb[24].mxu1 %vm4382_vm2, %v6564_v20 }
 0x4ce   : > { %10727 = vmatprep.mubr.msk.f32.mxu1 %vm4382_vm2, %v6565_v12 }
 0x4d1   : > { %10728 = vmatmul.mubr.msk.f32.gmra.mrb[26].mxu1 %vm4382_vm2, %v6566_v36 }
 0x4d2   : > { %10730 = vmatprep.mubr.msk.f32.mxu1 %vm4382_vm2, %v6567_v35 }
 0x4d5   : > { %10731 = vmatmul.mubr.msk.f32.gmra.mrb[28].mxu1 %vm4382_vm2, %v6568_v39 }
 0x4d6   : > { %10733 = vmatprep.mubr.msk.f32.mxu1 %vm4382_vm2, %v6569_v58 }
 0x4d9   : > { %10734 = vmatmul.mubr.msk.f32.gmra.mrb[30].mxu1 %vm4382_vm2, %v6570_v51 }
 0x4da   : > { %10736 = vmatprep.mubr.msk.f32.mxu1 %vm4382_vm2, %v6571_v62 }
 0x4dd   : > { %10737 = vmatmul.mubr.msk.f32.gmra.mrb[32].mxu1 %vm4382_vm2, %v6572_v32 }
 0x4de   : > { %10739 = vmatprep.mubr.msk.f32.mxu1 %vm4382_vm2, %v6573_v57 }
 0x4e1   : > { %10740 = vmatmul.mubr.msk.f32.gmra.mrb[34].mxu1 %vm4382_vm2, %v6574_v63  ;;  %v10992_v63 = vpack.c.bf16 %v9131_v30, %v9130_v21  ;;  %v7430_v21 = vld [vmem:[#allocation2 + $0x11d] sm:$0xff]  ;;  %v7431_v30 = vld [vmem:[#allocation2 + $0x125] sm:$0xff] }
 0x4e2   : > { %10750 = vmatprep.mubr.msk.f32.mxu1 %vm4382_vm2, %v13134_v22  ;;  %v7003_v22 = vld [vmem:[#allocation2 + $0x134] sm:$0xff] }
 0x4e5   : > { %10751 = vmatmul.mubr.msk.f32.vlgmr.msra.gmra.mrb[0].mxu1 %vm4382_vm2, %v13141_v26  ;;  %v7004_v26 = vld [vmem:[#allocation2 + $0x13c] sm:$0x3f] }
 0x4e6   : > { %10987 = vmatpush3.bf16.msra.mxu1 %v13139_v24  ;;  %10753 = vmatprep.mubr.msk.f32.mxu1 %vm4382_vm2, %v13145_v46  ;;  %v7002_v24 = vld [vmem:[#allocation2 + $0x12c] sm:$0xff] }
 0x4e7   : > { %10989 = vmatprep.subr.bf16.mxu1 %v10988_v16  ;;  %v9132_v46 = vld [vmem:[%s13525_s3 + $0x110] sm:$0xff] }
 0x4e9   : > { %10754 = vmatmul.mubr.msk.f32.gmra.mrb[2].mxu1 %vm4382_vm2, %v13150_v19  ;;  %v9133_v19 = vld [vmem:[%s13525_s3 + $0x118] sm:$0xff] }
 0x4ea   : > { %10756 = vmatprep.mubr.msk.f32.mxu1 %vm4382_vm2, %v13154_v29  ;;  %10991 = vmatpush3.bf16.msra.mxu1 %v10988_v16  ;;  %v7399_v29 = vld [vmem:[#allocation2 + $0x25] sm:$0xff]  ;;  %v7429_v16 = vld [vmem:[#allocation2 + $0x115] sm:$0xff] }
 0x4eb   : > { %10993 = vmatprep.subr.bf16.mxu1 %v10992_v63 }
 0x4ed   : > { %10757 = vmatmul.mubr.msk.f32.gmra.mrb[4].mxu1 %vm4382_vm2, %v13159_v31  ;;  %v10996_v31 = vpack.c.bf16 %v9133_v19, %v9132_v46  ;;  %v7830_v46 = vld [vmem:[#allocation2 + $0x2e] sm:$0xff]  ;;  %v7831_v19 = vld [vmem:[#allocation2 + $0x36] sm:$0xff] }
 0x4ee   : > { %10759 = vmatprep.mubr.msk.f32.mxu1 %vm4382_vm2, %v13163_v33  ;;  %v7400_v33 = vld [vmem:[#allocation2 + $0x2d] sm:$0xff] }
 0x4f1   : > { %10760 = vmatmul.mubr.msk.f32.gmra.mrb[6].mxu1 %vm4382_vm2, %v13167_v37  ;;  %v7401_v37 = vld [vmem:[#allocation2 + $0x35] sm:$0xff] }
 0x4f2   : > { %10762 = vmatprep.mubr.msk.f32.mxu1 %vm4382_vm2, %v13171_v40  ;;  %v7402_v40 = vld [vmem:[#allocation2 + $0x3d] sm:$0xff] }
 0x4f5   : > { %10763 = vmatmul.mubr.msk.f32.gmra.mrb[8].mxu1 %vm4382_vm2, %v13175_v43  ;;  %v7403_v43 = vld [vmem:[#allocation2 + $0x45] sm:$0xff] }
 0x4f6   : > { %10765 = vmatprep.mubr.msk.f32.mxu1 %vm4382_vm2, %v13179_v45  ;;  %v7404_v45 = vld [vmem:[#allocation2 + $0x4d] sm:$0xff] }
 0x4f9   : > { %10766 = vmatmul.mubr.msk.f32.gmra.mrb[10].mxu1 %vm4382_vm2, %v13183_v48  ;;  %v7405_v48 = vld [vmem:[#allocation2 + $0x55] sm:$0xff] }
 0x4fa   : > { %10768 = vmatprep.mubr.msk.f32.mxu1 %vm4382_vm2, %v13187_v49  ;;  %v7406_v49 = vld [vmem:[#allocation2 + $0x5d] sm:$0xff] }
 0x4fd   : > { %10769 = vmatmul.mubr.msk.f32.gmra.mrb[12].mxu1 %vm4382_vm2, %v13191_v50  ;;  %v7407_v50 = vld [vmem:[#allocation2 + $0x65] sm:$0xff] }
 0x4fe   : > { %10771 = vmatprep.mubr.msk.f32.mxu1 %vm4382_vm2, %v13195_v52  ;;  %v7408_v52 = vld [vmem:[#allocation2 + $0x6d] sm:$0xff] }
 0x501   : > { %10772 = vmatmul.mubr.msk.f32.gmra.mrb[14].mxu1 %vm4382_vm2, %v13199_v1  ;;  %v7409_v1 = vld [vmem:[#allocation2 + $0x75] sm:$0xff] }
 0x502   : > { %10774 = vmatprep.mubr.msk.f32.mxu1 %vm4382_vm2, %v6557_v53  ;;  %v7410_v53 = vld [vmem:[#allocation2 + $0x7d] sm:$0xff] }
 0x505   : > { %10775 = vmatmul.mubr.msk.f32.gmra.mrb[16].mxu1 %vm4382_vm2, %v6558_v54  ;;  %v7411_v54 = vld [vmem:[#allocation2 + $0x85] sm:$0xff] }
 0x506   : > { %10777 = vmatprep.mubr.msk.f32.mxu1 %vm4382_vm2, %v6559_v55  ;;  %v7412_v55 = vld [vmem:[#allocation2 + $0x8d] sm:$0xff] }
 0x509   : > { %10778 = vmatmul.mubr.msk.f32.gmra.mrb[18].mxu1 %vm4382_vm2, %v6560_v60  ;;  %v7413_v60 = vld [vmem:[#allocation2 + $0x95] sm:$0xff] }
 0x50a   : > { %10780 = vmatprep.mubr.msk.f32.mxu1 %vm4382_vm2, %v6561_v61  ;;  %v7414_v61 = vld [vmem:[#allocation2 + $0x9d] sm:$0xff] }
 0x50d   : > { %10781 = vmatmul.mubr.msk.f32.gmra.mrb[20].mxu1 %vm4382_vm2, %v6562_v14  ;;  %v7415_v14 = vld [vmem:[#allocation2 + $0xa5] sm:$0xff] }
 0x50e   : > { %10783 = vmatprep.mubr.msk.f32.mxu1 %vm4382_vm2, %v6563_v18  ;;  %v7416_v18 = vld [vmem:[#allocation2 + $0xad] sm:$0xff] }
 0x511   : > { %10784 = vmatmul.mubr.msk.f32.gmra.mrb[22].mxu1 %vm4382_vm2, %v6564_v20  ;;  %v7417_v20 = vld [vmem:[#allocation2 + $0xb5] sm:$0xff] }
 0x512   : > { %10786 = vmatprep.mubr.msk.f32.mxu1 %vm4382_vm2, %v6565_v12  ;;  %v7418_v12 = vld [vmem:[#allocation2 + $0xbd] sm:$0xff] }
 0x515   : > { %10787 = vmatmul.mubr.msk.f32.gmra.mrb[24].mxu1 %vm4382_vm2, %v6566_v36  ;;  %v7419_v36 = vld [vmem:[#allocation2 + $0xc5] sm:$0xff] }
 0x516   : > { %10789 = vmatprep.mubr.msk.f32.mxu1 %vm4382_vm2, %v6567_v35  ;;  %v7420_v35 = vld [vmem:[#allocation2 + $0xcd] sm:$0xff] }
 0x519   : > { %10790 = vmatmul.mubr.msk.f32.gmra.mrb[26].mxu1 %vm4382_vm2, %v6568_v39  ;;  %v7421_v39 = vld [vmem:[#allocation2 + $0xd5] sm:$0xff] }
 0x51a   : > { %10792 = vmatprep.mubr.msk.f32.mxu1 %vm4382_vm2, %v6569_v58  ;;  %v7422_v58 = vld [vmem:[#allocation2 + $0xdd] sm:$0xff] }
 0x51d   : > { %10793 = vmatmul.mubr.msk.f32.gmra.mrb[28].mxu1 %vm4382_vm2, %v6570_v51  ;;  %v7423_v51 = vld [vmem:[#allocation2 + $0xe5] sm:$0xff] }
 0x51e   : > { %10795 = vmatprep.mubr.msk.f32.mxu1 %vm4382_vm2, %v6571_v62  ;;  %v7424_v62 = vld [vmem:[#allocation2 + $0xed] sm:$0xff] }
 0x521   : > { %10796 = vmatmul.mubr.msk.f32.gmra.mrb[30].mxu1 %vm4382_vm2, %v6572_v32  ;;  %v7425_v32 = vld [vmem:[#allocation2 + $0xf5] sm:$0xff] }
 0x522   : > { %10798 = vmatprep.mubr.msk.f32.mxu1 %vm4382_vm2, %v6573_v57  ;;  %v7426_v57 = vld [vmem:[#allocation2 + $0xfd] sm:$0xff] }
 0x525   : > { %10799 = vmatmul.mubr.msk.f32.gmra.mrb[32].mxu1 %vm4382_vm2, %v7002_v24  ;;  %v7434_v24 = vld [vmem:[#allocation2 + $0x13d] sm:$0x3f] }
 0x526   : > { %10801 = vmatprep.mubr.msk.f32.mxu1 %vm4382_vm2, %v7003_v22  ;;  %v7432_v22 = vld [vmem:[#allocation2 + $0x12d] sm:$0xff] }
 0x529   : > { %10802 = vmatmul.mubr.msk.f32.gmra.mrb[34].mxu1 %vm4382_vm2, %v7004_v26  ;;  %v7829_v26 = vld [vmem:[#allocation2 + $0x26] sm:$0xff] }
 0x52a   : > { %10812 = vmatprep.mubr.msk.f32.mxu1 %vm4382_vm2, %v7399_v29  ;;  %v7832_v29 = vld [vmem:[#allocation2 + $0x3e] sm:$0xff] }
 0x52d   : > { %10813 = vmatmul.mubr.msk.f32.vlgmr.msra.gmra.mrb[0].mxu1 %vm4382_vm2, %v7400_v33  ;;  %v7834_v33 = vld [vmem:[#allocation2 + $0x4e] sm:$0xff] }
 0x52e   : > { %10995 = vmatpush3.bf16.msra.mxu1 %v10992_v63  ;;  %10815 = vmatprep.mubr.msk.f32.mxu1 %vm4382_vm2, %v7401_v37  ;;  %v7433_v63 = vld [vmem:[#allocation2 + $0x135] sm:$0xff] }
 0x52f   : > { %10997 = vmatprep.subr.bf16.mxu1 %v10996_v31  ;;  %v7835_v37 = vld [vmem:[#allocation2 + $0x56] sm:$0xff] }
 0x531   : > { %10816 = vmatmul.mubr.msk.f32.gmra.mrb[2].mxu1 %vm4382_vm2, %v7402_v40  ;;  %v7836_v40 = vld [vmem:[#allocation2 + $0x5e] sm:$0xff] }
 0x532   : > { %10818 = vmatprep.mubr.msk.f32.mxu1 %vm4382_vm2, %v7403_v43  ;;  %10999 = vmatpush3.bf16.msra.mxu1 %v10996_v31  ;;  %v7833_v31 = vld [vmem:[#allocation2 + $0x46] sm:$0xff] }
 0x533   : > { %v7837_v43 = vld [vmem:[#allocation2 + $0x66] sm:$0xff] }
 0x535   : > { %10819 = vmatmul.mubr.msk.f32.gmra.mrb[4].mxu1 %vm4382_vm2, %v7404_v45  ;;  %v7838_v45 = vld [vmem:[#allocation2 + $0x6e] sm:$0xff] }
 0x536   : > { %10821 = vmatprep.mubr.msk.f32.mxu1 %vm4382_vm2, %v7405_v48  ;;  %v7839_v48 = vld [vmem:[#allocation2 + $0x76] sm:$0xff] }
 0x539   : > { %10822 = vmatmul.mubr.msk.f32.gmra.mrb[6].mxu1 %vm4382_vm2, %v7406_v49  ;;  %v7840_v49 = vld [vmem:[#allocation2 + $0x7e] sm:$0xff] }
 0x53a   : > { %10824 = vmatprep.mubr.msk.f32.mxu1 %vm4382_vm2, %v7407_v50  ;;  %v7841_v50 = vld [vmem:[#allocation2 + $0x86] sm:$0xff] }
 0x53d   : > { %10825 = vmatmul.mubr.msk.f32.gmra.mrb[8].mxu1 %vm4382_vm2, %v7408_v52  ;;  %v7842_v52 = vld [vmem:[#allocation2 + $0x8e] sm:$0xff] }
 0x53e   : > { %10827 = vmatprep.mubr.msk.f32.mxu1 %vm4382_vm2, %v7409_v1  ;;  %v7843_v1 = vld [vmem:[#allocation2 + $0x96] sm:$0xff] }
 0x541   : > { %10828 = vmatmul.mubr.msk.f32.gmra.mrb[10].mxu1 %vm4382_vm2, %v7410_v53  ;;  %v7844_v53 = vld [vmem:[#allocation2 + $0x9e] sm:$0xff] }
 0x542   : > { %10830 = vmatprep.mubr.msk.f32.mxu1 %vm4382_vm2, %v7411_v54  ;;  %v7845_v54 = vld [vmem:[#allocation2 + $0xa6] sm:$0xff] }
 0x545   : > { %10831 = vmatmul.mubr.msk.f32.gmra.mrb[12].mxu1 %vm4382_vm2, %v7412_v55  ;;  %v7846_v55 = vld [vmem:[#allocation2 + $0xae] sm:$0xff] }
 0x546   : > { %10833 = vmatprep.mubr.msk.f32.mxu1 %vm4382_vm2, %v7413_v60  ;;  %v7847_v60 = vld [vmem:[#allocation2 + $0xb6] sm:$0xff] }
 0x549   : > { %10834 = vmatmul.mubr.msk.f32.gmra.mrb[14].mxu1 %vm4382_vm2, %v7414_v61  ;;  %v7848_v61 = vld [vmem:[#allocation2 + $0xbe] sm:$0xff] }
 0x54a   : > { %10836 = vmatprep.mubr.msk.f32.mxu1 %vm4382_vm2, %v7415_v14  ;;  %v7849_v14 = vld [vmem:[#allocation2 + $0xc6] sm:$0xff] }
 0x54d   : > { %10837 = vmatmul.mubr.msk.f32.gmra.mrb[16].mxu1 %vm4382_vm2, %v7416_v18  ;;  %v7850_v18 = vld [vmem:[#allocation2 + $0xce] sm:$0xff] }
 0x54e   : > { %10839 = vmatprep.mubr.msk.f32.mxu1 %vm4382_vm2, %v7417_v20  ;;  %v7851_v20 = vld [vmem:[#allocation2 + $0xd6] sm:$0xff] }
 0x551   : > { %10840 = vmatmul.mubr.msk.f32.gmra.mrb[18].mxu1 %vm4382_vm2, %v7418_v12  ;;  %v7852_v12 = vld [vmem:[#allocation2 + $0xde] sm:$0xff] }
 0x552   : > { %10842 = vmatprep.mubr.msk.f32.mxu1 %vm4382_vm2, %v7419_v36  ;;  %v7853_v36 = vld [vmem:[#allocation2 + $0xe6] sm:$0xff] }
 0x555   : > { %10843 = vmatmul.mubr.msk.f32.gmra.mrb[20].mxu1 %vm4382_vm2, %v7420_v35  ;;  %v7854_v35 = vld [vmem:[#allocation2 + $0xee] sm:$0xff] }
 0x556   : > { %10845 = vmatprep.mubr.msk.f32.mxu1 %vm4382_vm2, %v7421_v39  ;;  %v7855_v39 = vld [vmem:[#allocation2 + $0xf6] sm:$0xff] }
 0x559   : > { %10846 = vmatmul.mubr.msk.f32.gmra.mrb[22].mxu1 %vm4382_vm2, %v7422_v58  ;;  %v7856_v58 = vld [vmem:[#allocation2 + $0xfe] sm:$0xff] }
 0x55a   : > { %10848 = vmatprep.mubr.msk.f32.mxu1 %vm4382_vm2, %v7423_v51  ;;  %v7857_v51 = vld [vmem:[#allocation2 + $0x106] sm:$0xff] }
 0x55d   : > { %10849 = vmatmul.mubr.msk.f32.gmra.mrb[24].mxu1 %vm4382_vm2, %v7424_v62  ;;  %v7858_v62 = vld [vmem:[#allocation2 + $0x10e] sm:$0xff] }
 0x55e   : > { %10851 = vmatprep.mubr.msk.f32.mxu1 %vm4382_vm2, %v7425_v32  ;;  %v7859_v32 = vld [vmem:[#allocation2 + $0x116] sm:$0xff] }
 0x561   : > { %10852 = vmatmul.mubr.msk.f32.gmra.mrb[26].mxu1 %vm4382_vm2, %v7426_v57  ;;  %v7860_v57 = vld [vmem:[#allocation2 + $0x11e] sm:$0xff] }
 0x562   : > { %10854 = vmatprep.mubr.msk.f32.mxu1 %vm4382_vm2, %v7427_v34  ;;  %v7861_v34 = vld [vmem:[#allocation2 + $0x126] sm:$0xff] }
 0x565   : > { %10855 = vmatmul.mubr.msk.f32.gmra.mrb[28].mxu1 %vm4382_vm2, %v7428_v42  ;;  %v7863_v42 = vld [vmem:[#allocation2 + $0x136] sm:$0xff] }
 0x566   : > { %10857 = vmatprep.mubr.msk.f32.mxu1 %vm4382_vm2, %v7429_v16  ;;  %v7862_v16 = vld [vmem:[#allocation2 + $0x12e] sm:$0xff] }
 0x569   : > { %10858 = vmatmul.mubr.msk.f32.gmra.mrb[30].mxu1 %vm4382_vm2, %v7430_v21  ;;  %v7864_v21 = vld [vmem:[#allocation2 + $0x13e] sm:$0x3f] }
 0x56a   : > { %10860 = vmatprep.mubr.msk.f32.mxu1 %vm4382_vm2, %v7431_v30  ;;  %v13367_v30 = vld [vmem:[%s13526_s4] ss:$0 sm:$0xff] }
 0x56d   : > { %10861 = vmatmul.mubr.msk.f32.gmra.mrb[32].mxu1 %vm4382_vm2, %v7432_v22 }
 0x56e   : > { %10863 = vmatprep.mubr.msk.f32.mxu1 %vm4382_vm2, %v7433_v63 }
 0x571   : > { %10864 = vmatmul.mubr.msk.f32.gmra.mrb[34].mxu1 %vm4382_vm2, %v7434_v24 }
 0x572   : > { %10874 = vmatprep.mubr.msk.f32.mxu1 %vm4382_vm2, %v7829_v26 }
 0x575   : > { %10875 = vmatmul.mubr.msk.f32.vlgmr.msra.gmra.mrb[0].mxu1 %vm4382_vm2, %v7830_v46 }
 0x576   : > { %10877 = vmatprep.mubr.msk.f32.mxu1 %vm4382_vm2, %v7831_v19 }
 0x579   : > { %10878 = vmatmul.mubr.msk.f32.gmra.mrb[2].mxu1 %vm4382_vm2, %v7832_v29 }
 0x57a   : > { %10880 = vmatprep.mubr.msk.f32.mxu1 %vm4382_vm2, %v7833_v31 }
 0x57d   : > { %10881 = vmatmul.mubr.msk.f32.gmra.mrb[4].mxu1 %vm4382_vm2, %v7834_v33 }
 0x57e   : > { %10883 = vmatprep.mubr.msk.f32.mxu1 %vm4382_vm2, %v7835_v37 }
 0x581   : > { %10884 = vmatmul.mubr.msk.f32.gmra.mrb[6].mxu1 %vm4382_vm2, %v7836_v40 }
 0x582   : > { %10886 = vmatprep.mubr.msk.f32.mxu1 %vm4382_vm2, %v7837_v43 }
 0x585   : > { %10887 = vmatmul.mubr.msk.f32.gmra.mrb[8].mxu1 %vm4382_vm2, %v7838_v45 }
 0x586   : > { %10889 = vmatprep.mubr.msk.f32.mxu1 %vm4382_vm2, %v7839_v48 }
 0x589   : > { %10890 = vmatmul.mubr.msk.f32.gmra.mrb[10].mxu1 %vm4382_vm2, %v7840_v49 }
 0x58a   : > { %10892 = vmatprep.mubr.msk.f32.mxu1 %vm4382_vm2, %v7841_v50 }
 0x58d   : > { %10893 = vmatmul.mubr.msk.f32.gmra.mrb[12].mxu1 %vm4382_vm2, %v7842_v52 }
 0x58e   : > { %10895 = vmatprep.mubr.msk.f32.mxu1 %vm4382_vm2, %v7843_v1 }
 0x591   : > { %10896 = vmatmul.mubr.msk.f32.gmra.mrb[14].mxu1 %vm4382_vm2, %v7844_v53 }
 0x592   : > { %10898 = vmatprep.mubr.msk.f32.mxu1 %vm4382_vm2, %v7845_v54 }
 0x595   : > { %10899 = vmatmul.mubr.msk.f32.gmra.mrb[16].mxu1 %vm4382_vm2, %v7846_v55 }
 0x596   : > { %10901 = vmatprep.mubr.msk.f32.mxu1 %vm4382_vm2, %v7847_v60 }
 0x599   : > { %10902 = vmatmul.mubr.msk.f32.gmra.mrb[18].mxu1 %vm4382_vm2, %v7848_v61 }
 0x59a   : > { %10904 = vmatprep.mubr.msk.f32.mxu1 %vm4382_vm2, %v7849_v14 }
 0x59d   : > { %10905 = vmatmul.mubr.msk.f32.gmra.mrb[20].mxu1 %vm4382_vm2, %v7850_v18 }
 0x59e   : > { %10907 = vmatprep.mubr.msk.f32.mxu1 %vm4382_vm2, %v7851_v20 }
 0x5a1   : > { %10908 = vmatmul.mubr.msk.f32.gmra.mrb[22].mxu1 %vm4382_vm2, %v7852_v12 }
 0x5a2   : > { %10910 = vmatprep.mubr.msk.f32.mxu1 %vm4382_vm2, %v7853_v36 }
 0x5a5   : > { %10911 = vmatmul.mubr.msk.f32.gmra.mrb[24].mxu1 %vm4382_vm2, %v7854_v35 }
 0x5a6   : > { %10913 = vmatprep.mubr.msk.f32.mxu1 %vm4382_vm2, %v7855_v39 }
 0x5a9   : > { %10914 = vmatmul.mubr.msk.f32.gmra.mrb[26].mxu1 %vm4382_vm2, %v7856_v58 }
 0x5aa   : > { %10916 = vmatprep.mubr.msk.f32.mxu1 %vm4382_vm2, %v7857_v51 }
 0x5ad   : > { %10917 = vmatmul.mubr.msk.f32.gmra.mrb[28].mxu1 %vm4382_vm2, %v7858_v62 }
 0x5ae   : > { %10919 = vmatprep.mubr.msk.f32.mxu1 %vm4382_vm2, %v7859_v32 }
 0x5b1   : > { %10920 = vmatmul.mubr.msk.f32.gmra.mrb[30].mxu1 %vm4382_vm2, %v7860_v57 }
 0x5b2   : > { %10922 = vmatprep.mubr.msk.f32.mxu1 %vm4382_vm2, %v7861_v34 }
 0x5b5   : > { %10923 = vmatmul.mubr.msk.f32.gmra.mrb[32].mxu1 %vm4382_vm2, %v7862_v16 }
 0x5b6   : > { %10925 = vmatprep.mubr.msk.f32.mxu1 %vm4382_vm2, %v7863_v42 }
 0x5b9   : > { %10926 = vmatmul.mubr.msk.f32.gmra.mrb[34].mxu1 %vm4382_vm2, %v7864_v21 }
 0x648   : > { %v10876_v63 = vpop.f32.mrb[0].mxu1 }
 0x649   : > { %v8267_v22 = vadd.f32 %v10876_v63, %v13367_v30  ;;  %v8044_v24 = vpop.f32.mrb[1].mxu1 }
 0x64a   : > { %v8266_v26 = vadd.f32 %v13367_v30, %v8044_v24 }
 0x64b   : > { %v8303_v46 = vmax.f32 %v8267_v22, 0.0 }
 0x64c   : > { %v8302_v19 = vmax.f32 %v8266_v26, 0.0  ;;  %v10879_v29 = vpop.f32.mrb[2].mxu1 }
 0x64d   : > { %v8339_v31 = vmul.f32 %v8303_v46, %v12639_v5  ;;  %v8269_v33 = vadd.f32 %v10879_v29, %v13367_v30  ;;  %v8054_v37 = vpop.f32.mrb[3].mxu1 }
 0x64e   : > { %v8338_v40 = vmul.f32 %v8302_v19, %v12635_v3  ;;  %v8268_v43 = vadd.f32 %v13367_v30, %v8054_v37 }
 0x64f   : > { %8375 = vst.msk [vmem:[%s13375_s23 + $0x8] sm:$0xff] %vm4382_vm2, %v8339_v31  ;;  %v8305_v45 = vmax.f32 %v8269_v33, 0.0 }
 0x650   : > { %8374 = vst.msk [vmem:[%s13375_s23] sm:$0xff] %vm4382_vm2, %v8338_v40  ;;  %v8304_v48 = vmax.f32 %v8268_v43, 0.0  ;;  %v10882_v49 = vpop.f32.mrb[4].mxu1 }
 0x651   : > { %v8341_v50 = vmul.f32 %v8305_v45, %v12637_v4  ;;  %v8271_v5 = vadd.f32 %v10882_v49, %v13367_v30  ;;  %v8064_v52 = vpop.f32.mrb[5].mxu1 }
 0x652   : > { %v8340_v1 = vmul.f32 %v8304_v48, %v12633_v2  ;;  %v8270_v3 = vadd.f32 %v13367_v30, %v8064_v52 }
 0x653   : > { %8377 = vst.msk [vmem:[%s13375_s23 + $0x18] sm:$0xff] %vm4382_vm2, %v8341_v50  ;;  %v8307_v53 = vmax.f32 %v8271_v5, 0.0 }
 0x654   : > { %8376 = vst.msk [vmem:[%s13375_s23 + $0x10] sm:$0xff] %vm4382_vm2, %v8340_v1  ;;  %v8306_v54 = vmax.f32 %v8270_v3, 0.0  ;;  %v10885_v55 = vpop.f32.mrb[6].mxu1 }
 0x655   : > { %v8343_v60 = vmul.f32 %v8307_v53, %v12641_v6  ;;  %v8273_v4 = vadd.f32 %v10885_v55, %v13367_v30  ;;  %v8074_v61 = vpop.f32.mrb[7].mxu1 }
 0x656   : > { %v8342_v14 = vmul.f32 %v8306_v54, %v12643_v7  ;;  %v8272_v2 = vadd.f32 %v13367_v30, %v8074_v61 }
 0x657   : > { %8379 = vst.msk [vmem:[%s13375_s23 + $0x28] sm:$0xff] %vm4382_vm2, %v8343_v60  ;;  %v8309_v18 = vmax.f32 %v8273_v4, 0.0 }
 0x658   : > { %8378 = vst.msk [vmem:[%s13375_s23 + $0x20] sm:$0xff] %vm4382_vm2, %v8342_v14  ;;  %v8308_v20 = vmax.f32 %v8272_v2, 0.0  ;;  %v10888_v12 = vpop.f32.mrb[8].mxu1 }
 0x659   : > { %v8345_v36 = vmul.f32 %v8309_v18, %v12645_v8  ;;  %v8275_v6 = vadd.f32 %v10888_v12, %v13367_v30  ;;  %v8084_v35 = vpop.f32.mrb[9].mxu1 }
 0x65a   : > { %v8344_v39 = vmul.f32 %v8308_v20, %v12647_v9  ;;  %v8274_v7 = vadd.f32 %v13367_v30, %v8084_v35 }
 0x65b   : > { %8381 = vst.msk [vmem:[%s13375_s23 + $0x38] sm:$0xff] %vm4382_vm2, %v8345_v36  ;;  %v8311_v58 = vmax.f32 %v8275_v6, 0.0 }
 0x65c   : > { %8380 = vst.msk [vmem:[%s13375_s23 + $0x30] sm:$0xff] %vm4382_vm2, %v8344_v39  ;;  %v8310_v51 = vmax.f32 %v8274_v7, 0.0  ;;  %v10891_v62 = vpop.f32.mrb[10].mxu1 }
 0x65d   : > { %v8347_v32 = vmul.f32 %v8311_v58, %v12649_v10  ;;  %v8277_v8 = vadd.f32 %v10891_v62, %v13367_v30  ;;  %v8094_v57 = vpop.f32.mrb[11].mxu1 }
 0x65e   : > { %v8346_v34 = vmul.f32 %v8310_v51, %v12651_v11  ;;  %v8276_v9 = vadd.f32 %v13367_v30, %v8094_v57 }
 0x65f   : > { %8383 = vst.msk [vmem:[%s13375_s23 + $0x48] sm:$0xff] %vm4382_vm2, %v8347_v32  ;;  %v8313_v42 = vmax.f32 %v8277_v8, 0.0 }
 0x660   : > { %8382 = vst.msk [vmem:[%s13375_s23 + $0x40] sm:$0xff] %vm4382_vm2, %v8346_v34  ;;  %v8312_v16 = vmax.f32 %v8276_v9, 0.0  ;;  %v10894_v21 = vpop.f32.mrb[12].mxu1  ;;  %v13555_v34 = vld [vmem:[#allocation3_spill] sm:$0xff] }
 0x661   : > { %v8349_v63 = vmul.f32 %v8313_v42, %v12658_v13  ;;  %v8279_v10 = vadd.f32 %v10894_v21, %v13367_v30  ;;  %v8104_v22 = vpop.f32.mrb[13].mxu1 }
 0x662   : > { %v8348_v24 = vmul.f32 %v8312_v16, %v12660_v15  ;;  %v8278_v11 = vadd.f32 %v13367_v30, %v8104_v22  ;;  %v13556_v16 = vld [vmem:[#allocation4_spill] sm:$0xff] }
 0x663   : > { %8385 = vst.msk [vmem:[%s13375_s23 + $0x58] sm:$0xff] %vm4382_vm2, %v8349_v63  ;;  %v8315_v26 = vmax.f32 %v8279_v10, 0.0 }
 0x664   : > { %8384 = vst.msk [vmem:[%s13375_s23 + $0x50] sm:$0xff] %vm4382_vm2, %v8348_v24  ;;  %v8314_v46 = vmax.f32 %v8278_v11, 0.0  ;;  %v10897_v19 = vpop.f32.mrb[14].mxu1  ;;  %v13557_v24 = vld [vmem:[#allocation5_spill] sm:$0xff] }
 0x665   : > { %v8351_v29 = vmul.f32 %v8315_v26, %v12666_v25  ;;  %v8281_v13 = vadd.f32 %v10897_v19, %v13367_v30  ;;  %v8114_v31 = vpop.f32.mrb[15].mxu1  ;;  %v13558_v19 = vld [vmem:[#allocation6_spill] sm:$0xff] }
 0x666   : > { %v8350_v33 = vmul.f32 %v8314_v46, %v12670_v28  ;;  %v8280_v15 = vadd.f32 %v13367_v30, %v8114_v31 }
 0x667   : > { %8387 = vst.msk [vmem:[%s13375_s23 + $0x68] sm:$0xff] %vm4382_vm2, %v8351_v29  ;;  %v8317_v37 = vmax.f32 %v8281_v13, 0.0 }
 0x668   : > { %8386 = vst.msk [vmem:[%s13375_s23 + $0x60] sm:$0xff] %vm4382_vm2, %v8350_v33  ;;  %v8316_v40 = vmax.f32 %v8280_v15, 0.0  ;;  %v10900_v43 = vpop.f32.mrb[16].mxu1 }
 0x669   : > { %v8353_v45 = vmul.f32 %v8317_v37, %v12679_v38  ;;  %v8283_v25 = vadd.f32 %v10900_v43, %v13367_v30  ;;  %v8124_v48 = vpop.f32.mrb[17].mxu1  ;;  %v13559_v37 = vld [vmem:[#allocation7_spill] sm:$0xff] }
 0x66a   : > { %v8352_v49 = vmul.f32 %v8316_v40, %v12682_v41  ;;  %v8282_v28 = vadd.f32 %v13367_v30, %v8124_v48 }
 0x66b   : > { %8389 = vst.msk [vmem:[%s13375_s23 + $0x78] sm:$0xff] %vm4382_vm2, %v8353_v45  ;;  %v8319_v50 = vmax.f32 %v8283_v25, 0.0  ;;  %v13560_v25 = vld [vmem:[#allocation8_spill] sm:$0xff] }
 0x66c   : > { %8388 = vst.msk [vmem:[%s13375_s23 + $0x70] sm:$0xff] %vm4382_vm2, %v8352_v49  ;;  %v8318_v5 = vmax.f32 %v8282_v28, 0.0  ;;  %v10903_v52 = vpop.f32.mrb[18].mxu1 }
 0x66d   : > { %v8355_v1 = vmul.f32 %v8319_v50, %v12694_v56  ;;  %v8285_v38 = vadd.f32 %v10903_v52, %v13367_v30  ;;  %v8134_v3 = vpop.f32.mrb[19].mxu1  ;;  %v13561_v52 = vld [vmem:[#allocation9_spill] sm:$0xff] }
 0x66e   : > { %v8354_v53 = vmul.f32 %v8318_v5, %v12698_v59  ;;  %v8284_v41 = vadd.f32 %v13367_v30, %v8134_v3 }
 0x66f   : > { %8391 = vst.msk [vmem:[%s13375_s23 + $0x88] sm:$0xff] %vm4382_vm2, %v8355_v1  ;;  %v8321_v54 = vmax.f32 %v8285_v38, 0.0 }
 0x670   : > { %8390 = vst.msk [vmem:[%s13375_s23 + $0x80] sm:$0xff] %vm4382_vm2, %v8354_v53  ;;  %v8320_v55 = vmax.f32 %v8284_v41, 0.0  ;;  %v10906_v60 = vpop.f32.mrb[20].mxu1  ;;  %v13562_v53 = vld [vmem:[#allocation10_spill] sm:$0xff] }
 0x671   : > { %v8357_v4 = vmul.f32 %v8321_v54, %v12709_v23  ;;  %v8287_v56 = vadd.f32 %v10906_v60, %v13367_v30  ;;  %v8144_v61 = vpop.f32.mrb[21].mxu1 }
 0x672   : > { %v8356_v14 = vmul.f32 %v8320_v55, %v12713_v27  ;;  %v8286_v59 = vadd.f32 %v13367_v30, %v8144_v61 }
 0x673   : > { %8393 = vst.msk [vmem:[%s13375_s23 + $0x98] sm:$0xff] %vm4382_vm2, %v8357_v4  ;;  %v8323_v2 = vmax.f32 %v8287_v56, 0.0  ;;  %v13563_v56 = vld [vmem:[#allocation11_spill] sm:$0xff] }
 0x674   : > { %8392 = vst.msk [vmem:[%s13375_s23 + $0x90] sm:$0xff] %vm4382_vm2, %v8356_v14  ;;  %v8322_v18 = vmax.f32 %v8286_v59, 0.0  ;;  %v10909_v20 = vpop.f32.mrb[22].mxu1 }
 0x675   : > { %v8359_v12 = vmul.f32 %v8323_v2, %v12726_v44  ;;  %v8289_v23 = vadd.f32 %v10909_v20, %v13367_v30  ;;  %v8154_v36 = vpop.f32.mrb[23].mxu1  ;;  %v13564_v2 = vld [vmem:[#allocation12_spill] sm:$0xff] }
 0x676   : > { %v8358_v6 = vmul.f32 %v8322_v18, %v12730_v47  ;;  %v8288_v27 = vadd.f32 %v13367_v30, %v8154_v36  ;;  %v13565_v36 = vld [vmem:[#allocation13_spill] sm:$0xff] }
 0x677   : > { %8395 = vst.msk [vmem:[%s13375_s23 + $0xa8] sm:$0xff] %vm4382_vm2, %v8359_v12  ;;  %v8325_v35 = vmax.f32 %v8289_v23, 0.0 }
 0x678   : > { %8394 = vst.msk [vmem:[%s13375_s23 + $0xa0] sm:$0xff] %vm4382_vm2, %v8358_v6  ;;  %v8324_v39 = vmax.f32 %v8288_v27, 0.0  ;;  %v10912_v7 = vpop.f32.mrb[24].mxu1  ;;  %v13566_v27 = vld [vmem:[#allocation14_spill] sm:$0xff] }
 0x679   : > { %v8361_v58 = vmul.f32 %v8325_v35, %v12741_v0  ;;  %v8291_v44 = vadd.f32 %v10912_v7, %v13367_v30  ;;  %v8164_v51 = vpop.f32.mrb[25].mxu1 }
 0x67a   : > { %v8360_v62 = vmul.f32 %v8324_v39, %v12745_v17  ;;  %v8290_v47 = vadd.f32 %v13367_v30, %v8164_v51 }
 0x67b   : > { %8397 = vst.msk [vmem:[%s13375_s23 + $0xb8] sm:$0xff] %vm4382_vm2, %v8361_v58  ;;  %v8327_v32 = vmax.f32 %v8291_v44, 0.0 }
 0x67c   : > { %8396 = vst.msk [vmem:[%s13375_s23 + $0xb0] sm:$0xff] %vm4382_vm2, %v8360_v62  ;;  %v8326_v8 = vmax.f32 %v8290_v47, 0.0  ;;  %v10915_v57 = vpop.f32.mrb[26].mxu1 }
 0x67d   : > { %v8363_v9 = vmul.f32 %v8327_v32, %v13555_v34  ;;  %v8293_v0 = vadd.f32 %v10915_v57, %v13367_v30  ;;  %v8174_v42 = vpop.f32.mrb[27].mxu1 }
 0x67e   : > { %v8362_v21 = vmul.f32 %v8326_v8, %v13556_v16  ;;  %v8292_v17 = vadd.f32 %v13367_v30, %v8174_v42 }
 0x67f   : > { %8399 = vst.msk [vmem:[%s13375_s23 + $0xc8] sm:$0xff] %vm4382_vm2, %v8363_v9  ;;  %v8329_v63 = vmax.f32 %v8293_v0, 0.0 }
 0x680   : > { %8398 = vst.msk [vmem:[%s13375_s23 + $0xc0] sm:$0xff] %vm4382_vm2, %v8362_v21  ;;  %v8328_v10 = vmax.f32 %v8292_v17, 0.0  ;;  %v10918_v22 = vpop.f32.mrb[28].mxu1 }
 0x681   : > { %v8365_v11 = vmul.f32 %v8329_v63, %v13557_v24  ;;  %v8295_v26 = vadd.f32 %v10918_v22, %v13367_v30  ;;  %v8184_v46 = vpop.f32.mrb[29].mxu1 }
 0x682   : > { %v8364_v29 = vmul.f32 %v8328_v10, %v13558_v19  ;;  %v8294_v13 = vadd.f32 %v13367_v30, %v8184_v46 }
 0x683   : > { %8401 = vst.msk [vmem:[%s13375_s23 + $0xd8] sm:$0xff] %vm4382_vm2, %v8365_v11  ;;  %v8331_v31 = vmax.f32 %v8295_v26, 0.0 }
 0x684   : > { %8400 = vst.msk [vmem:[%s13375_s23 + $0xd0] sm:$0xff] %vm4382_vm2, %v8364_v29  ;;  %v8330_v33 = vmax.f32 %v8294_v13, 0.0  ;;  %v10921_v15 = vpop.f32.mrb[30].mxu1 }
 0x685   : > { %v8367_v40 = vmul.f32 %v8331_v31, %v13559_v37  ;;  %v8297_v43 = vadd.f32 %v10921_v15, %v13367_v30  ;;  %v8194_v45 = vpop.f32.mrb[31].mxu1 }
 0x686   : > { %v8366_v48 = vmul.f32 %v8330_v33, %v13560_v25  ;;  %v8296_v49 = vadd.f32 %v13367_v30, %v8194_v45 }
 0x687   : > { %8403 = vst.msk [vmem:[%s13375_s23 + $0xe8] sm:$0xff] %vm4382_vm2, %v8367_v40  ;;  %v8333_v28 = vmax.f32 %v8297_v43, 0.0 }
 0x688   : > { %8402 = vst.msk [vmem:[%s13375_s23 + $0xe0] sm:$0xff] %vm4382_vm2, %v8366_v48  ;;  %v8332_v50 = vmax.f32 %v8296_v49, 0.0  ;;  %v10924_v5 = vpop.f32.mrb[32].mxu1 }
 0x689   : > { %v8369_v1 = vmul.f32 %v8333_v28, %v13561_v52  ;;  %v8299_v38 = vadd.f32 %v10924_v5, %v13367_v30  ;;  %v8204_v3 = vpop.f32.mrb[33].mxu1 }
 0x68a   : > { %v8368_v41 = vmul.f32 %v8332_v50, %v13562_v53  ;;  %v8298_v54 = vadd.f32 %v13367_v30, %v8204_v3 }
 0x68b   : > { %8405 = vst.msk [vmem:[%s13375_s23 + $0xf8] sm:$0xff] %vm4382_vm2, %v8369_v1  ;;  %v8335_v55 = vmax.f32 %v8299_v38, 0.0 }
 0x68c   : > { %8404 = vst.msk [vmem:[%s13375_s23 + $0xf0] sm:$0xff] %vm4382_vm2, %v8368_v41  ;;  %v8334_v60 = vmax.f32 %v8298_v54, 0.0  ;;  %v10927_v4 = vpop.f32.mrb[34].mxu1 }
 0x68d   : > { %v8371_v61 = vmul.f32 %v8335_v55, %v13563_v56  ;;  %v8301_v14 = vadd.f32 %v10927_v4, %v13367_v30  ;;  %v8214_v59 = vpop.f32.mrb[35].mxu1 }
 0x68e   : > { %v8370_v18 = vmul.f32 %v8334_v60, %v13564_v2  ;;  %v8300_v20 = vadd.f32 %v13367_v30, %v8214_v59 }
 0x68f   : > { %8407 = vst.msk [vmem:[%s13375_s23 + $0x108] sm:$0xff] %vm4382_vm2, %v8371_v61  ;;  %v8337_v12 = vmax.f32 %v8301_v14, 0.0 }
 0x690   : > { %8406 = vst.msk [vmem:[%s13375_s23 + $0x100] sm:$0xff] %vm4382_vm2, %v8370_v18  ;;  %v8336_v23 = vmax.f32 %v8300_v20, 0.0 }
 0x691   : > { %v8373_v6 = vmul.f32 %v8337_v12, %v13565_v36 }
 0x692   : > { %v8372_v35 = vmul.f32 %v8336_v23, %v13566_v27 }
 0x693   : > { %8409 = vst.msk [vmem:[%s13375_s23 + $0x118] sm:$0x3f] %vm4460_vm3, %v8373_v6 }
 0x694   : > { %8408 = vst.msk [vmem:[%s13375_s23 + $0x110] sm:$0xff] %vm4382_vm2, %v8372_v35 }
 0x695 PF: > { %s16_s21 = sadd.s32 1, %s11596_s21  }
 0x696   : > { %p13_p4 = scmp.ge.s32.totalorder %s16_s21, 4  }
 0x698   :  { %15 = sbr.rel (!%p13_p4) target bundleno = 1 (0x1), region = 90 }

</bundles_post_ra>
